<compile_context>
chip_gen: v7x
topology: tpu7x:2x2x1
jax: 0.10.0
libtpu: 0.0.40
codegen_flags: <defaults>
</compile_context>

<pallas_src>
from functools import partial

import jax
import jax.numpy as jnp
from jax import lax
from jax.experimental import pallas as pl
from jax.experimental.pallas import tpu as pltpu

# Small, deterministic config consistent with the module's constructor.
VOCAB_SIZE = 2      # {'START': 0, 'END': 1}
INPUT_SIZE = 16     # embedding dim (module's `input_size`)
HIDDEN = 32
NUM_LAYERS = 3
BATCH = 2
SEQ = 8


def _round_up(n, m):
    return ((n + m - 1) // m) * m


# ---- packed-weight-slab layout (all sections start on an 8-row boundary) ----
LANES  = max(4 * HIDDEN, 128)                               # 128
BP     = _round_up(BATCH, 8)                                # sublane-padded batch (2 -> 8)
R_G0   = 0                                                  # (V, 4H)  emb@Wih0.T + b0 (scaled)
R_WHH0 = _round_up(R_G0 + VOCAB_SIZE, 8)                    # (H, 4H)  Whh0.T (scaled)
R_WF   = R_WHH0 + HIDDEN                                    # (L-1, 2H, 4H) fused upper weights
R_BIAS = R_WF + (NUM_LAYERS - 1) * 2 * HIDDEN               # (L-1, 4H) fused upper biases
R_WFC  = _round_up(R_BIAS + (NUM_LAYERS - 1), 8)            # (H, Vp)  FC weights
R_BFC  = R_WFC + HIDDEN                                     # (1, Vp)  FC bias
N_ROWS = _round_up(R_BFC + 1, 8)                            # 216 rows x 128 lanes f32 ~ 108 KiB


def lstm_stack_kernel(tok_ref, w_ref, logits_ref, hn_ref, cn_ref, *,
                      num_layers, hidden, seq_len, batch, batch_pad):
    """Whole LSTM stack + FC in one kernel invocation (no grid).

    tok_ref:    (B*T,) int32 in SMEM  — tokens, row-major (b, t)
    w_ref:      (N_ROWS, 128) f32     — packed weight slab (layout above)
    logits_ref: (T*Bp, 128)           — lane-dense logits slab (V=2 sliced in wrapper)
    hn_ref/cn_ref: (L, Bp, H)         — final states, written once
    """
    L, H, T, B, Bp = num_layers, hidden, seq_len, batch, batch_pad
    G = 4 * H

    # ---- hoisted weight loads (once, reused across the whole recurrence) ----
    g_rows = [w_ref[R_G0 + v:R_G0 + v + 1, :] for v in range(2)]        # (1, G) per token value
    whh0 = w_ref[R_WHH0:R_WHH0 + H, :]                                  # (H, G)
    w_fused = [w_ref[R_WF + 2 * H * j:R_WF + 2 * H * (j + 1), :] for j in range(L - 1)]
    b_hi = [w_ref[R_BIAS + j:R_BIAS + j + 1, :] for j in range(L - 1)]  # (1, G) each
    wfc = w_ref[R_WFC:R_WFC + H, :]                                     # (H, Vp)
    bfc = w_ref[R_BFC:R_BFC + 1, :]                                     # (1, Vp)

    # ---- prologue: layer-0 input pre-activations for every timestep (token select) ----
    # TODO(synk): the 2-way select assumes vocab_size == 2; a larger vocab needs a DMA gather.
    sub = lax.broadcasted_iota(jnp.int32, (Bp, G), 0)                   # sublane (batch-row) id
    g0_pre = []
    for t in range(T):
        tok = jnp.full((Bp, G), tok_ref[(B - 1) * T + t], dtype=jnp.int32)
        for b in range(B - 1):
            tok = jnp.where(sub == b, tok_ref[b * T + t], tok)
        g0_pre.append(jnp.where(tok == 0, g_rows[0], g_rows[1]))        # (Bp, G)

    # PyTorch default hidden=None -> zero initial (h, c) for every layer.
    h = [jnp.zeros((Bp, H), jnp.float32) for _ in range(L)]
    c = [jnp.zeros((Bp, H), jnp.float32) for _ in range(L)]

    # ---- wavefront recurrence: step s computes layer l at time t = s - l ----
    # All layer updates within a wavefront depend only on the previous wavefront, so the
    # per-step matmul->tanh->update chains are independent and issued back-to-back.
    for s in range(T + L - 1):
        h_new, c_new = list(h), list(c)
        for l in range(L):
            t = s - l
            if t < 0 or t >= T:
                continue
            if l == 0:
                gates = g0_pre[t] + jnp.dot(h[0], whh0, preferred_element_type=jnp.float32)
            else:
                xh = jnp.concatenate([h[l - 1], h[l]], axis=-1)          # (Bp, 2H)
                gates = (jnp.dot(xh, w_fused[l - 1], preferred_element_type=jnp.float32)
                         + b_hi[l - 1])
            # Single EUP pass for the whole gate tile: i/f/o columns were pre-scaled by 0.5
            # at prep time, so sigmoid(z) = 0.5*(1 + tanh(z/2)) needs only this tanh.
            th = jnp.tanh(gates)
            i_g = 0.5 + 0.5 * th[:, 0:H]
            f_g = 0.5 + 0.5 * th[:, H:2 * H]
            g_g = th[:, 2 * H:3 * H]
            o_g = 0.5 + 0.5 * th[:, 3 * H:4 * H]
            c_new[l] = f_g * c[l] + i_g * g_g
            h_new[l] = o_g * jnp.tanh(c_new[l])
            if l == L - 1:
                # Per-timestep FC: hides under the recurrence; aligned lane-dense (8,128) store.
                logits_ref[t * Bp:(t + 1) * Bp, :] = (
                    jnp.dot(h_new[l], wfc, preferred_element_type=jnp.float32) + bfc)
        h, c = h_new, c_new

    hn_ref[...] = jnp.stack(h)                                           # (L, Bp, H), once
    cn_ref[...] = jnp.stack(c)


def prepare_params(params):
    """One-time init/cache step: transpose / fuse / scale / pad all weights into one slab."""
    H, L, V = HIDDEN, NUM_LAYERS, VOCAB_SIZE
    # sigmoid-via-tanh folding: pre-scale i/f/o gate columns by 0.5 (g columns keep 1.0).
    col_scale = jnp.concatenate([
        jnp.full((2 * H,), 0.5, jnp.float32),     # i, f
        jnp.full((H,), 1.0, jnp.float32),         # g
        jnp.full((H,), 0.5, jnp.float32)])        # o

    w = jnp.zeros((N_ROWS, LANES), jnp.float32)

    # Layer 0: embedding folded straight into the input projection -> (V, 4H) token table.
    b0 = params["b_ih"][0] + params["b_hh"][0]
    g0_tbl = (params["embedding"] @ params["w_ih"][0].T + b0) * col_scale
    w = w.at[R_G0:R_G0 + V, :4 * H].set(g0_tbl)
    w = w.at[R_WHH0:R_WHH0 + H, :4 * H].set(params["w_hh"][0].T * col_scale)

    # Upper layers: [W_ih.T ; W_hh.T] fused, bias fused, 0.5 scaling folded.
    for j in range(L - 1):
        wf = jnp.concatenate([params["w_ih"][j + 1].T,
                              params["w_hh"][j + 1].T], axis=0) * col_scale   # (2H, 4H)
        w = w.at[R_WF + 2 * H * j:R_WF + 2 * H * (j + 1), :4 * H].set(wf)
        bj = (params["b_ih"][j + 1] + params["b_hh"][j + 1]) * col_scale
        w = w.at[R_BIAS + j, :4 * H].set(bj)

    # FC, lane-padded to 128.
    w = w.at[R_WFC:R_WFC + H, :V].set(params["w_fc"].T)
    w = w.at[R_BFC, :V].set(params["b_fc"])
    return w


@jax.jit
def my_lstm_forward(tokens, w_packed):
    """Per-call path of myLSTM.forward(x, hidden=None). Returns (out, (h_n, c_n))."""
    B, T = tokens.shape
    L, H, V = NUM_LAYERS, HIDDEN, VOCAB_SIZE
    Bp = _round_up(B, 8)

    kernel = partial(lstm_stack_kernel, num_layers=L, hidden=H, seq_len=T,
                     batch=B, batch_pad=Bp)
    smem = pl.BlockSpec(memory_space=pltpu.MemorySpace.SMEM)
    vmem = pl.BlockSpec(memory_space=pltpu.MemorySpace.VMEM)

    logits_flat, h_n, c_n = pl.pallas_call(
        kernel,
        out_shape=(
            jax.ShapeDtypeStruct((T * Bp, LANES), jnp.float32),
            jax.ShapeDtypeStruct((L, Bp, H), jnp.float32),
            jax.ShapeDtypeStruct((L, Bp, H), jnp.float32),
        ),
        in_specs=[smem, vmem],
        out_specs=(vmem, vmem, vmem),
    )(tokens.reshape(-1).astype(jnp.int32), w_packed)

    # Strip batch/vocab padding and return batch_first like PyTorch.
    logits = logits_flat.reshape(T, Bp, LANES)[:, :B, :V]
    out = jnp.transpose(logits, (1, 0, 2))               # (B, T, V)
    return out, (h_n[:, :B, :], c_n[:, :B, :])


def init_params(key):
    """Deterministic init mirroring the PyTorch module's parameter shapes."""
    keys = jax.random.split(key, 4 + 4 * NUM_LAYERS)
    D, H, L, V = INPUT_SIZE, HIDDEN, NUM_LAYERS, VOCAB_SIZE
    k = 1.0 / jnp.sqrt(H)

    params = {
        "embedding": jax.random.normal(keys[0], (V, D), jnp.float32),
        "w_fc": jax.random.uniform(keys[1], (V, H), jnp.float32, -k, k),
        "b_fc": jax.random.uniform(keys[2], (V,), jnp.float32, -k, k),
        "w_ih": [], "w_hh": [], "b_ih": [], "b_hh": [],
    }
    for l in range(L):
        in_dim = D if l == 0 else H
        kk = keys[4 + 4 * l: 8 + 4 * l]
        params["w_ih"].append(jax.random.uniform(kk[0], (4 * H, in_dim), jnp.float32, -k, k))
        params["w_hh"].append(jax.random.uniform(kk[1], (4 * H, H), jnp.float32, -k, k))
        params["b_ih"].append(jax.random.uniform(kk[2], (4 * H,), jnp.float32, -k, k))
        params["b_hh"].append(jax.random.uniform(kk[3], (4 * H,), jnp.float32, -k, k))
    return params


def reference_forward(tokens, params):
    """Pure-JAX reference matching torch.nn.LSTM semantics (for validation)."""
    emb = params["embedding"][tokens]
    B, T, _ = emb.shape
    L, H = NUM_LAYERS, HIDDEN
    h = [jnp.zeros((B, H), jnp.float32) for _ in range(L)]
    c = [jnp.zeros((B, H), jnp.float32) for _ in range(L)]
    outs = []
    for t in range(T):
        inp = emb[:, t, :]
        for l in range(L):
            gates = (inp @ params["w_ih"][l].T + params["b_ih"][l]
                     + h[l] @ params["w_hh"][l].T + params["b_hh"][l])
            i_g = jax.nn.sigmoid(gates[:, :H])
            f_g = jax.nn.sigmoid(gates[:, H:2 * H])
            g_g = jnp.tanh(gates[:, 2 * H:3 * H])
            o_g = jax.nn.sigmoid(gates[:, 3 * H:])
            c[l] = f_g * c[l] + i_g * g_g
            h[l] = o_g * jnp.tanh(c[l])
            inp = h[l]
        outs.append(inp)
    out_seq = jnp.stack(outs, axis=1)                     # (B, T, H)
    logits = out_seq @ params["w_fc"].T + params["b_fc"]
    return logits, (jnp.stack(h), jnp.stack(c))


if __name__ == "__main__":
    key = jax.random.PRNGKey(0)
    k_tok, k_par = jax.random.split(key)

    tokens = jax.random.randint(k_tok, (BATCH, SEQ), 0, VOCAB_SIZE, dtype=jnp.int32)
    params = init_params(k_par)

    w_packed = prepare_params(params)            # one-time init/cache step (hoisted weight prep)
    out, (h_n, c_n) = my_lstm_forward(tokens, w_packed)
    jax.block_until_ready((out, h_n, c_n))

    ref_out, (ref_h, ref_c) = reference_forward(tokens, params)
    assert out.shape == (BATCH, SEQ, VOCAB_SIZE)
    assert h_n.shape == (NUM_LAYERS, BATCH, HIDDEN)
    assert c_n.shape == (NUM_LAYERS, BATCH, HIDDEN)
    assert jnp.allclose(out, ref_out, atol=1e-4, rtol=1e-4)
    assert jnp.allclose(h_n, ref_h, atol=1e-4, rtol=1e-4)
    assert jnp.allclose(c_n, ref_c, atol=1e-4, rtol=1e-4)

    print("KERNEL_OK")
</pallas_src>

<mosaic_0001>
module attributes {stable_mosaic.version = 11 : i64} {
  func.func @lstm_stack_kernel(%arg0: memref<16xi32, #tpu.memory_space<smem>>, %arg1: memref<216x128xf32, #tpu.memory_space<vmem>>, %arg2: memref<64x128xf32, #tpu.memory_space<vmem>>, %arg3: memref<3x8x32xf32, #tpu.memory_space<vmem>>, %arg4: memref<3x8x32xf32, #tpu.memory_space<vmem>>) attributes {dimension_semantics = [], scalar_prefetch = 0 : i64, scratch_operands = 0 : i64, tpu.core_type = #tpu.core_type<tc>} {
    %c0 = arith.constant 0 : index
    %c0_0 = arith.constant 0 : index
    %0 = vector.load %arg1[%c0, %c0_0] : memref<216x128xf32, #tpu.memory_space<vmem>>, vector<1x128xf32>
    %c1 = arith.constant 1 : index
    %c0_1 = arith.constant 0 : index
    %1 = vector.load %arg1[%c1, %c0_1] : memref<216x128xf32, #tpu.memory_space<vmem>>, vector<1x128xf32>
    %c8 = arith.constant 8 : index
    %c0_2 = arith.constant 0 : index
    %2 = vector.load %arg1[%c8, %c0_2] : memref<216x128xf32, #tpu.memory_space<vmem>>, vector<32x128xf32>
    %c40 = arith.constant 40 : index
    %c0_3 = arith.constant 0 : index
    %3 = vector.load %arg1[%c40, %c0_3] : memref<216x128xf32, #tpu.memory_space<vmem>>, vector<64x128xf32>
    %c104 = arith.constant 104 : index
    %c0_4 = arith.constant 0 : index
    %4 = vector.load %arg1[%c104, %c0_4] : memref<216x128xf32, #tpu.memory_space<vmem>>, vector<64x128xf32>
    %c168 = arith.constant 168 : index
    %c0_5 = arith.constant 0 : index
    %5 = vector.load %arg1[%c168, %c0_5] : memref<216x128xf32, #tpu.memory_space<vmem>>, vector<1x128xf32>
    %c169 = arith.constant 169 : index
    %c0_6 = arith.constant 0 : index
    %6 = vector.load %arg1[%c169, %c0_6] : memref<216x128xf32, #tpu.memory_space<vmem>>, vector<1x128xf32>
    %c176 = arith.constant 176 : index
    %c0_7 = arith.constant 0 : index
    %7 = vector.load %arg1[%c176, %c0_7] : memref<216x128xf32, #tpu.memory_space<vmem>>, vector<32x128xf32>
    %c208 = arith.constant 208 : index
    %c0_8 = arith.constant 0 : index
    %8 = vector.load %arg1[%c208, %c0_8] : memref<216x128xf32, #tpu.memory_space<vmem>>, vector<1x128xf32>
    %9 = tpu.iota {dimensions = array<i32: 0>} : vector<8x128xi32>
    %c8_9 = arith.constant 8 : index
    %10 = memref.load %arg0[%c8_9] : memref<16xi32, #tpu.memory_space<smem>>
    %11 = vector.broadcast %10 : i32 to vector<8x128xi32>
    %c0_i32 = arith.constant 0 : i32
    %12 = vector.broadcast %c0_i32 : i32 to vector<8x128xi32>
    %13 = arith.cmpi eq, %9, %12 : vector<8x128xi32>
    %c0_10 = arith.constant 0 : index
    %14 = memref.load %arg0[%c0_10] : memref<16xi32, #tpu.memory_space<smem>>
    %15 = vector.broadcast %14 : i32 to vector<8x128xi32>
    %16 = arith.select %13, %15, %11 : vector<8x128xi1>, vector<8x128xi32>
    %c0_i32_11 = arith.constant 0 : i32
    %17 = vector.broadcast %c0_i32_11 : i32 to vector<8x128xi32>
    %18 = arith.cmpi eq, %16, %17 : vector<8x128xi32>
    %19 = vector.shape_cast %0 : vector<1x128xf32> to vector<1x128xf32>
    %20 = vector.broadcast %19 : vector<1x128xf32> to vector<8x128xf32>
    %21 = vector.shape_cast %1 : vector<1x128xf32> to vector<1x128xf32>
    %22 = vector.broadcast %21 : vector<1x128xf32> to vector<8x128xf32>
    %23 = arith.select %18, %20, %22 : vector<8x128xi1>, vector<8x128xf32>
    %c9 = arith.constant 9 : index
    %24 = memref.load %arg0[%c9] : memref<16xi32, #tpu.memory_space<smem>>
    %25 = vector.broadcast %24 : i32 to vector<8x128xi32>
    %c0_i32_12 = arith.constant 0 : i32
    %26 = vector.broadcast %c0_i32_12 : i32 to vector<8x128xi32>
    %27 = arith.cmpi eq, %9, %26 : vector<8x128xi32>
    %c1_13 = arith.constant 1 : index
    %28 = memref.load %arg0[%c1_13] : memref<16xi32, #tpu.memory_space<smem>>
    %29 = vector.broadcast %28 : i32 to vector<8x128xi32>
    %30 = arith.select %27, %29, %25 : vector<8x128xi1>, vector<8x128xi32>
    %c0_i32_14 = arith.constant 0 : i32
    %31 = vector.broadcast %c0_i32_14 : i32 to vector<8x128xi32>
    %32 = arith.cmpi eq, %30, %31 : vector<8x128xi32>
    %33 = vector.shape_cast %0 : vector<1x128xf32> to vector<1x128xf32>
    %34 = vector.broadcast %33 : vector<1x128xf32> to vector<8x128xf32>
    %35 = vector.shape_cast %1 : vector<1x128xf32> to vector<1x128xf32>
    %36 = vector.broadcast %35 : vector<1x128xf32> to vector<8x128xf32>
    %37 = arith.select %32, %34, %36 : vector<8x128xi1>, vector<8x128xf32>
    %c10 = arith.constant 10 : index
    %38 = memref.load %arg0[%c10] : memref<16xi32, #tpu.memory_space<smem>>
    %39 = vector.broadcast %38 : i32 to vector<8x128xi32>
    %c0_i32_15 = arith.constant 0 : i32
    %40 = vector.broadcast %c0_i32_15 : i32 to vector<8x128xi32>
    %41 = arith.cmpi eq, %9, %40 : vector<8x128xi32>
    %c2 = arith.constant 2 : index
    %42 = memref.load %arg0[%c2] : memref<16xi32, #tpu.memory_space<smem>>
    %43 = vector.broadcast %42 : i32 to vector<8x128xi32>
    %44 = arith.select %41, %43, %39 : vector<8x128xi1>, vector<8x128xi32>
    %c0_i32_16 = arith.constant 0 : i32
    %45 = vector.broadcast %c0_i32_16 : i32 to vector<8x128xi32>
    %46 = arith.cmpi eq, %44, %45 : vector<8x128xi32>
    %47 = vector.shape_cast %0 : vector<1x128xf32> to vector<1x128xf32>
    %48 = vector.broadcast %47 : vector<1x128xf32> to vector<8x128xf32>
    %49 = vector.shape_cast %1 : vector<1x128xf32> to vector<1x128xf32>
    %50 = vector.broadcast %49 : vector<1x128xf32> to vector<8x128xf32>
    %51 = arith.select %46, %48, %50 : vector<8x128xi1>, vector<8x128xf32>
    %c11 = arith.constant 11 : index
    %52 = memref.load %arg0[%c11] : memref<16xi32, #tpu.memory_space<smem>>
    %53 = vector.broadcast %52 : i32 to vector<8x128xi32>
    %c0_i32_17 = arith.constant 0 : i32
    %54 = vector.broadcast %c0_i32_17 : i32 to vector<8x128xi32>
    %55 = arith.cmpi eq, %9, %54 : vector<8x128xi32>
    %c3 = arith.constant 3 : index
    %56 = memref.load %arg0[%c3] : memref<16xi32, #tpu.memory_space<smem>>
    %57 = vector.broadcast %56 : i32 to vector<8x128xi32>
    %58 = arith.select %55, %57, %53 : vector<8x128xi1>, vector<8x128xi32>
    %c0_i32_18 = arith.constant 0 : i32
    %59 = vector.broadcast %c0_i32_18 : i32 to vector<8x128xi32>
    %60 = arith.cmpi eq, %58, %59 : vector<8x128xi32>
    %61 = vector.shape_cast %0 : vector<1x128xf32> to vector<1x128xf32>
    %62 = vector.broadcast %61 : vector<1x128xf32> to vector<8x128xf32>
    %63 = vector.shape_cast %1 : vector<1x128xf32> to vector<1x128xf32>
    %64 = vector.broadcast %63 : vector<1x128xf32> to vector<8x128xf32>
    %65 = arith.select %60, %62, %64 : vector<8x128xi1>, vector<8x128xf32>
    %c12 = arith.constant 12 : index
    %66 = memref.load %arg0[%c12] : memref<16xi32, #tpu.memory_space<smem>>
    %67 = vector.broadcast %66 : i32 to vector<8x128xi32>
    %c0_i32_19 = arith.constant 0 : i32
    %68 = vector.broadcast %c0_i32_19 : i32 to vector<8x128xi32>
    %69 = arith.cmpi eq, %9, %68 : vector<8x128xi32>
    %c4 = arith.constant 4 : index
    %70 = memref.load %arg0[%c4] : memref<16xi32, #tpu.memory_space<smem>>
    %71 = vector.broadcast %70 : i32 to vector<8x128xi32>
    %72 = arith.select %69, %71, %67 : vector<8x128xi1>, vector<8x128xi32>
    %c0_i32_20 = arith.constant 0 : i32
    %73 = vector.broadcast %c0_i32_20 : i32 to vector<8x128xi32>
    %74 = arith.cmpi eq, %72, %73 : vector<8x128xi32>
    %75 = vector.shape_cast %0 : vector<1x128xf32> to vector<1x128xf32>
    %76 = vector.broadcast %75 : vector<1x128xf32> to vector<8x128xf32>
    %77 = vector.shape_cast %1 : vector<1x128xf32> to vector<1x128xf32>
    %78 = vector.broadcast %77 : vector<1x128xf32> to vector<8x128xf32>
    %79 = arith.select %74, %76, %78 : vector<8x128xi1>, vector<8x128xf32>
    %c13 = arith.constant 13 : index
    %80 = memref.load %arg0[%c13] : memref<16xi32, #tpu.memory_space<smem>>
    %81 = vector.broadcast %80 : i32 to vector<8x128xi32>
    %c0_i32_21 = arith.constant 0 : i32
    %82 = vector.broadcast %c0_i32_21 : i32 to vector<8x128xi32>
    %83 = arith.cmpi eq, %9, %82 : vector<8x128xi32>
    %c5 = arith.constant 5 : index
    %84 = memref.load %arg0[%c5] : memref<16xi32, #tpu.memory_space<smem>>
    %85 = vector.broadcast %84 : i32 to vector<8x128xi32>
    %86 = arith.select %83, %85, %81 : vector<8x128xi1>, vector<8x128xi32>
    %c0_i32_22 = arith.constant 0 : i32
    %87 = vector.broadcast %c0_i32_22 : i32 to vector<8x128xi32>
    %88 = arith.cmpi eq, %86, %87 : vector<8x128xi32>
    %89 = vector.shape_cast %0 : vector<1x128xf32> to vector<1x128xf32>
    %90 = vector.broadcast %89 : vector<1x128xf32> to vector<8x128xf32>
    %91 = vector.shape_cast %1 : vector<1x128xf32> to vector<1x128xf32>
    %92 = vector.broadcast %91 : vector<1x128xf32> to vector<8x128xf32>
    %93 = arith.select %88, %90, %92 : vector<8x128xi1>, vector<8x128xf32>
    %c14 = arith.constant 14 : index
    %94 = memref.load %arg0[%c14] : memref<16xi32, #tpu.memory_space<smem>>
    %95 = vector.broadcast %94 : i32 to vector<8x128xi32>
    %c0_i32_23 = arith.constant 0 : i32
    %96 = vector.broadcast %c0_i32_23 : i32 to vector<8x128xi32>
    %97 = arith.cmpi eq, %9, %96 : vector<8x128xi32>
    %c6 = arith.constant 6 : index
    %98 = memref.load %arg0[%c6] : memref<16xi32, #tpu.memory_space<smem>>
    %99 = vector.broadcast %98 : i32 to vector<8x128xi32>
    %100 = arith.select %97, %99, %95 : vector<8x128xi1>, vector<8x128xi32>
    %c0_i32_24 = arith.constant 0 : i32
    %101 = vector.broadcast %c0_i32_24 : i32 to vector<8x128xi32>
    %102 = arith.cmpi eq, %100, %101 : vector<8x128xi32>
    %103 = vector.shape_cast %0 : vector<1x128xf32> to vector<1x128xf32>
    %104 = vector.broadcast %103 : vector<1x128xf32> to vector<8x128xf32>
    %105 = vector.shape_cast %1 : vector<1x128xf32> to vector<1x128xf32>
    %106 = vector.broadcast %105 : vector<1x128xf32> to vector<8x128xf32>
    %107 = arith.select %102, %104, %106 : vector<8x128xi1>, vector<8x128xf32>
    %c15 = arith.constant 15 : index
    %108 = memref.load %arg0[%c15] : memref<16xi32, #tpu.memory_space<smem>>
    %109 = vector.broadcast %108 : i32 to vector<8x128xi32>
    %c0_i32_25 = arith.constant 0 : i32
    %110 = vector.broadcast %c0_i32_25 : i32 to vector<8x128xi32>
    %111 = arith.cmpi eq, %9, %110 : vector<8x128xi32>
    %c7 = arith.constant 7 : index
    %112 = memref.load %arg0[%c7] : memref<16xi32, #tpu.memory_space<smem>>
    %113 = vector.broadcast %112 : i32 to vector<8x128xi32>
    %114 = arith.select %111, %113, %109 : vector<8x128xi1>, vector<8x128xi32>
    %c0_i32_26 = arith.constant 0 : i32
    %115 = vector.broadcast %c0_i32_26 : i32 to vector<8x128xi32>
    %116 = arith.cmpi eq, %114, %115 : vector<8x128xi32>
    %117 = vector.shape_cast %0 : vector<1x128xf32> to vector<1x128xf32>
    %118 = vector.broadcast %117 : vector<1x128xf32> to vector<8x128xf32>
    %119 = vector.shape_cast %1 : vector<1x128xf32> to vector<1x128xf32>
    %120 = vector.broadcast %119 : vector<1x128xf32> to vector<8x128xf32>
    %121 = arith.select %116, %118, %120 : vector<8x128xi1>, vector<8x128xf32>
    %cst = arith.constant 0.000000e+00 : f32
    %122 = vector.broadcast %cst : f32 to vector<8x32xf32>
    %cst_27 = arith.constant 0.000000e+00 : f32
    %123 = vector.broadcast %cst_27 : f32 to vector<8x32xf32>
    %cst_28 = arith.constant 0.000000e+00 : f32
    %124 = vector.broadcast %cst_28 : f32 to vector<8x32xf32>
    %cst_29 = arith.constant 0.000000e+00 : f32
    %125 = vector.broadcast %cst_29 : f32 to vector<8x32xf32>
    %cst_30 = arith.constant 0.000000e+00 : f32
    %126 = vector.broadcast %cst_30 : f32 to vector<8x32xf32>
    %cst_31 = arith.constant 0.000000e+00 : f32
    %127 = vector.broadcast %cst_31 : f32 to vector<8x32xf32>
    %cst_32 = arith.constant dense<0.000000e+00> : vector<8x128xf32>
    %128 = tpu.matmul %122, %2, %cst_32 {dimension_numbers = #tpu.dot_dimension_numbers<[1], [0], [0], [1], [0, 0, 1, 1], [], []>} : vector<8x32xf32>, vector<32x128xf32>, vector<8x128xf32> -> vector<8x128xf32>
    %129 = arith.addf %23, %128 : vector<8x128xf32>
    %130 = math.tanh %129 : vector<8x128xf32>
    %131 = vector.extract_strided_slice %130 {offsets = [0, 0], sizes = [8, 32], strides = [1, 1]} : vector<8x128xf32> to vector<8x32xf32>
    %cst_33 = arith.constant 5.000000e-01 : f32
    %132 = vector.broadcast %cst_33 : f32 to vector<8x32xf32>
    %133 = arith.mulf %132, %131 : vector<8x32xf32>
    %cst_34 = arith.constant 5.000000e-01 : f32
    %134 = vector.broadcast %cst_34 : f32 to vector<8x32xf32>
    %135 = arith.addf %134, %133 : vector<8x32xf32>
    %136 = vector.extract_strided_slice %130 {offsets = [0, 32], sizes = [8, 32], strides = [1, 1]} : vector<8x128xf32> to vector<8x32xf32>
    %cst_35 = arith.constant 5.000000e-01 : f32
    %137 = vector.broadcast %cst_35 : f32 to vector<8x32xf32>
    %138 = arith.mulf %137, %136 : vector<8x32xf32>
    %cst_36 = arith.constant 5.000000e-01 : f32
    %139 = vector.broadcast %cst_36 : f32 to vector<8x32xf32>
    %140 = arith.addf %139, %138 : vector<8x32xf32>
    %141 = vector.extract_strided_slice %130 {offsets = [0, 64], sizes = [8, 32], strides = [1, 1]} : vector<8x128xf32> to vector<8x32xf32>
    %142 = vector.extract_strided_slice %130 {offsets = [0, 96], sizes = [8, 32], strides = [1, 1]} : vector<8x128xf32> to vector<8x32xf32>
    %cst_37 = arith.constant 5.000000e-01 : f32
    %143 = vector.broadcast %cst_37 : f32 to vector<8x32xf32>
    %144 = arith.mulf %143, %142 : vector<8x32xf32>
    %cst_38 = arith.constant 5.000000e-01 : f32
    %145 = vector.broadcast %cst_38 : f32 to vector<8x32xf32>
    %146 = arith.addf %145, %144 : vector<8x32xf32>
    %147 = arith.mulf %140, %125 : vector<8x32xf32>
    %148 = arith.mulf %135, %141 : vector<8x32xf32>
    %149 = arith.addf %147, %148 : vector<8x32xf32>
    %150 = math.tanh %149 : vector<8x32xf32>
    %151 = arith.mulf %146, %150 : vector<8x32xf32>
    %cst_39 = arith.constant dense<0.000000e+00> : vector<8x128xf32>
    %152 = tpu.matmul %151, %2, %cst_39 {dimension_numbers = #tpu.dot_dimension_numbers<[1], [0], [0], [1], [0, 0, 1, 1], [], []>} : vector<8x32xf32>, vector<32x128xf32>, vector<8x128xf32> -> vector<8x128xf32>
    %153 = arith.addf %37, %152 : vector<8x128xf32>
    %154 = math.tanh %153 : vector<8x128xf32>
    %155 = vector.extract_strided_slice %154 {offsets = [0, 0], sizes = [8, 32], strides = [1, 1]} : vector<8x128xf32> to vector<8x32xf32>
    %cst_40 = arith.constant 5.000000e-01 : f32
    %156 = vector.broadcast %cst_40 : f32 to vector<8x32xf32>
    %157 = arith.mulf %156, %155 : vector<8x32xf32>
    %cst_41 = arith.constant 5.000000e-01 : f32
    %158 = vector.broadcast %cst_41 : f32 to vector<8x32xf32>
    %159 = arith.addf %158, %157 : vector<8x32xf32>
    %160 = vector.extract_strided_slice %154 {offsets = [0, 32], sizes = [8, 32], strides = [1, 1]} : vector<8x128xf32> to vector<8x32xf32>
    %cst_42 = arith.constant 5.000000e-01 : f32
    %161 = vector.broadcast %cst_42 : f32 to vector<8x32xf32>
    %162 = arith.mulf %161, %160 : vector<8x32xf32>
    %cst_43 = arith.constant 5.000000e-01 : f32
    %163 = vector.broadcast %cst_43 : f32 to vector<8x32xf32>
    %164 = arith.addf %163, %162 : vector<8x32xf32>
    %165 = vector.extract_strided_slice %154 {offsets = [0, 64], sizes = [8, 32], strides = [1, 1]} : vector<8x128xf32> to vector<8x32xf32>
    %166 = vector.extract_strided_slice %154 {offsets = [0, 96], sizes = [8, 32], strides = [1, 1]} : vector<8x128xf32> to vector<8x32xf32>
    %cst_44 = arith.constant 5.000000e-01 : f32
    %167 = vector.broadcast %cst_44 : f32 to vector<8x32xf32>
    %168 = arith.mulf %167, %166 : vector<8x32xf32>
    %cst_45 = arith.constant 5.000000e-01 : f32
    %169 = vector.broadcast %cst_45 : f32 to vector<8x32xf32>
    %170 = arith.addf %169, %168 : vector<8x32xf32>
    %171 = arith.mulf %164, %149 : vector<8x32xf32>
    %172 = arith.mulf %159, %165 : vector<8x32xf32>
    %173 = arith.addf %171, %172 : vector<8x32xf32>
    %174 = math.tanh %173 : vector<8x32xf32>
    %175 = arith.mulf %170, %174 : vector<8x32xf32>
    %176 = tpu.concatenate %151, %123 in 1 : vector<8x32xf32>, vector<8x32xf32> -> vector<8x64xf32>
    %cst_46 = arith.constant dense<0.000000e+00> : vector<8x128xf32>
    %177 = tpu.matmul %176, %3, %cst_46 {dimension_numbers = #tpu.dot_dimension_numbers<[1], [0], [0], [1], [0, 0, 1, 1], [], []>} : vector<8x64xf32>, vector<64x128xf32>, vector<8x128xf32> -> vector<8x128xf32>
    %178 = vector.broadcast %5 : vector<1x128xf32> to vector<8x128xf32>
    %179 = arith.addf %177, %178 : vector<8x128xf32>
    %180 = math.tanh %179 : vector<8x128xf32>
    %181 = vector.extract_strided_slice %180 {offsets = [0, 0], sizes = [8, 32], strides = [1, 1]} : vector<8x128xf32> to vector<8x32xf32>
    %cst_47 = arith.constant 5.000000e-01 : f32
    %182 = vector.broadcast %cst_47 : f32 to vector<8x32xf32>
    %183 = arith.mulf %182, %181 : vector<8x32xf32>
    %cst_48 = arith.constant 5.000000e-01 : f32
    %184 = vector.broadcast %cst_48 : f32 to vector<8x32xf32>
    %185 = arith.addf %184, %183 : vector<8x32xf32>
    %186 = vector.extract_strided_slice %180 {offsets = [0, 32], sizes = [8, 32], strides = [1, 1]} : vector<8x128xf32> to vector<8x32xf32>
    %cst_49 = arith.constant 5.000000e-01 : f32
    %187 = vector.broadcast %cst_49 : f32 to vector<8x32xf32>
    %188 = arith.mulf %187, %186 : vector<8x32xf32>
    %cst_50 = arith.constant 5.000000e-01 : f32
    %189 = vector.broadcast %cst_50 : f32 to vector<8x32xf32>
    %190 = arith.addf %189, %188 : vector<8x32xf32>
    %191 = vector.extract_strided_slice %180 {offsets = [0, 64], sizes = [8, 32], strides = [1, 1]} : vector<8x128xf32> to vector<8x32xf32>
    %192 = vector.extract_strided_slice %180 {offsets = [0, 96], sizes = [8, 32], strides = [1, 1]} : vector<8x128xf32> to vector<8x32xf32>
    %cst_51 = arith.constant 5.000000e-01 : f32
    %193 = vector.broadcast %cst_51 : f32 to vector<8x32xf32>
    %194 = arith.mulf %193, %192 : vector<8x32xf32>
    %cst_52 = arith.constant 5.000000e-01 : f32
    %195 = vector.broadcast %cst_52 : f32 to vector<8x32xf32>
    %196 = arith.addf %195, %194 : vector<8x32xf32>
    %197 = arith.mulf %190, %126 : vector<8x32xf32>
    %198 = arith.mulf %185, %191 : vector<8x32xf32>
    %199 = arith.addf %197, %198 : vector<8x32xf32>
    %200 = math.tanh %199 : vector<8x32xf32>
    %201 = arith.mulf %196, %200 : vector<8x32xf32>
    %cst_53 = arith.constant dense<0.000000e+00> : vector<8x128xf32>
    %202 = tpu.matmul %175, %2, %cst_53 {dimension_numbers = #tpu.dot_dimension_numbers<[1], [0], [0], [1], [0, 0, 1, 1], [], []>} : vector<8x32xf32>, vector<32x128xf32>, vector<8x128xf32> -> vector<8x128xf32>
    %203 = arith.addf %51, %202 : vector<8x128xf32>
    %204 = math.tanh %203 : vector<8x128xf32>
    %205 = vector.extract_strided_slice %204 {offsets = [0, 0], sizes = [8, 32], strides = [1, 1]} : vector<8x128xf32> to vector<8x32xf32>
    %cst_54 = arith.constant 5.000000e-01 : f32
    %206 = vector.broadcast %cst_54 : f32 to vector<8x32xf32>
    %207 = arith.mulf %206, %205 : vector<8x32xf32>
    %cst_55 = arith.constant 5.000000e-01 : f32
    %208 = vector.broadcast %cst_55 : f32 to vector<8x32xf32>
    %209 = arith.addf %208, %207 : vector<8x32xf32>
    %210 = vector.extract_strided_slice %204 {offsets = [0, 32], sizes = [8, 32], strides = [1, 1]} : vector<8x128xf32> to vector<8x32xf32>
    %cst_56 = arith.constant 5.000000e-01 : f32
    %211 = vector.broadcast %cst_56 : f32 to vector<8x32xf32>
    %212 = arith.mulf %211, %210 : vector<8x32xf32>
    %cst_57 = arith.constant 5.000000e-01 : f32
    %213 = vector.broadcast %cst_57 : f32 to vector<8x32xf32>
    %214 = arith.addf %213, %212 : vector<8x32xf32>
    %215 = vector.extract_strided_slice %204 {offsets = [0, 64], sizes = [8, 32], strides = [1, 1]} : vector<8x128xf32> to vector<8x32xf32>
    %216 = vector.extract_strided_slice %204 {offsets = [0, 96], sizes = [8, 32], strides = [1, 1]} : vector<8x128xf32> to vector<8x32xf32>
    %cst_58 = arith.constant 5.000000e-01 : f32
    %217 = vector.broadcast %cst_58 : f32 to vector<8x32xf32>
    %218 = arith.mulf %217, %216 : vector<8x32xf32>
    %cst_59 = arith.constant 5.000000e-01 : f32
    %219 = vector.broadcast %cst_59 : f32 to vector<8x32xf32>
    %220 = arith.addf %219, %218 : vector<8x32xf32>
    %221 = arith.mulf %214, %173 : vector<8x32xf32>
    %222 = arith.mulf %209, %215 : vector<8x32xf32>
    %223 = arith.addf %221, %222 : vector<8x32xf32>
    %224 = math.tanh %223 : vector<8x32xf32>
    %225 = arith.mulf %220, %224 : vector<8x32xf32>
    %226 = tpu.concatenate %175, %201 in 1 : vector<8x32xf32>, vector<8x32xf32> -> vector<8x64xf32>
    %cst_60 = arith.constant dense<0.000000e+00> : vector<8x128xf32>
    %227 = tpu.matmul %226, %3, %cst_60 {dimension_numbers = #tpu.dot_dimension_numbers<[1], [0], [0], [1], [0, 0, 1, 1], [], []>} : vector<8x64xf32>, vector<64x128xf32>, vector<8x128xf32> -> vector<8x128xf32>
    %228 = vector.broadcast %5 : vector<1x128xf32> to vector<8x128xf32>
    %229 = arith.addf %227, %228 : vector<8x128xf32>
    %230 = math.tanh %229 : vector<8x128xf32>
    %231 = vector.extract_strided_slice %230 {offsets = [0, 0], sizes = [8, 32], strides = [1, 1]} : vector<8x128xf32> to vector<8x32xf32>
    %cst_61 = arith.constant 5.000000e-01 : f32
    %232 = vector.broadcast %cst_61 : f32 to vector<8x32xf32>
    %233 = arith.mulf %232, %231 : vector<8x32xf32>
    %cst_62 = arith.constant 5.000000e-01 : f32
    %234 = vector.broadcast %cst_62 : f32 to vector<8x32xf32>
    %235 = arith.addf %234, %233 : vector<8x32xf32>
    %236 = vector.extract_strided_slice %230 {offsets = [0, 32], sizes = [8, 32], strides = [1, 1]} : vector<8x128xf32> to vector<8x32xf32>
    %cst_63 = arith.constant 5.000000e-01 : f32
    %237 = vector.broadcast %cst_63 : f32 to vector<8x32xf32>
    %238 = arith.mulf %237, %236 : vector<8x32xf32>
    %cst_64 = arith.constant 5.000000e-01 : f32
    %239 = vector.broadcast %cst_64 : f32 to vector<8x32xf32>
    %240 = arith.addf %239, %238 : vector<8x32xf32>
    %241 = vector.extract_strided_slice %230 {offsets = [0, 64], sizes = [8, 32], strides = [1, 1]} : vector<8x128xf32> to vector<8x32xf32>
    %242 = vector.extract_strided_slice %230 {offsets = [0, 96], sizes = [8, 32], strides = [1, 1]} : vector<8x128xf32> to vector<8x32xf32>
    %cst_65 = arith.constant 5.000000e-01 : f32
    %243 = vector.broadcast %cst_65 : f32 to vector<8x32xf32>
    %244 = arith.mulf %243, %242 : vector<8x32xf32>
    %cst_66 = arith.constant 5.000000e-01 : f32
    %245 = vector.broadcast %cst_66 : f32 to vector<8x32xf32>
    %246 = arith.addf %245, %244 : vector<8x32xf32>
    %247 = arith.mulf %240, %199 : vector<8x32xf32>
    %248 = arith.mulf %235, %241 : vector<8x32xf32>
    %249 = arith.addf %247, %248 : vector<8x32xf32>
    %250 = math.tanh %249 : vector<8x32xf32>
    %251 = arith.mulf %246, %250 : vector<8x32xf32>
    %252 = tpu.concatenate %201, %124 in 1 : vector<8x32xf32>, vector<8x32xf32> -> vector<8x64xf32>
    %cst_67 = arith.constant dense<0.000000e+00> : vector<8x128xf32>
    %253 = tpu.matmul %252, %4, %cst_67 {dimension_numbers = #tpu.dot_dimension_numbers<[1], [0], [0], [1], [0, 0, 1, 1], [], []>} : vector<8x64xf32>, vector<64x128xf32>, vector<8x128xf32> -> vector<8x128xf32>
    %254 = vector.broadcast %6 : vector<1x128xf32> to vector<8x128xf32>
    %255 = arith.addf %253, %254 : vector<8x128xf32>
    %256 = math.tanh %255 : vector<8x128xf32>
    %257 = vector.extract_strided_slice %256 {offsets = [0, 0], sizes = [8, 32], strides = [1, 1]} : vector<8x128xf32> to vector<8x32xf32>
    %cst_68 = arith.constant 5.000000e-01 : f32
    %258 = vector.broadcast %cst_68 : f32 to vector<8x32xf32>
    %259 = arith.mulf %258, %257 : vector<8x32xf32>
    %cst_69 = arith.constant 5.000000e-01 : f32
    %260 = vector.broadcast %cst_69 : f32 to vector<8x32xf32>
    %261 = arith.addf %260, %259 : vector<8x32xf32>
    %262 = vector.extract_strided_slice %256 {offsets = [0, 32], sizes = [8, 32], strides = [1, 1]} : vector<8x128xf32> to vector<8x32xf32>
    %cst_70 = arith.constant 5.000000e-01 : f32
    %263 = vector.broadcast %cst_70 : f32 to vector<8x32xf32>
    %264 = arith.mulf %263, %262 : vector<8x32xf32>
    %cst_71 = arith.constant 5.000000e-01 : f32
    %265 = vector.broadcast %cst_71 : f32 to vector<8x32xf32>
    %266 = arith.addf %265, %264 : vector<8x32xf32>
    %267 = vector.extract_strided_slice %256 {offsets = [0, 64], sizes = [8, 32], strides = [1, 1]} : vector<8x128xf32> to vector<8x32xf32>
    %268 = vector.extract_strided_slice %256 {offsets = [0, 96], sizes = [8, 32], strides = [1, 1]} : vector<8x128xf32> to vector<8x32xf32>
    %cst_72 = arith.constant 5.000000e-01 : f32
    %269 = vector.broadcast %cst_72 : f32 to vector<8x32xf32>
    %270 = arith.mulf %269, %268 : vector<8x32xf32>
    %cst_73 = arith.constant 5.000000e-01 : f32
    %271 = vector.broadcast %cst_73 : f32 to vector<8x32xf32>
    %272 = arith.addf %271, %270 : vector<8x32xf32>
    %273 = arith.mulf %266, %127 : vector<8x32xf32>
    %274 = arith.mulf %261, %267 : vector<8x32xf32>
    %275 = arith.addf %273, %274 : vector<8x32xf32>
    %276 = math.tanh %275 : vector<8x32xf32>
    %277 = arith.mulf %272, %276 : vector<8x32xf32>
    %cst_74 = arith.constant dense<0.000000e+00> : vector<8x128xf32>
    %278 = tpu.matmul %277, %7, %cst_74 {dimension_numbers = #tpu.dot_dimension_numbers<[1], [0], [0], [1], [0, 0, 1, 1], [], []>} : vector<8x32xf32>, vector<32x128xf32>, vector<8x128xf32> -> vector<8x128xf32>
    %279 = vector.broadcast %8 : vector<1x128xf32> to vector<8x128xf32>
    %280 = arith.addf %278, %279 : vector<8x128xf32>
    %c0_75 = arith.constant 0 : index
    %c0_76 = arith.constant 0 : index
    %281 = vector.load %arg2[%c0_75, %c0_76] : memref<64x128xf32, #tpu.memory_space<vmem>>, vector<8x128xf32>
    tpu.vector_store %arg2[%c0_75, %c0_76], %280 {strides = array<i32>} : memref<64x128xf32, #tpu.memory_space<vmem>>, vector<8x128xf32>,
    %cst_77 = arith.constant dense<0.000000e+00> : vector<8x128xf32>
    %282 = tpu.matmul %225, %2, %cst_77 {dimension_numbers = #tpu.dot_dimension_numbers<[1], [0], [0], [1], [0, 0, 1, 1], [], []>} : vector<8x32xf32>, vector<32x128xf32>, vector<8x128xf32> -> vector<8x128xf32>
    %283 = arith.addf %65, %282 : vector<8x128xf32>
    %284 = math.tanh %283 : vector<8x128xf32>
    %285 = vector.extract_strided_slice %284 {offsets = [0, 0], sizes = [8, 32], strides = [1, 1]} : vector<8x128xf32> to vector<8x32xf32>
    %cst_78 = arith.constant 5.000000e-01 : f32
    %286 = vector.broadcast %cst_78 : f32 to vector<8x32xf32>
    %287 = arith.mulf %286, %285 : vector<8x32xf32>
    %cst_79 = arith.constant 5.000000e-01 : f32
    %288 = vector.broadcast %cst_79 : f32 to vector<8x32xf32>
    %289 = arith.addf %288, %287 : vector<8x32xf32>
    %290 = vector.extract_strided_slice %284 {offsets = [0, 32], sizes = [8, 32], strides = [1, 1]} : vector<8x128xf32> to vector<8x32xf32>
    %cst_80 = arith.constant 5.000000e-01 : f32
    %291 = vector.broadcast %cst_80 : f32 to vector<8x32xf32>
    %292 = arith.mulf %291, %290 : vector<8x32xf32>
    %cst_81 = arith.constant 5.000000e-01 : f32
    %293 = vector.broadcast %cst_81 : f32 to vector<8x32xf32>
    %294 = arith.addf %293, %292 : vector<8x32xf32>
    %295 = vector.extract_strided_slice %284 {offsets = [0, 64], sizes = [8, 32], strides = [1, 1]} : vector<8x128xf32> to vector<8x32xf32>
    %296 = vector.extract_strided_slice %284 {offsets = [0, 96], sizes = [8, 32], strides = [1, 1]} : vector<8x128xf32> to vector<8x32xf32>
    %cst_82 = arith.constant 5.000000e-01 : f32
    %297 = vector.broadcast %cst_82 : f32 to vector<8x32xf32>
    %298 = arith.mulf %297, %296 : vector<8x32xf32>
    %cst_83 = arith.constant 5.000000e-01 : f32
    %299 = vector.broadcast %cst_83 : f32 to vector<8x32xf32>
    %300 = arith.addf %299, %298 : vector<8x32xf32>
    %301 = arith.mulf %294, %223 : vector<8x32xf32>
    %302 = arith.mulf %289, %295 : vector<8x32xf32>
    %303 = arith.addf %301, %302 : vector<8x32xf32>
    %304 = math.tanh %303 : vector<8x32xf32>
    %305 = arith.mulf %300, %304 : vector<8x32xf32>
    %306 = tpu.concatenate %225, %251 in 1 : vector<8x32xf32>, vector<8x32xf32> -> vector<8x64xf32>
    %cst_84 = arith.constant dense<0.000000e+00> : vector<8x128xf32>
    %307 = tpu.matmul %306, %3, %cst_84 {dimension_numbers = #tpu.dot_dimension_numbers<[1], [0], [0], [1], [0, 0, 1, 1], [], []>} : vector<8x64xf32>, vector<64x128xf32>, vector<8x128xf32> -> vector<8x128xf32>
    %308 = vector.broadcast %5 : vector<1x128xf32> to vector<8x128xf32>
    %309 = arith.addf %307, %308 : vector<8x128xf32>
    %310 = math.tanh %309 : vector<8x128xf32>
    %311 = vector.extract_strided_slice %310 {offsets = [0, 0], sizes = [8, 32], strides = [1, 1]} : vector<8x128xf32> to vector<8x32xf32>
    %cst_85 = arith.constant 5.000000e-01 : f32
    %312 = vector.broadcast %cst_85 : f32 to vector<8x32xf32>
    %313 = arith.mulf %312, %311 : vector<8x32xf32>
    %cst_86 = arith.constant 5.000000e-01 : f32
    %314 = vector.broadcast %cst_86 : f32 to vector<8x32xf32>
    %315 = arith.addf %314, %313 : vector<8x32xf32>
    %316 = vector.extract_strided_slice %310 {offsets = [0, 32], sizes = [8, 32], strides = [1, 1]} : vector<8x128xf32> to vector<8x32xf32>
    %cst_87 = arith.constant 5.000000e-01 : f32
    %317 = vector.broadcast %cst_87 : f32 to vector<8x32xf32>
    %318 = arith.mulf %317, %316 : vector<8x32xf32>
    %cst_88 = arith.constant 5.000000e-01 : f32
    %319 = vector.broadcast %cst_88 : f32 to vector<8x32xf32>
    %320 = arith.addf %319, %318 : vector<8x32xf32>
    %321 = vector.extract_strided_slice %310 {offsets = [0, 64], sizes = [8, 32], strides = [1, 1]} : vector<8x128xf32> to vector<8x32xf32>
    %322 = vector.extract_strided_slice %310 {offsets = [0, 96], sizes = [8, 32], strides = [1, 1]} : vector<8x128xf32> to vector<8x32xf32>
    %cst_89 = arith.constant 5.000000e-01 : f32
    %323 = vector.broadcast %cst_89 : f32 to vector<8x32xf32>
    %324 = arith.mulf %323, %322 : vector<8x32xf32>
    %cst_90 = arith.constant 5.000000e-01 : f32
    %325 = vector.broadcast %cst_90 : f32 to vector<8x32xf32>
    %326 = arith.addf %325, %324 : vector<8x32xf32>
    %327 = arith.mulf %320, %249 : vector<8x32xf32>
    %328 = arith.mulf %315, %321 : vector<8x32xf32>
    %329 = arith.addf %327, %328 : vector<8x32xf32>
    %330 = math.tanh %329 : vector<8x32xf32>
    %331 = arith.mulf %326, %330 : vector<8x32xf32>
    %332 = tpu.concatenate %251, %277 in 1 : vector<8x32xf32>, vector<8x32xf32> -> vector<8x64xf32>
    %cst_91 = arith.constant dense<0.000000e+00> : vector<8x128xf32>
    %333 = tpu.matmul %332, %4, %cst_91 {dimension_numbers = #tpu.dot_dimension_numbers<[1], [0], [0], [1], [0, 0, 1, 1], [], []>} : vector<8x64xf32>, vector<64x128xf32>, vector<8x128xf32> -> vector<8x128xf32>
    %334 = vector.broadcast %6 : vector<1x128xf32> to vector<8x128xf32>
    %335 = arith.addf %333, %334 : vector<8x128xf32>
    %336 = math.tanh %335 : vector<8x128xf32>
    %337 = vector.extract_strided_slice %336 {offsets = [0, 0], sizes = [8, 32], strides = [1, 1]} : vector<8x128xf32> to vector<8x32xf32>
    %cst_92 = arith.constant 5.000000e-01 : f32
    %338 = vector.broadcast %cst_92 : f32 to vector<8x32xf32>
    %339 = arith.mulf %338, %337 : vector<8x32xf32>
    %cst_93 = arith.constant 5.000000e-01 : f32
    %340 = vector.broadcast %cst_93 : f32 to vector<8x32xf32>
    %341 = arith.addf %340, %339 : vector<8x32xf32>
    %342 = vector.extract_strided_slice %336 {offsets = [0, 32], sizes = [8, 32], strides = [1, 1]} : vector<8x128xf32> to vector<8x32xf32>
    %cst_94 = arith.constant 5.000000e-01 : f32
    %343 = vector.broadcast %cst_94 : f32 to vector<8x32xf32>
    %344 = arith.mulf %343, %342 : vector<8x32xf32>
    %cst_95 = arith.constant 5.000000e-01 : f32
    %345 = vector.broadcast %cst_95 : f32 to vector<8x32xf32>
    %346 = arith.addf %345, %344 : vector<8x32xf32>
    %347 = vector.extract_strided_slice %336 {offsets = [0, 64], sizes = [8, 32], strides = [1, 1]} : vector<8x128xf32> to vector<8x32xf32>
    %348 = vector.extract_strided_slice %336 {offsets = [0, 96], sizes = [8, 32], strides = [1, 1]} : vector<8x128xf32> to vector<8x32xf32>
    %cst_96 = arith.constant 5.000000e-01 : f32
    %349 = vector.broadcast %cst_96 : f32 to vector<8x32xf32>
    %350 = arith.mulf %349, %348 : vector<8x32xf32>
    %cst_97 = arith.constant 5.000000e-01 : f32
    %351 = vector.broadcast %cst_97 : f32 to vector<8x32xf32>
    %352 = arith.addf %351, %350 : vector<8x32xf32>
    %353 = arith.mulf %346, %275 : vector<8x32xf32>
    %354 = arith.mulf %341, %347 : vector<8x32xf32>
    %355 = arith.addf %353, %354 : vector<8x32xf32>
    %356 = math.tanh %355 : vector<8x32xf32>
    %357 = arith.mulf %352, %356 : vector<8x32xf32>
    %cst_98 = arith.constant dense<0.000000e+00> : vector<8x128xf32>
    %358 = tpu.matmul %357, %7, %cst_98 {dimension_numbers = #tpu.dot_dimension_numbers<[1], [0], [0], [1], [0, 0, 1, 1], [], []>} : vector<8x32xf32>, vector<32x128xf32>, vector<8x128xf32> -> vector<8x128xf32>
    %359 = vector.broadcast %8 : vector<1x128xf32> to vector<8x128xf32>
    %360 = arith.addf %358, %359 : vector<8x128xf32>
    %c8_99 = arith.constant 8 : index
    %c0_100 = arith.constant 0 : index
    %361 = vector.load %arg2[%c8_99, %c0_100] : memref<64x128xf32, #tpu.memory_space<vmem>>, vector<8x128xf32>
    tpu.vector_store %arg2[%c8_99, %c0_100], %360 {strides = array<i32>} : memref<64x128xf32, #tpu.memory_space<vmem>>, vector<8x128xf32>,
    %cst_101 = arith.constant dense<0.000000e+00> : vector<8x128xf32>
    %362 = tpu.matmul %305, %2, %cst_101 {dimension_numbers = #tpu.dot_dimension_numbers<[1], [0], [0], [1], [0, 0, 1, 1], [], []>} : vector<8x32xf32>, vector<32x128xf32>, vector<8x128xf32> -> vector<8x128xf32>
    %363 = arith.addf %79, %362 : vector<8x128xf32>
    %364 = math.tanh %363 : vector<8x128xf32>
    %365 = vector.extract_strided_slice %364 {offsets = [0, 0], sizes = [8, 32], strides = [1, 1]} : vector<8x128xf32> to vector<8x32xf32>
    %cst_102 = arith.constant 5.000000e-01 : f32
    %366 = vector.broadcast %cst_102 : f32 to vector<8x32xf32>
    %367 = arith.mulf %366, %365 : vector<8x32xf32>
    %cst_103 = arith.constant 5.000000e-01 : f32
    %368 = vector.broadcast %cst_103 : f32 to vector<8x32xf32>
    %369 = arith.addf %368, %367 : vector<8x32xf32>
    %370 = vector.extract_strided_slice %364 {offsets = [0, 32], sizes = [8, 32], strides = [1, 1]} : vector<8x128xf32> to vector<8x32xf32>
    %cst_104 = arith.constant 5.000000e-01 : f32
    %371 = vector.broadcast %cst_104 : f32 to vector<8x32xf32>
    %372 = arith.mulf %371, %370 : vector<8x32xf32>
    %cst_105 = arith.constant 5.000000e-01 : f32
    %373 = vector.broadcast %cst_105 : f32 to vector<8x32xf32>
    %374 = arith.addf %373, %372 : vector<8x32xf32>
    %375 = vector.extract_strided_slice %364 {offsets = [0, 64], sizes = [8, 32], strides = [1, 1]} : vector<8x128xf32> to vector<8x32xf32>
    %376 = vector.extract_strided_slice %364 {offsets = [0, 96], sizes = [8, 32], strides = [1, 1]} : vector<8x128xf32> to vector<8x32xf32>
    %cst_106 = arith.constant 5.000000e-01 : f32
    %377 = vector.broadcast %cst_106 : f32 to vector<8x32xf32>
    %378 = arith.mulf %377, %376 : vector<8x32xf32>
    %cst_107 = arith.constant 5.000000e-01 : f32
    %379 = vector.broadcast %cst_107 : f32 to vector<8x32xf32>
    %380 = arith.addf %379, %378 : vector<8x32xf32>
    %381 = arith.mulf %374, %303 : vector<8x32xf32>
    %382 = arith.mulf %369, %375 : vector<8x32xf32>
    %383 = arith.addf %381, %382 : vector<8x32xf32>
    %384 = math.tanh %383 : vector<8x32xf32>
    %385 = arith.mulf %380, %384 : vector<8x32xf32>
    %386 = tpu.concatenate %305, %331 in 1 : vector<8x32xf32>, vector<8x32xf32> -> vector<8x64xf32>
    %cst_108 = arith.constant dense<0.000000e+00> : vector<8x128xf32>
    %387 = tpu.matmul %386, %3, %cst_108 {dimension_numbers = #tpu.dot_dimension_numbers<[1], [0], [0], [1], [0, 0, 1, 1], [], []>} : vector<8x64xf32>, vector<64x128xf32>, vector<8x128xf32> -> vector<8x128xf32>
    %388 = vector.broadcast %5 : vector<1x128xf32> to vector<8x128xf32>
    %389 = arith.addf %387, %388 : vector<8x128xf32>
    %390 = math.tanh %389 : vector<8x128xf32>
    %391 = vector.extract_strided_slice %390 {offsets = [0, 0], sizes = [8, 32], strides = [1, 1]} : vector<8x128xf32> to vector<8x32xf32>
    %cst_109 = arith.constant 5.000000e-01 : f32
    %392 = vector.broadcast %cst_109 : f32 to vector<8x32xf32>
    %393 = arith.mulf %392, %391 : vector<8x32xf32>
    %cst_110 = arith.constant 5.000000e-01 : f32
    %394 = vector.broadcast %cst_110 : f32 to vector<8x32xf32>
    %395 = arith.addf %394, %393 : vector<8x32xf32>
    %396 = vector.extract_strided_slice %390 {offsets = [0, 32], sizes = [8, 32], strides = [1, 1]} : vector<8x128xf32> to vector<8x32xf32>
    %cst_111 = arith.constant 5.000000e-01 : f32
    %397 = vector.broadcast %cst_111 : f32 to vector<8x32xf32>
    %398 = arith.mulf %397, %396 : vector<8x32xf32>
    %cst_112 = arith.constant 5.000000e-01 : f32
    %399 = vector.broadcast %cst_112 : f32 to vector<8x32xf32>
    %400 = arith.addf %399, %398 : vector<8x32xf32>
    %401 = vector.extract_strided_slice %390 {offsets = [0, 64], sizes = [8, 32], strides = [1, 1]} : vector<8x128xf32> to vector<8x32xf32>
    %402 = vector.extract_strided_slice %390 {offsets = [0, 96], sizes = [8, 32], strides = [1, 1]} : vector<8x128xf32> to vector<8x32xf32>
    %cst_113 = arith.constant 5.000000e-01 : f32
    %403 = vector.broadcast %cst_113 : f32 to vector<8x32xf32>
    %404 = arith.mulf %403, %402 : vector<8x32xf32>
    %cst_114 = arith.constant 5.000000e-01 : f32
    %405 = vector.broadcast %cst_114 : f32 to vector<8x32xf32>
    %406 = arith.addf %405, %404 : vector<8x32xf32>
    %407 = arith.mulf %400, %329 : vector<8x32xf32>
    %408 = arith.mulf %395, %401 : vector<8x32xf32>
    %409 = arith.addf %407, %408 : vector<8x32xf32>
    %410 = math.tanh %409 : vector<8x32xf32>
    %411 = arith.mulf %406, %410 : vector<8x32xf32>
    %412 = tpu.concatenate %331, %357 in 1 : vector<8x32xf32>, vector<8x32xf32> -> vector<8x64xf32>
    %cst_115 = arith.constant dense<0.000000e+00> : vector<8x128xf32>
    %413 = tpu.matmul %412, %4, %cst_115 {dimension_numbers = #tpu.dot_dimension_numbers<[1], [0], [0], [1], [0, 0, 1, 1], [], []>} : vector<8x64xf32>, vector<64x128xf32>, vector<8x128xf32> -> vector<8x128xf32>
    %414 = vector.broadcast %6 : vector<1x128xf32> to vector<8x128xf32>
    %415 = arith.addf %413, %414 : vector<8x128xf32>
    %416 = math.tanh %415 : vector<8x128xf32>
    %417 = vector.extract_strided_slice %416 {offsets = [0, 0], sizes = [8, 32], strides = [1, 1]} : vector<8x128xf32> to vector<8x32xf32>
    %cst_116 = arith.constant 5.000000e-01 : f32
    %418 = vector.broadcast %cst_116 : f32 to vector<8x32xf32>
    %419 = arith.mulf %418, %417 : vector<8x32xf32>
    %cst_117 = arith.constant 5.000000e-01 : f32
    %420 = vector.broadcast %cst_117 : f32 to vector<8x32xf32>
    %421 = arith.addf %420, %419 : vector<8x32xf32>
    %422 = vector.extract_strided_slice %416 {offsets = [0, 32], sizes = [8, 32], strides = [1, 1]} : vector<8x128xf32> to vector<8x32xf32>
    %cst_118 = arith.constant 5.000000e-01 : f32
    %423 = vector.broadcast %cst_118 : f32 to vector<8x32xf32>
    %424 = arith.mulf %423, %422 : vector<8x32xf32>
    %cst_119 = arith.constant 5.000000e-01 : f32
    %425 = vector.broadcast %cst_119 : f32 to vector<8x32xf32>
    %426 = arith.addf %425, %424 : vector<8x32xf32>
    %427 = vector.extract_strided_slice %416 {offsets = [0, 64], sizes = [8, 32], strides = [1, 1]} : vector<8x128xf32> to vector<8x32xf32>
    %428 = vector.extract_strided_slice %416 {offsets = [0, 96], sizes = [8, 32], strides = [1, 1]} : vector<8x128xf32> to vector<8x32xf32>
    %cst_120 = arith.constant 5.000000e-01 : f32
    %429 = vector.broadcast %cst_120 : f32 to vector<8x32xf32>
    %430 = arith.mulf %429, %428 : vector<8x32xf32>
    %cst_121 = arith.constant 5.000000e-01 : f32
    %431 = vector.broadcast %cst_121 : f32 to vector<8x32xf32>
    %432 = arith.addf %431, %430 : vector<8x32xf32>
    %433 = arith.mulf %426, %355 : vector<8x32xf32>
    %434 = arith.mulf %421, %427 : vector<8x32xf32>
    %435 = arith.addf %433, %434 : vector<8x32xf32>
    %436 = math.tanh %435 : vector<8x32xf32>
    %437 = arith.mulf %432, %436 : vector<8x32xf32>
    %cst_122 = arith.constant dense<0.000000e+00> : vector<8x128xf32>
    %438 = tpu.matmul %437, %7, %cst_122 {dimension_numbers = #tpu.dot_dimension_numbers<[1], [0], [0], [1], [0, 0, 1, 1], [], []>} : vector<8x32xf32>, vector<32x128xf32>, vector<8x128xf32> -> vector<8x128xf32>
    %439 = vector.broadcast %8 : vector<1x128xf32> to vector<8x128xf32>
    %440 = arith.addf %438, %439 : vector<8x128xf32>
    %c16 = arith.constant 16 : index
    %c0_123 = arith.constant 0 : index
    %441 = vector.load %arg2[%c16, %c0_123] : memref<64x128xf32, #tpu.memory_space<vmem>>, vector<8x128xf32>
    tpu.vector_store %arg2[%c16, %c0_123], %440 {strides = array<i32>} : memref<64x128xf32, #tpu.memory_space<vmem>>, vector<8x128xf32>,
    %cst_124 = arith.constant dense<0.000000e+00> : vector<8x128xf32>
    %442 = tpu.matmul %385, %2, %cst_124 {dimension_numbers = #tpu.dot_dimension_numbers<[1], [0], [0], [1], [0, 0, 1, 1], [], []>} : vector<8x32xf32>, vector<32x128xf32>, vector<8x128xf32> -> vector<8x128xf32>
    %443 = arith.addf %93, %442 : vector<8x128xf32>
    %444 = math.tanh %443 : vector<8x128xf32>
    %445 = vector.extract_strided_slice %444 {offsets = [0, 0], sizes = [8, 32], strides = [1, 1]} : vector<8x128xf32> to vector<8x32xf32>
    %cst_125 = arith.constant 5.000000e-01 : f32
    %446 = vector.broadcast %cst_125 : f32 to vector<8x32xf32>
    %447 = arith.mulf %446, %445 : vector<8x32xf32>
    %cst_126 = arith.constant 5.000000e-01 : f32
    %448 = vector.broadcast %cst_126 : f32 to vector<8x32xf32>
    %449 = arith.addf %448, %447 : vector<8x32xf32>
    %450 = vector.extract_strided_slice %444 {offsets = [0, 32], sizes = [8, 32], strides = [1, 1]} : vector<8x128xf32> to vector<8x32xf32>
    %cst_127 = arith.constant 5.000000e-01 : f32
    %451 = vector.broadcast %cst_127 : f32 to vector<8x32xf32>
    %452 = arith.mulf %451, %450 : vector<8x32xf32>
    %cst_128 = arith.constant 5.000000e-01 : f32
    %453 = vector.broadcast %cst_128 : f32 to vector<8x32xf32>
    %454 = arith.addf %453, %452 : vector<8x32xf32>
    %455 = vector.extract_strided_slice %444 {offsets = [0, 64], sizes = [8, 32], strides = [1, 1]} : vector<8x128xf32> to vector<8x32xf32>
    %456 = vector.extract_strided_slice %444 {offsets = [0, 96], sizes = [8, 32], strides = [1, 1]} : vector<8x128xf32> to vector<8x32xf32>
    %cst_129 = arith.constant 5.000000e-01 : f32
    %457 = vector.broadcast %cst_129 : f32 to vector<8x32xf32>
    %458 = arith.mulf %457, %456 : vector<8x32xf32>
    %cst_130 = arith.constant 5.000000e-01 : f32
    %459 = vector.broadcast %cst_130 : f32 to vector<8x32xf32>
    %460 = arith.addf %459, %458 : vector<8x32xf32>
    %461 = arith.mulf %454, %383 : vector<8x32xf32>
    %462 = arith.mulf %449, %455 : vector<8x32xf32>
    %463 = arith.addf %461, %462 : vector<8x32xf32>
    %464 = math.tanh %463 : vector<8x32xf32>
    %465 = arith.mulf %460, %464 : vector<8x32xf32>
    %466 = tpu.concatenate %385, %411 in 1 : vector<8x32xf32>, vector<8x32xf32> -> vector<8x64xf32>
    %cst_131 = arith.constant dense<0.000000e+00> : vector<8x128xf32>
    %467 = tpu.matmul %466, %3, %cst_131 {dimension_numbers = #tpu.dot_dimension_numbers<[1], [0], [0], [1], [0, 0, 1, 1], [], []>} : vector<8x64xf32>, vector<64x128xf32>, vector<8x128xf32> -> vector<8x128xf32>
    %468 = vector.broadcast %5 : vector<1x128xf32> to vector<8x128xf32>
    %469 = arith.addf %467, %468 : vector<8x128xf32>
    %470 = math.tanh %469 : vector<8x128xf32>
    %471 = vector.extract_strided_slice %470 {offsets = [0, 0], sizes = [8, 32], strides = [1, 1]} : vector<8x128xf32> to vector<8x32xf32>
    %cst_132 = arith.constant 5.000000e-01 : f32
    %472 = vector.broadcast %cst_132 : f32 to vector<8x32xf32>
    %473 = arith.mulf %472, %471 : vector<8x32xf32>
    %cst_133 = arith.constant 5.000000e-01 : f32
    %474 = vector.broadcast %cst_133 : f32 to vector<8x32xf32>
    %475 = arith.addf %474, %473 : vector<8x32xf32>
    %476 = vector.extract_strided_slice %470 {offsets = [0, 32], sizes = [8, 32], strides = [1, 1]} : vector<8x128xf32> to vector<8x32xf32>
    %cst_134 = arith.constant 5.000000e-01 : f32
    %477 = vector.broadcast %cst_134 : f32 to vector<8x32xf32>
    %478 = arith.mulf %477, %476 : vector<8x32xf32>
    %cst_135 = arith.constant 5.000000e-01 : f32
    %479 = vector.broadcast %cst_135 : f32 to vector<8x32xf32>
    %480 = arith.addf %479, %478 : vector<8x32xf32>
    %481 = vector.extract_strided_slice %470 {offsets = [0, 64], sizes = [8, 32], strides = [1, 1]} : vector<8x128xf32> to vector<8x32xf32>
    %482 = vector.extract_strided_slice %470 {offsets = [0, 96], sizes = [8, 32], strides = [1, 1]} : vector<8x128xf32> to vector<8x32xf32>
    %cst_136 = arith.constant 5.000000e-01 : f32
    %483 = vector.broadcast %cst_136 : f32 to vector<8x32xf32>
    %484 = arith.mulf %483, %482 : vector<8x32xf32>
    %cst_137 = arith.constant 5.000000e-01 : f32
    %485 = vector.broadcast %cst_137 : f32 to vector<8x32xf32>
    %486 = arith.addf %485, %484 : vector<8x32xf32>
    %487 = arith.mulf %480, %409 : vector<8x32xf32>
    %488 = arith.mulf %475, %481 : vector<8x32xf32>
    %489 = arith.addf %487, %488 : vector<8x32xf32>
    %490 = math.tanh %489 : vector<8x32xf32>
    %491 = arith.mulf %486, %490 : vector<8x32xf32>
    %492 = tpu.concatenate %411, %437 in 1 : vector<8x32xf32>, vector<8x32xf32> -> vector<8x64xf32>
    %cst_138 = arith.constant dense<0.000000e+00> : vector<8x128xf32>
    %493 = tpu.matmul %492, %4, %cst_138 {dimension_numbers = #tpu.dot_dimension_numbers<[1], [0], [0], [1], [0, 0, 1, 1], [], []>} : vector<8x64xf32>, vector<64x128xf32>, vector<8x128xf32> -> vector<8x128xf32>
    %494 = vector.broadcast %6 : vector<1x128xf32> to vector<8x128xf32>
    %495 = arith.addf %493, %494 : vector<8x128xf32>
    %496 = math.tanh %495 : vector<8x128xf32>
    %497 = vector.extract_strided_slice %496 {offsets = [0, 0], sizes = [8, 32], strides = [1, 1]} : vector<8x128xf32> to vector<8x32xf32>
    %cst_139 = arith.constant 5.000000e-01 : f32
    %498 = vector.broadcast %cst_139 : f32 to vector<8x32xf32>
    %499 = arith.mulf %498, %497 : vector<8x32xf32>
    %cst_140 = arith.constant 5.000000e-01 : f32
    %500 = vector.broadcast %cst_140 : f32 to vector<8x32xf32>
    %501 = arith.addf %500, %499 : vector<8x32xf32>
    %502 = vector.extract_strided_slice %496 {offsets = [0, 32], sizes = [8, 32], strides = [1, 1]} : vector<8x128xf32> to vector<8x32xf32>
    %cst_141 = arith.constant 5.000000e-01 : f32
    %503 = vector.broadcast %cst_141 : f32 to vector<8x32xf32>
    %504 = arith.mulf %503, %502 : vector<8x32xf32>
    %cst_142 = arith.constant 5.000000e-01 : f32
    %505 = vector.broadcast %cst_142 : f32 to vector<8x32xf32>
    %506 = arith.addf %505, %504 : vector<8x32xf32>
    %507 = vector.extract_strided_slice %496 {offsets = [0, 64], sizes = [8, 32], strides = [1, 1]} : vector<8x128xf32> to vector<8x32xf32>
    %508 = vector.extract_strided_slice %496 {offsets = [0, 96], sizes = [8, 32], strides = [1, 1]} : vector<8x128xf32> to vector<8x32xf32>
    %cst_143 = arith.constant 5.000000e-01 : f32
    %509 = vector.broadcast %cst_143 : f32 to vector<8x32xf32>
    %510 = arith.mulf %509, %508 : vector<8x32xf32>
    %cst_144 = arith.constant 5.000000e-01 : f32
    %511 = vector.broadcast %cst_144 : f32 to vector<8x32xf32>
    %512 = arith.addf %511, %510 : vector<8x32xf32>
    %513 = arith.mulf %506, %435 : vector<8x32xf32>
    %514 = arith.mulf %501, %507 : vector<8x32xf32>
    %515 = arith.addf %513, %514 : vector<8x32xf32>
    %516 = math.tanh %515 : vector<8x32xf32>
    %517 = arith.mulf %512, %516 : vector<8x32xf32>
    %cst_145 = arith.constant dense<0.000000e+00> : vector<8x128xf32>
    %518 = tpu.matmul %517, %7, %cst_145 {dimension_numbers = #tpu.dot_dimension_numbers<[1], [0], [0], [1], [0, 0, 1, 1], [], []>} : vector<8x32xf32>, vector<32x128xf32>, vector<8x128xf32> -> vector<8x128xf32>
    %519 = vector.broadcast %8 : vector<1x128xf32> to vector<8x128xf32>
    %520 = arith.addf %518, %519 : vector<8x128xf32>
    %c24 = arith.constant 24 : index
    %c0_146 = arith.constant 0 : index
    %521 = vector.load %arg2[%c24, %c0_146] : memref<64x128xf32, #tpu.memory_space<vmem>>, vector<8x128xf32>
    tpu.vector_store %arg2[%c24, %c0_146], %520 {strides = array<i32>} : memref<64x128xf32, #tpu.memory_space<vmem>>, vector<8x128xf32>,
    %cst_147 = arith.constant dense<0.000000e+00> : vector<8x128xf32>
    %522 = tpu.matmul %465, %2, %cst_147 {dimension_numbers = #tpu.dot_dimension_numbers<[1], [0], [0], [1], [0, 0, 1, 1], [], []>} : vector<8x32xf32>, vector<32x128xf32>, vector<8x128xf32> -> vector<8x128xf32>
    %523 = arith.addf %107, %522 : vector<8x128xf32>
    %524 = math.tanh %523 : vector<8x128xf32>
    %525 = vector.extract_strided_slice %524 {offsets = [0, 0], sizes = [8, 32], strides = [1, 1]} : vector<8x128xf32> to vector<8x32xf32>
    %cst_148 = arith.constant 5.000000e-01 : f32
    %526 = vector.broadcast %cst_148 : f32 to vector<8x32xf32>
    %527 = arith.mulf %526, %525 : vector<8x32xf32>
    %cst_149 = arith.constant 5.000000e-01 : f32
    %528 = vector.broadcast %cst_149 : f32 to vector<8x32xf32>
    %529 = arith.addf %528, %527 : vector<8x32xf32>
    %530 = vector.extract_strided_slice %524 {offsets = [0, 32], sizes = [8, 32], strides = [1, 1]} : vector<8x128xf32> to vector<8x32xf32>
    %cst_150 = arith.constant 5.000000e-01 : f32
    %531 = vector.broadcast %cst_150 : f32 to vector<8x32xf32>
    %532 = arith.mulf %531, %530 : vector<8x32xf32>
    %cst_151 = arith.constant 5.000000e-01 : f32
    %533 = vector.broadcast %cst_151 : f32 to vector<8x32xf32>
    %534 = arith.addf %533, %532 : vector<8x32xf32>
    %535 = vector.extract_strided_slice %524 {offsets = [0, 64], sizes = [8, 32], strides = [1, 1]} : vector<8x128xf32> to vector<8x32xf32>
    %536 = vector.extract_strided_slice %524 {offsets = [0, 96], sizes = [8, 32], strides = [1, 1]} : vector<8x128xf32> to vector<8x32xf32>
    %cst_152 = arith.constant 5.000000e-01 : f32
    %537 = vector.broadcast %cst_152 : f32 to vector<8x32xf32>
    %538 = arith.mulf %537, %536 : vector<8x32xf32>
    %cst_153 = arith.constant 5.000000e-01 : f32
    %539 = vector.broadcast %cst_153 : f32 to vector<8x32xf32>
    %540 = arith.addf %539, %538 : vector<8x32xf32>
    %541 = arith.mulf %534, %463 : vector<8x32xf32>
    %542 = arith.mulf %529, %535 : vector<8x32xf32>
    %543 = arith.addf %541, %542 : vector<8x32xf32>
    %544 = math.tanh %543 : vector<8x32xf32>
    %545 = arith.mulf %540, %544 : vector<8x32xf32>
    %546 = tpu.concatenate %465, %491 in 1 : vector<8x32xf32>, vector<8x32xf32> -> vector<8x64xf32>
    %cst_154 = arith.constant dense<0.000000e+00> : vector<8x128xf32>
    %547 = tpu.matmul %546, %3, %cst_154 {dimension_numbers = #tpu.dot_dimension_numbers<[1], [0], [0], [1], [0, 0, 1, 1], [], []>} : vector<8x64xf32>, vector<64x128xf32>, vector<8x128xf32> -> vector<8x128xf32>
    %548 = vector.broadcast %5 : vector<1x128xf32> to vector<8x128xf32>
    %549 = arith.addf %547, %548 : vector<8x128xf32>
    %550 = math.tanh %549 : vector<8x128xf32>
    %551 = vector.extract_strided_slice %550 {offsets = [0, 0], sizes = [8, 32], strides = [1, 1]} : vector<8x128xf32> to vector<8x32xf32>
    %cst_155 = arith.constant 5.000000e-01 : f32
    %552 = vector.broadcast %cst_155 : f32 to vector<8x32xf32>
    %553 = arith.mulf %552, %551 : vector<8x32xf32>
    %cst_156 = arith.constant 5.000000e-01 : f32
    %554 = vector.broadcast %cst_156 : f32 to vector<8x32xf32>
    %555 = arith.addf %554, %553 : vector<8x32xf32>
    %556 = vector.extract_strided_slice %550 {offsets = [0, 32], sizes = [8, 32], strides = [1, 1]} : vector<8x128xf32> to vector<8x32xf32>
    %cst_157 = arith.constant 5.000000e-01 : f32
    %557 = vector.broadcast %cst_157 : f32 to vector<8x32xf32>
    %558 = arith.mulf %557, %556 : vector<8x32xf32>
    %cst_158 = arith.constant 5.000000e-01 : f32
    %559 = vector.broadcast %cst_158 : f32 to vector<8x32xf32>
    %560 = arith.addf %559, %558 : vector<8x32xf32>
    %561 = vector.extract_strided_slice %550 {offsets = [0, 64], sizes = [8, 32], strides = [1, 1]} : vector<8x128xf32> to vector<8x32xf32>
    %562 = vector.extract_strided_slice %550 {offsets = [0, 96], sizes = [8, 32], strides = [1, 1]} : vector<8x128xf32> to vector<8x32xf32>
    %cst_159 = arith.constant 5.000000e-01 : f32
    %563 = vector.broadcast %cst_159 : f32 to vector<8x32xf32>
    %564 = arith.mulf %563, %562 : vector<8x32xf32>
    %cst_160 = arith.constant 5.000000e-01 : f32
    %565 = vector.broadcast %cst_160 : f32 to vector<8x32xf32>
    %566 = arith.addf %565, %564 : vector<8x32xf32>
    %567 = arith.mulf %560, %489 : vector<8x32xf32>
    %568 = arith.mulf %555, %561 : vector<8x32xf32>
    %569 = arith.addf %567, %568 : vector<8x32xf32>
    %570 = math.tanh %569 : vector<8x32xf32>
    %571 = arith.mulf %566, %570 : vector<8x32xf32>
    %572 = tpu.concatenate %491, %517 in 1 : vector<8x32xf32>, vector<8x32xf32> -> vector<8x64xf32>
    %cst_161 = arith.constant dense<0.000000e+00> : vector<8x128xf32>
    %573 = tpu.matmul %572, %4, %cst_161 {dimension_numbers = #tpu.dot_dimension_numbers<[1], [0], [0], [1], [0, 0, 1, 1], [], []>} : vector<8x64xf32>, vector<64x128xf32>, vector<8x128xf32> -> vector<8x128xf32>
    %574 = vector.broadcast %6 : vector<1x128xf32> to vector<8x128xf32>
    %575 = arith.addf %573, %574 : vector<8x128xf32>
    %576 = math.tanh %575 : vector<8x128xf32>
    %577 = vector.extract_strided_slice %576 {offsets = [0, 0], sizes = [8, 32], strides = [1, 1]} : vector<8x128xf32> to vector<8x32xf32>
    %cst_162 = arith.constant 5.000000e-01 : f32
    %578 = vector.broadcast %cst_162 : f32 to vector<8x32xf32>
    %579 = arith.mulf %578, %577 : vector<8x32xf32>
    %cst_163 = arith.constant 5.000000e-01 : f32
    %580 = vector.broadcast %cst_163 : f32 to vector<8x32xf32>
    %581 = arith.addf %580, %579 : vector<8x32xf32>
    %582 = vector.extract_strided_slice %576 {offsets = [0, 32], sizes = [8, 32], strides = [1, 1]} : vector<8x128xf32> to vector<8x32xf32>
    %cst_164 = arith.constant 5.000000e-01 : f32
    %583 = vector.broadcast %cst_164 : f32 to vector<8x32xf32>
    %584 = arith.mulf %583, %582 : vector<8x32xf32>
    %cst_165 = arith.constant 5.000000e-01 : f32
    %585 = vector.broadcast %cst_165 : f32 to vector<8x32xf32>
    %586 = arith.addf %585, %584 : vector<8x32xf32>
    %587 = vector.extract_strided_slice %576 {offsets = [0, 64], sizes = [8, 32], strides = [1, 1]} : vector<8x128xf32> to vector<8x32xf32>
    %588 = vector.extract_strided_slice %576 {offsets = [0, 96], sizes = [8, 32], strides = [1, 1]} : vector<8x128xf32> to vector<8x32xf32>
    %cst_166 = arith.constant 5.000000e-01 : f32
    %589 = vector.broadcast %cst_166 : f32 to vector<8x32xf32>
    %590 = arith.mulf %589, %588 : vector<8x32xf32>
    %cst_167 = arith.constant 5.000000e-01 : f32
    %591 = vector.broadcast %cst_167 : f32 to vector<8x32xf32>
    %592 = arith.addf %591, %590 : vector<8x32xf32>
    %593 = arith.mulf %586, %515 : vector<8x32xf32>
    %594 = arith.mulf %581, %587 : vector<8x32xf32>
    %595 = arith.addf %593, %594 : vector<8x32xf32>
    %596 = math.tanh %595 : vector<8x32xf32>
    %597 = arith.mulf %592, %596 : vector<8x32xf32>
    %cst_168 = arith.constant dense<0.000000e+00> : vector<8x128xf32>
    %598 = tpu.matmul %597, %7, %cst_168 {dimension_numbers = #tpu.dot_dimension_numbers<[1], [0], [0], [1], [0, 0, 1, 1], [], []>} : vector<8x32xf32>, vector<32x128xf32>, vector<8x128xf32> -> vector<8x128xf32>
    %599 = vector.broadcast %8 : vector<1x128xf32> to vector<8x128xf32>
    %600 = arith.addf %598, %599 : vector<8x128xf32>
    %c32 = arith.constant 32 : index
    %c0_169 = arith.constant 0 : index
    %601 = vector.load %arg2[%c32, %c0_169] : memref<64x128xf32, #tpu.memory_space<vmem>>, vector<8x128xf32>
    tpu.vector_store %arg2[%c32, %c0_169], %600 {strides = array<i32>} : memref<64x128xf32, #tpu.memory_space<vmem>>, vector<8x128xf32>,
    %cst_170 = arith.constant dense<0.000000e+00> : vector<8x128xf32>
    %602 = tpu.matmul %545, %2, %cst_170 {dimension_numbers = #tpu.dot_dimension_numbers<[1], [0], [0], [1], [0, 0, 1, 1], [], []>} : vector<8x32xf32>, vector<32x128xf32>, vector<8x128xf32> -> vector<8x128xf32>
    %603 = arith.addf %121, %602 : vector<8x128xf32>
    %604 = math.tanh %603 : vector<8x128xf32>
    %605 = vector.extract_strided_slice %604 {offsets = [0, 0], sizes = [8, 32], strides = [1, 1]} : vector<8x128xf32> to vector<8x32xf32>
    %cst_171 = arith.constant 5.000000e-01 : f32
    %606 = vector.broadcast %cst_171 : f32 to vector<8x32xf32>
    %607 = arith.mulf %606, %605 : vector<8x32xf32>
    %cst_172 = arith.constant 5.000000e-01 : f32
    %608 = vector.broadcast %cst_172 : f32 to vector<8x32xf32>
    %609 = arith.addf %608, %607 : vector<8x32xf32>
    %610 = vector.extract_strided_slice %604 {offsets = [0, 32], sizes = [8, 32], strides = [1, 1]} : vector<8x128xf32> to vector<8x32xf32>
    %cst_173 = arith.constant 5.000000e-01 : f32
    %611 = vector.broadcast %cst_173 : f32 to vector<8x32xf32>
    %612 = arith.mulf %611, %610 : vector<8x32xf32>
    %cst_174 = arith.constant 5.000000e-01 : f32
    %613 = vector.broadcast %cst_174 : f32 to vector<8x32xf32>
    %614 = arith.addf %613, %612 : vector<8x32xf32>
    %615 = vector.extract_strided_slice %604 {offsets = [0, 64], sizes = [8, 32], strides = [1, 1]} : vector<8x128xf32> to vector<8x32xf32>
    %616 = vector.extract_strided_slice %604 {offsets = [0, 96], sizes = [8, 32], strides = [1, 1]} : vector<8x128xf32> to vector<8x32xf32>
    %cst_175 = arith.constant 5.000000e-01 : f32
    %617 = vector.broadcast %cst_175 : f32 to vector<8x32xf32>
    %618 = arith.mulf %617, %616 : vector<8x32xf32>
    %cst_176 = arith.constant 5.000000e-01 : f32
    %619 = vector.broadcast %cst_176 : f32 to vector<8x32xf32>
    %620 = arith.addf %619, %618 : vector<8x32xf32>
    %621 = arith.mulf %614, %543 : vector<8x32xf32>
    %622 = arith.mulf %609, %615 : vector<8x32xf32>
    %623 = arith.addf %621, %622 : vector<8x32xf32>
    %624 = math.tanh %623 : vector<8x32xf32>
    %625 = arith.mulf %620, %624 : vector<8x32xf32>
    %626 = tpu.concatenate %545, %571 in 1 : vector<8x32xf32>, vector<8x32xf32> -> vector<8x64xf32>
    %cst_177 = arith.constant dense<0.000000e+00> : vector<8x128xf32>
    %627 = tpu.matmul %626, %3, %cst_177 {dimension_numbers = #tpu.dot_dimension_numbers<[1], [0], [0], [1], [0, 0, 1, 1], [], []>} : vector<8x64xf32>, vector<64x128xf32>, vector<8x128xf32> -> vector<8x128xf32>
    %628 = vector.broadcast %5 : vector<1x128xf32> to vector<8x128xf32>
    %629 = arith.addf %627, %628 : vector<8x128xf32>
    %630 = math.tanh %629 : vector<8x128xf32>
    %631 = vector.extract_strided_slice %630 {offsets = [0, 0], sizes = [8, 32], strides = [1, 1]} : vector<8x128xf32> to vector<8x32xf32>
    %cst_178 = arith.constant 5.000000e-01 : f32
    %632 = vector.broadcast %cst_178 : f32 to vector<8x32xf32>
    %633 = arith.mulf %632, %631 : vector<8x32xf32>
    %cst_179 = arith.constant 5.000000e-01 : f32
    %634 = vector.broadcast %cst_179 : f32 to vector<8x32xf32>
    %635 = arith.addf %634, %633 : vector<8x32xf32>
    %636 = vector.extract_strided_slice %630 {offsets = [0, 32], sizes = [8, 32], strides = [1, 1]} : vector<8x128xf32> to vector<8x32xf32>
    %cst_180 = arith.constant 5.000000e-01 : f32
    %637 = vector.broadcast %cst_180 : f32 to vector<8x32xf32>
    %638 = arith.mulf %637, %636 : vector<8x32xf32>
    %cst_181 = arith.constant 5.000000e-01 : f32
    %639 = vector.broadcast %cst_181 : f32 to vector<8x32xf32>
    %640 = arith.addf %639, %638 : vector<8x32xf32>
    %641 = vector.extract_strided_slice %630 {offsets = [0, 64], sizes = [8, 32], strides = [1, 1]} : vector<8x128xf32> to vector<8x32xf32>
    %642 = vector.extract_strided_slice %630 {offsets = [0, 96], sizes = [8, 32], strides = [1, 1]} : vector<8x128xf32> to vector<8x32xf32>
    %cst_182 = arith.constant 5.000000e-01 : f32
    %643 = vector.broadcast %cst_182 : f32 to vector<8x32xf32>
    %644 = arith.mulf %643, %642 : vector<8x32xf32>
    %cst_183 = arith.constant 5.000000e-01 : f32
    %645 = vector.broadcast %cst_183 : f32 to vector<8x32xf32>
    %646 = arith.addf %645, %644 : vector<8x32xf32>
    %647 = arith.mulf %640, %569 : vector<8x32xf32>
    %648 = arith.mulf %635, %641 : vector<8x32xf32>
    %649 = arith.addf %647, %648 : vector<8x32xf32>
    %650 = math.tanh %649 : vector<8x32xf32>
    %651 = arith.mulf %646, %650 : vector<8x32xf32>
    %652 = tpu.concatenate %571, %597 in 1 : vector<8x32xf32>, vector<8x32xf32> -> vector<8x64xf32>
    %cst_184 = arith.constant dense<0.000000e+00> : vector<8x128xf32>
    %653 = tpu.matmul %652, %4, %cst_184 {dimension_numbers = #tpu.dot_dimension_numbers<[1], [0], [0], [1], [0, 0, 1, 1], [], []>} : vector<8x64xf32>, vector<64x128xf32>, vector<8x128xf32> -> vector<8x128xf32>
    %654 = vector.broadcast %6 : vector<1x128xf32> to vector<8x128xf32>
    %655 = arith.addf %653, %654 : vector<8x128xf32>
    %656 = math.tanh %655 : vector<8x128xf32>
    %657 = vector.extract_strided_slice %656 {offsets = [0, 0], sizes = [8, 32], strides = [1, 1]} : vector<8x128xf32> to vector<8x32xf32>
    %cst_185 = arith.constant 5.000000e-01 : f32
    %658 = vector.broadcast %cst_185 : f32 to vector<8x32xf32>
    %659 = arith.mulf %658, %657 : vector<8x32xf32>
    %cst_186 = arith.constant 5.000000e-01 : f32
    %660 = vector.broadcast %cst_186 : f32 to vector<8x32xf32>
    %661 = arith.addf %660, %659 : vector<8x32xf32>
    %662 = vector.extract_strided_slice %656 {offsets = [0, 32], sizes = [8, 32], strides = [1, 1]} : vector<8x128xf32> to vector<8x32xf32>
    %cst_187 = arith.constant 5.000000e-01 : f32
    %663 = vector.broadcast %cst_187 : f32 to vector<8x32xf32>
    %664 = arith.mulf %663, %662 : vector<8x32xf32>
    %cst_188 = arith.constant 5.000000e-01 : f32
    %665 = vector.broadcast %cst_188 : f32 to vector<8x32xf32>
    %666 = arith.addf %665, %664 : vector<8x32xf32>
    %667 = vector.extract_strided_slice %656 {offsets = [0, 64], sizes = [8, 32], strides = [1, 1]} : vector<8x128xf32> to vector<8x32xf32>
    %668 = vector.extract_strided_slice %656 {offsets = [0, 96], sizes = [8, 32], strides = [1, 1]} : vector<8x128xf32> to vector<8x32xf32>
    %cst_189 = arith.constant 5.000000e-01 : f32
    %669 = vector.broadcast %cst_189 : f32 to vector<8x32xf32>
    %670 = arith.mulf %669, %668 : vector<8x32xf32>
    %cst_190 = arith.constant 5.000000e-01 : f32
    %671 = vector.broadcast %cst_190 : f32 to vector<8x32xf32>
    %672 = arith.addf %671, %670 : vector<8x32xf32>
    %673 = arith.mulf %666, %595 : vector<8x32xf32>
    %674 = arith.mulf %661, %667 : vector<8x32xf32>
    %675 = arith.addf %673, %674 : vector<8x32xf32>
    %676 = math.tanh %675 : vector<8x32xf32>
    %677 = arith.mulf %672, %676 : vector<8x32xf32>
    %cst_191 = arith.constant dense<0.000000e+00> : vector<8x128xf32>
    %678 = tpu.matmul %677, %7, %cst_191 {dimension_numbers = #tpu.dot_dimension_numbers<[1], [0], [0], [1], [0, 0, 1, 1], [], []>} : vector<8x32xf32>, vector<32x128xf32>, vector<8x128xf32> -> vector<8x128xf32>
    %679 = vector.broadcast %8 : vector<1x128xf32> to vector<8x128xf32>
    %680 = arith.addf %678, %679 : vector<8x128xf32>
    %c40_192 = arith.constant 40 : index
    %c0_193 = arith.constant 0 : index
    %681 = vector.load %arg2[%c40_192, %c0_193] : memref<64x128xf32, #tpu.memory_space<vmem>>, vector<8x128xf32>
    tpu.vector_store %arg2[%c40_192, %c0_193], %680 {strides = array<i32>} : memref<64x128xf32, #tpu.memory_space<vmem>>, vector<8x128xf32>,
    %682 = tpu.concatenate %625, %651 in 1 : vector<8x32xf32>, vector<8x32xf32> -> vector<8x64xf32>
    %cst_194 = arith.constant dense<0.000000e+00> : vector<8x128xf32>
    %683 = tpu.matmul %682, %3, %cst_194 {dimension_numbers = #tpu.dot_dimension_numbers<[1], [0], [0], [1], [0, 0, 1, 1], [], []>} : vector<8x64xf32>, vector<64x128xf32>, vector<8x128xf32> -> vector<8x128xf32>
    %684 = vector.broadcast %5 : vector<1x128xf32> to vector<8x128xf32>
    %685 = arith.addf %683, %684 : vector<8x128xf32>
    %686 = math.tanh %685 : vector<8x128xf32>
    %687 = vector.extract_strided_slice %686 {offsets = [0, 0], sizes = [8, 32], strides = [1, 1]} : vector<8x128xf32> to vector<8x32xf32>
    %cst_195 = arith.constant 5.000000e-01 : f32
    %688 = vector.broadcast %cst_195 : f32 to vector<8x32xf32>
    %689 = arith.mulf %688, %687 : vector<8x32xf32>
    %cst_196 = arith.constant 5.000000e-01 : f32
    %690 = vector.broadcast %cst_196 : f32 to vector<8x32xf32>
    %691 = arith.addf %690, %689 : vector<8x32xf32>
    %692 = vector.extract_strided_slice %686 {offsets = [0, 32], sizes = [8, 32], strides = [1, 1]} : vector<8x128xf32> to vector<8x32xf32>
    %cst_197 = arith.constant 5.000000e-01 : f32
    %693 = vector.broadcast %cst_197 : f32 to vector<8x32xf32>
    %694 = arith.mulf %693, %692 : vector<8x32xf32>
    %cst_198 = arith.constant 5.000000e-01 : f32
    %695 = vector.broadcast %cst_198 : f32 to vector<8x32xf32>
    %696 = arith.addf %695, %694 : vector<8x32xf32>
    %697 = vector.extract_strided_slice %686 {offsets = [0, 64], sizes = [8, 32], strides = [1, 1]} : vector<8x128xf32> to vector<8x32xf32>
    %698 = vector.extract_strided_slice %686 {offsets = [0, 96], sizes = [8, 32], strides = [1, 1]} : vector<8x128xf32> to vector<8x32xf32>
    %cst_199 = arith.constant 5.000000e-01 : f32
    %699 = vector.broadcast %cst_199 : f32 to vector<8x32xf32>
    %700 = arith.mulf %699, %698 : vector<8x32xf32>
    %cst_200 = arith.constant 5.000000e-01 : f32
    %701 = vector.broadcast %cst_200 : f32 to vector<8x32xf32>
    %702 = arith.addf %701, %700 : vector<8x32xf32>
    %703 = arith.mulf %696, %649 : vector<8x32xf32>
    %704 = arith.mulf %691, %697 : vector<8x32xf32>
    %705 = arith.addf %703, %704 : vector<8x32xf32>
    %706 = math.tanh %705 : vector<8x32xf32>
    %707 = arith.mulf %702, %706 : vector<8x32xf32>
    %708 = tpu.concatenate %651, %677 in 1 : vector<8x32xf32>, vector<8x32xf32> -> vector<8x64xf32>
    %cst_201 = arith.constant dense<0.000000e+00> : vector<8x128xf32>
    %709 = tpu.matmul %708, %4, %cst_201 {dimension_numbers = #tpu.dot_dimension_numbers<[1], [0], [0], [1], [0, 0, 1, 1], [], []>} : vector<8x64xf32>, vector<64x128xf32>, vector<8x128xf32> -> vector<8x128xf32>
    %710 = vector.broadcast %6 : vector<1x128xf32> to vector<8x128xf32>
    %711 = arith.addf %709, %710 : vector<8x128xf32>
    %712 = math.tanh %711 : vector<8x128xf32>
    %713 = vector.extract_strided_slice %712 {offsets = [0, 0], sizes = [8, 32], strides = [1, 1]} : vector<8x128xf32> to vector<8x32xf32>
    %cst_202 = arith.constant 5.000000e-01 : f32
    %714 = vector.broadcast %cst_202 : f32 to vector<8x32xf32>
    %715 = arith.mulf %714, %713 : vector<8x32xf32>
    %cst_203 = arith.constant 5.000000e-01 : f32
    %716 = vector.broadcast %cst_203 : f32 to vector<8x32xf32>
    %717 = arith.addf %716, %715 : vector<8x32xf32>
    %718 = vector.extract_strided_slice %712 {offsets = [0, 32], sizes = [8, 32], strides = [1, 1]} : vector<8x128xf32> to vector<8x32xf32>
    %cst_204 = arith.constant 5.000000e-01 : f32
    %719 = vector.broadcast %cst_204 : f32 to vector<8x32xf32>
    %720 = arith.mulf %719, %718 : vector<8x32xf32>
    %cst_205 = arith.constant 5.000000e-01 : f32
    %721 = vector.broadcast %cst_205 : f32 to vector<8x32xf32>
    %722 = arith.addf %721, %720 : vector<8x32xf32>
    %723 = vector.extract_strided_slice %712 {offsets = [0, 64], sizes = [8, 32], strides = [1, 1]} : vector<8x128xf32> to vector<8x32xf32>
    %724 = vector.extract_strided_slice %712 {offsets = [0, 96], sizes = [8, 32], strides = [1, 1]} : vector<8x128xf32> to vector<8x32xf32>
    %cst_206 = arith.constant 5.000000e-01 : f32
    %725 = vector.broadcast %cst_206 : f32 to vector<8x32xf32>
    %726 = arith.mulf %725, %724 : vector<8x32xf32>
    %cst_207 = arith.constant 5.000000e-01 : f32
    %727 = vector.broadcast %cst_207 : f32 to vector<8x32xf32>
    %728 = arith.addf %727, %726 : vector<8x32xf32>
    %729 = arith.mulf %722, %675 : vector<8x32xf32>
    %730 = arith.mulf %717, %723 : vector<8x32xf32>
    %731 = arith.addf %729, %730 : vector<8x32xf32>
    %732 = math.tanh %731 : vector<8x32xf32>
    %733 = arith.mulf %728, %732 : vector<8x32xf32>
    %cst_208 = arith.constant dense<0.000000e+00> : vector<8x128xf32>
    %734 = tpu.matmul %733, %7, %cst_208 {dimension_numbers = #tpu.dot_dimension_numbers<[1], [0], [0], [1], [0, 0, 1, 1], [], []>} : vector<8x32xf32>, vector<32x128xf32>, vector<8x128xf32> -> vector<8x128xf32>
    %735 = vector.broadcast %8 : vector<1x128xf32> to vector<8x128xf32>
    %736 = arith.addf %734, %735 : vector<8x128xf32>
    %c48 = arith.constant 48 : index
    %c0_209 = arith.constant 0 : index
    %737 = vector.load %arg2[%c48, %c0_209] : memref<64x128xf32, #tpu.memory_space<vmem>>, vector<8x128xf32>
    tpu.vector_store %arg2[%c48, %c0_209], %736 {strides = array<i32>} : memref<64x128xf32, #tpu.memory_space<vmem>>, vector<8x128xf32>,
    %738 = tpu.concatenate %707, %733 in 1 : vector<8x32xf32>, vector<8x32xf32> -> vector<8x64xf32>
    %cst_210 = arith.constant dense<0.000000e+00> : vector<8x128xf32>
    %739 = tpu.matmul %738, %4, %cst_210 {dimension_numbers = #tpu.dot_dimension_numbers<[1], [0], [0], [1], [0, 0, 1, 1], [], []>} : vector<8x64xf32>, vector<64x128xf32>, vector<8x128xf32> -> vector<8x128xf32>
    %740 = vector.broadcast %6 : vector<1x128xf32> to vector<8x128xf32>
    %741 = arith.addf %739, %740 : vector<8x128xf32>
    %742 = math.tanh %741 : vector<8x128xf32>
    %743 = vector.extract_strided_slice %742 {offsets = [0, 0], sizes = [8, 32], strides = [1, 1]} : vector<8x128xf32> to vector<8x32xf32>
    %cst_211 = arith.constant 5.000000e-01 : f32
    %744 = vector.broadcast %cst_211 : f32 to vector<8x32xf32>
    %745 = arith.mulf %744, %743 : vector<8x32xf32>
    %cst_212 = arith.constant 5.000000e-01 : f32
    %746 = vector.broadcast %cst_212 : f32 to vector<8x32xf32>
    %747 = arith.addf %746, %745 : vector<8x32xf32>
    %748 = vector.extract_strided_slice %742 {offsets = [0, 32], sizes = [8, 32], strides = [1, 1]} : vector<8x128xf32> to vector<8x32xf32>
    %cst_213 = arith.constant 5.000000e-01 : f32
    %749 = vector.broadcast %cst_213 : f32 to vector<8x32xf32>
    %750 = arith.mulf %749, %748 : vector<8x32xf32>
    %cst_214 = arith.constant 5.000000e-01 : f32
    %751 = vector.broadcast %cst_214 : f32 to vector<8x32xf32>
    %752 = arith.addf %751, %750 : vector<8x32xf32>
    %753 = vector.extract_strided_slice %742 {offsets = [0, 64], sizes = [8, 32], strides = [1, 1]} : vector<8x128xf32> to vector<8x32xf32>
    %754 = vector.extract_strided_slice %742 {offsets = [0, 96], sizes = [8, 32], strides = [1, 1]} : vector<8x128xf32> to vector<8x32xf32>
    %cst_215 = arith.constant 5.000000e-01 : f32
    %755 = vector.broadcast %cst_215 : f32 to vector<8x32xf32>
    %756 = arith.mulf %755, %754 : vector<8x32xf32>
    %cst_216 = arith.constant 5.000000e-01 : f32
    %757 = vector.broadcast %cst_216 : f32 to vector<8x32xf32>
    %758 = arith.addf %757, %756 : vector<8x32xf32>
    %759 = arith.mulf %752, %731 : vector<8x32xf32>
    %760 = arith.mulf %747, %753 : vector<8x32xf32>
    %761 = arith.addf %759, %760 : vector<8x32xf32>
    %762 = math.tanh %761 : vector<8x32xf32>
    %763 = arith.mulf %758, %762 : vector<8x32xf32>
    %cst_217 = arith.constant dense<0.000000e+00> : vector<8x128xf32>
    %764 = tpu.matmul %763, %7, %cst_217 {dimension_numbers = #tpu.dot_dimension_numbers<[1], [0], [0], [1], [0, 0, 1, 1], [], []>} : vector<8x32xf32>, vector<32x128xf32>, vector<8x128xf32> -> vector<8x128xf32>
    %765 = vector.broadcast %8 : vector<1x128xf32> to vector<8x128xf32>
    %766 = arith.addf %764, %765 : vector<8x128xf32>
    %c56 = arith.constant 56 : index
    %c0_218 = arith.constant 0 : index
    %767 = vector.load %arg2[%c56, %c0_218] : memref<64x128xf32, #tpu.memory_space<vmem>>, vector<8x128xf32>
    tpu.vector_store %arg2[%c56, %c0_218], %766 {strides = array<i32>} : memref<64x128xf32, #tpu.memory_space<vmem>>, vector<8x128xf32>,
    %768 = vector.shape_cast %625 : vector<8x32xf32> to vector<1x8x32xf32>
    %769 = vector.shape_cast %707 : vector<8x32xf32> to vector<1x8x32xf32>
    %770 = vector.shape_cast %763 : vector<8x32xf32> to vector<1x8x32xf32>
    %771 = tpu.concatenate %768, %769, %770 in 0 : vector<1x8x32xf32>, vector<1x8x32xf32>, vector<1x8x32xf32> -> vector<3x8x32xf32>
    %c0_219 = arith.constant 0 : index
    %c0_220 = arith.constant 0 : index
    %c0_221 = arith.constant 0 : index
    %772 = vector.load %arg3[%c0_219, %c0_220, %c0_221] : memref<3x8x32xf32, #tpu.memory_space<vmem>>, vector<3x8x32xf32>
    tpu.vector_store %arg3[%c0_219, %c0_220, %c0_221], %771 {strides = array<i32>} : memref<3x8x32xf32, #tpu.memory_space<vmem>>, vector<3x8x32xf32>,
    %773 = vector.shape_cast %623 : vector<8x32xf32> to vector<1x8x32xf32>
    %774 = vector.shape_cast %705 : vector<8x32xf32> to vector<1x8x32xf32>
    %775 = vector.shape_cast %761 : vector<8x32xf32> to vector<1x8x32xf32>
    %776 = tpu.concatenate %773, %774, %775 in 0 : vector<1x8x32xf32>, vector<1x8x32xf32>, vector<1x8x32xf32> -> vector<3x8x32xf32>
    %c0_222 = arith.constant 0 : index
    %c0_223 = arith.constant 0 : index
    %c0_224 = arith.constant 0 : index
    %777 = vector.load %arg4[%c0_222, %c0_223, %c0_224] : memref<3x8x32xf32, #tpu.memory_space<vmem>>, vector<3x8x32xf32>
    tpu.vector_store %arg4[%c0_222, %c0_223, %c0_224], %776 {strides = array<i32>} : memref<3x8x32xf32, #tpu.memory_space<vmem>>, vector<3x8x32xf32>,
    return
  }
}

</mosaic_0001>

<bundles_post_ra>
// kernel: my_lstm_forward.1
= control target key start
LH: loop header
LB: loop body
LE: loop exit
PB: predicated region body
PF: predicated region fallthrough
CT: control target
= control target key end

     0   :  { %10 = vsyncpa [#allocation4], 0  ;;  %s5038_s0 = inlined_call_operand.vmem [shape: s32[16], index: 0, kind: input, shape index: {}]   ;;  %s5039_s1 = inlined_call_operand.hbm [shape: f32[216,128], index: 1, kind: input, shape index: {}]   ;;  %s5040_s2 = inlined_call_operand.vmem [shape: f32[64,128], index: 2, kind: output, shape index: {0}]   ;;  %s5041_s3 = inlined_call_operand.vmem [shape: f32[3,8,32], index: 3, kind: output, shape index: {1}]   ;;  %s5042_s4 = inlined_call_operand.vmem [shape: f32[3,8,32], index: 4, kind: output, shape index: {2}]  }
   0x1   :  { %s18_s17 = sshll.u32 %s5038_s0, 4  ;;  %s19_s17 = int_to_ptr.vmem [resolvable:$true] %s18_s17 }
   0x2   :  { %11 = vsyncpa [#allocation3], 0  ;;  %s4301_s18 = scalar_lea.vmem %s19_s17, 16  ;;  %p4306_p1 = scmp.lt.s32.totalorder %s19_s17, %s19_s17 }
   0x3   :  { %p4302_p0 = scmp.ne.s32.totalorder %s19_s17, %s4301_s18  ;;  %p4307_p2 = scmp.lt.s32.totalorder %s4301_s18, %s4301_s18 }
   0x5   :  { %p4308_p3 = por %p4307_p2, %p4306_p1 }
   0x7   :  { %p4309_p4 = pnand %p4308_p3, %p4302_p0 }
   0x9   :  { %4312 = shalt.err (!%p4309_p4)
}
   0xa   :  { %s4339_s19 = smov [#allocation2]   ;;  %s4340_s20 = smov [#allocation5]  }
   0xb   :  { %21 = dma.vmem_to_smem %s19_s17, 16, %s4339_s19, [#allocation4]  }
   0xc   :  { %s27_s21 = sshll.u32 %s4340_s20, 4  ;;  %s4313_s24 = scalar_lea.hbm %s5039_s1, 3456  ;;  %s28_s21 = int_to_ptr.vmem [resolvable:$true] %s27_s21 }
   0xd   :  { %p4314_p5 = scmp.ne.s32.totalorder %s5039_s1, %s4313_s24  ;;  %p4317_p6 = scmp.lt.u32.totalorder %s4313_s24, %s5039_s1 }
   0xf   :  { %p4319_p7 = pnand %p4317_p6, %p4314_p5 }
  0x11   :  { %4322 = shalt.err (!%p4319_p7)
}
  0x12   :  { %s4323_s28 = scalar_lea.vmem %s28_s21, 3456  ;;  %p4328_p9 = scmp.lt.s32.totalorder %s28_s21, %s28_s21 }
  0x13   :  { %p4324_p8 = scmp.ne.s32.totalorder %s28_s21, %s4323_s28  ;;  %p4329_p10 = scmp.lt.s32.totalorder %s4323_s28, %s4323_s28 }
  0x15   :  { %p4330_p11 = por %p4329_p10, %p4328_p9 }
  0x17   :  { %p4331_p12 = pnand %p4330_p11, %p4324_p8 }
  0x19   :  { %4334 = shalt.err (!%p4331_p12)
}
  0x1a   :  { %s4341_s29 = smov 128   ;;  %s4342_s30 = smov 8  }
  0x1b   :  { %33 = dma.hbm_to_vmem [thread:$0]  %s5039_s1, 3456, %s28_s21, [#allocation3], %s4341_s29, %s4341_s29, %s4342_s30  }
  0x1c   :  { %4335 = dma.done.wait [#allocation4], 16  }
  0x1d   :  { %4336 = vsyncadd [#allocation4], 4294967280 }
  0x1e   :  { %4337 = dma.done.wait [#allocation3], 3456  }
  0x1f   :  { %4338 = vsyncadd [#allocation3], 4294963840 }
  0x20   :  { %40 = sfence }
  0x21   :  { %v43_v0 = vld [vmem:[#allocation5 + $0x8] sm:$0xff]  ;;  %v44_v1 = vld [vmem:[#allocation5 + $0x10] sm:$0xff]  ;;  %v45_v2 = vld [vmem:[#allocation5 + $0x18] sm:$0xff]  ;;  %v4343_v3 = vmov 0.0|0.0   ;;  %vm4344_vm0 = vmmov 0   ;;  %v4345_v6 = vmov 0.0   ;;  %v70_v8 = vlaneseq }
  0x22   :  { %3902 = vmatprep.subr.bf16.mxu0 %v4343_v3  ;;  %v4390_v4 = vpack.c.bf16 %v44_v1, %v43_v0  ;;  %v46_v5 = vld [vmem:[#allocation5 + $0x20] sm:$0xff]  ;;  %3430 = vmatprep.mubr.msk.f32.mxu0 %vm4344_vm0, %v4345_v6  ;;  %s3147_s1 = sld [smem:[#allocation2 + $0x8]]  ;;  %s4346_s8 = smov 64   ;;  %v47_v27 = vld [vmem:[#allocation5 + $0x28] sm:$0xff]  ;;  %v48_v28 = vld [vmem:[#allocation5 + $0x30] sm:$0xff]  ;;  %vm137_vm3 = vcmask 261120  }
  0x23   :  { %3908 = vmatprep.subr.bf16.mxu1 %v4343_v3  ;;  %3441 = vmatprep.mubr.msk.f32.mxu1 %vm4344_vm0, %v4345_v6  ;;  %v4398_v7 = vpack.c.bf16 %v46_v5, %v45_v2  ;;  %s75_s7 = sld [smem:[#allocation2]]  ;;  %v4410_v9 = vshrl.u32 %v70_v8, 7  ;;  %v4415_v13 = vld [vmem:[#allocation5] ss:$0 sm:$0xff]  ;;  %v4417_v14 = vld [vmem:[#allocation5 + $0x1] ss:$0 sm:$0xff]  ;;  %v4426_v30 = vpack.c.bf16 %v48_v28, %v47_v27 }
  0x24   :  { %3904 = vmatpush3.bf16.msra.mxu0 %v4390_v4  ;;  %3910 = vmatpush3.bf16.msra.mxu1 %v4390_v4  ;;  %s4347_s9 = smov 32   ;;  %v49_v29 = vld [vmem:[#allocation5 + $0x38] sm:$0xff]  ;;  %v50_v31 = vld [vmem:[#allocation5 + $0x40] sm:$0xff]  ;;  %v51_v33 = vld [vmem:[#allocation5 + $0x48] sm:$0xff]  ;;  %vm334_vm4 = vcmask 523264   ;;  %s3150_s10 = sld [smem:[#allocation2 + $0x9]] }
  0x25   :  { %3905 = vmatprep.subr.bf16.mxu0 %v4343_v3  ;;  %3911 = vmatprep.subr.bf16.mxu1 %v4343_v3  ;;  %vm74_vm1 = vcmp.eq.s32.totalorder %v4410_v9, 0  ;;  %v4429_v32 = vpack.c.bf16 %v50_v31, %v49_v29  ;;  %v52_v34 = vld [vmem:[#allocation5 + $0x50] sm:$0xff]  ;;  %v53_v36 = vld [vmem:[#allocation5 + $0x58] sm:$0xff]  ;;  %v54_v37 = vld [vmem:[#allocation5 + $0x60] sm:$0xff]  ;;  %s3151_s11 = sld [smem:[#allocation2 + $0x1]]  ;;  %s3152_s12 = sld [smem:[#allocation2 + $0xa]] }
  0x26   :  { %v4433_v35 = vpack.c.bf16 %v52_v34, %v51_v33  ;;  %v4438_v39 = vpack.c.bf16 %v54_v37, %v53_v36  ;;  %v4459_v48 = vld [vmem:[#allocation5 + $0xa8] ss:$0 sm:$0xff]  ;;  %s3153_s13 = sld [smem:[#allocation2 + $0x2]]  ;;  %s3154_s14 = sld [smem:[#allocation2 + $0xb]] }
  0x27   :  { %s3155_s15 = sld [smem:[#allocation2 + $0x3]]  ;;  %s3156_s18 = sld [smem:[#allocation2 + $0xc]] }
  0x28   :  { %3907 = vmatpush3.bf16.msra.mxu0 %v4398_v7  ;;  %3913 = vmatpush3.bf16.msra.mxu1 %v4398_v7  ;;  %v73_v10 = vstv %s3147_s1  ;;  %s3157_s19 = sld [smem:[#allocation2 + $0x4]]  ;;  %s3158_s22 = sld [smem:[#allocation2 + $0xd]] }
  0x29   :  { %3914 = vmatprep.subr.bf16.mxu0 %v4343_v3  ;;  %3926 = vmatprep.subr.bf16.mxu1 %v4343_v3  ;;  %v76_v11 = vstv %s75_s7  ;;  %s3159_s23 = sld [smem:[#allocation2 + $0x5]]  ;;  %s3160_s0 = sld [smem:[#allocation2 + $0xe]] }
  0x2a   :  { %v77_v12 = vsel %vm74_vm1, %v76_v11, %v73_v10  ;;  %v89_v44 = vstv %s3150_s10  ;;  %s3161_s26 = sld [smem:[#allocation2 + $0x6]]  ;;  %s3162_s29 = sld [smem:[#allocation2 + $0xf]] }
  0x2b   :  { %3431 = vmatmul.mubr.f32.vlgmr.msra.gmra.mrb[0].mxu0 %v4345_v6  ;;  %vm78_vm2 = vcmp.eq.s32.totalorder %v77_v12, 0  ;;  %v91_v45 = vstv %s3151_s11  ;;  %v55_v12 = vld [vmem:[#allocation5 + $0x68] sm:$0xff]  ;;  %s3163_s30 = sld [smem:[#allocation2 + $0x7]] }
  0x2c   :  { %3460 = vmatprep.mubr.msk.f32.mxu0 %vm4344_vm0, %v4345_v6  ;;  %v87_v15 = vsel %vm78_vm2, %v4415_v13, %v4417_v14  ;;  %3916 = vmatpush3.bf16.msra.mxu0 %v4426_v30  ;;  %v92_v46 = vsel %vm74_vm1, %v91_v45, %v89_v44 }
  0x2d   :  { %3917 = vmatprep.subr.bf16.mxu0 %v4343_v3  ;;  %vm93_vm5 = vcmp.eq.s32.totalorder %v92_v46, 0 }
  0x2e   :  { %v94_v47 = vsel %vm93_vm5, %v4415_v13, %v4417_v14 }
  0x30   :  { %3919 = vmatpush3.bf16.msra.mxu0 %v4429_v32 }
  0x31   :  { %3920 = vmatprep.subr.bf16.mxu0 %v4343_v3 }
  0x34   :  { %3922 = vmatpush3.bf16.msra.mxu0 %v4433_v35 }
  0x35   :  { %3923 = vmatprep.subr.bf16.mxu0 %v4343_v3 }
  0x38   :  { %3925 = vmatpush3.bf16.msra.mxu0 %v4438_v39 }
  0x39   :  { %3944 = vmatprep.subr.bf16.mxu0 %v4343_v3 }
  0xfe   :  { %v207_v16 = vpop.f32.mrb[0].mxu0 }
  0xff   :  { %v211_v17 = vadd.f32 %v207_v16, %v87_v15  ;;  %v3432_v18 = vpop.f32.mrb[1].mxu0  ;;  %v56_v15 = vld [vmem:[#allocation5 + $0x70] sm:$0xff]  ;;  %v57_v16 = vld [vmem:[#allocation5 + $0x78] sm:$0xff] }
 0x100   :  { %v58_v18 = vld [vmem:[#allocation5 + $0x80] sm:$0xff] }
 0x101   :  { %4200 = vtanh.f32 %v211_v17  ;;  %v4473_v17 = vpack.c.bf16 %v56_v15, %v55_v12 }
 0x10b   :  { %v4201_v19 = vpop.eup %4200 }
 0x10c   :  { %217 = vrot.lane.b32.xlu0 %v4201_v19, %s4346_s8  ;;  %v213_v20 = vmul.f32 0.5, %v4201_v19  ;;  %v4476_v19 = vpack.c.bf16 %v58_v18, %v57_v16 }
 0x10e   :  { %v214_v21 = vadd.f32 0.5, %v213_v20  ;;  %v59_v20 = vld [vmem:[#allocation5 + $0x88] sm:$0xff] }
 0x110   :  { %v215_v24 = vmul.f32 0.0, %v214_v21 }
 0x17e   :  { %v218_v22 = vpop.permute.xlu0 %217 }
 0x17f   :  { %v220_v23 = vmul.f32 %v218_v22, %v214_v21 }
 0x181   :  { %222 = vrot.lane.b32.xlu0 %v220_v23, %s4347_s9 }
 0x1f3   :  { %v223_v25 = vpop.permute.xlu0 %222 }
 0x1f4   :  { %v4423_v26 = vadd.f32 %v223_v25, %v215_v24  ;;  %v61_v25 = vld [vmem:[#allocation5 + $0x98] sm:$0xff] }
 0x1f6   :  { %4202 = vtanh.f32 %v4423_v26 }
 0x200   :  { %v4203_v38 = vpop.eup %4202 }
 0x201   :  { %228 = vrot.lane.b32.xlu1 %v4203_v38, %s4346_s8 }
 0x273   :  { %v229_v40 = vpop.permute.xlu1 %228 }
 0x274   :  { %v231_v41 = vmul.f32 %v229_v40, %v214_v21  ;;  %v60_v21 = vld [vmem:[#allocation5 + $0x90] sm:$0xff] }
 0x275   :  { %v4481_v24 = vpack.c.bf16 %v60_v21, %v59_v20 }
 0x276   :  { %233 = vrot.lane.b32.xlu1 %v231_v41, %s4347_s9  ;;  %v96_v41 = vstv %s3152_s12 }
 0x2e8   :  { %v234_v42 = vpop.permute.xlu1 %233 }
 0x2e9   :  { %v329_v43 = vsel %vm137_vm3, %v234_v42, 0.0  ;;  %3442 = vmatmul.mubr.msk.f32.vlgmr.msra.gmra.mrb[0].mxu1 %vm137_vm3, %v234_v42  ;;  %v98_v42 = vstv %s3153_s13 }
 0x2ea   :  { %3461 = vmatmul.mubr.msk.f32.vlgmr.msra.gmra.mrb[2].mxu0 %vm334_vm4, %v329_v43  ;;  %3928 = vmatpush3.bf16.msra.mxu1 %v4390_v4  ;;  %v99_v43 = vsel %vm74_vm1, %v98_v42, %v96_v41 }
 0x2eb   :  { %3929 = vmatprep.subr.bf16.mxu1 %v4343_v3  ;;  %3471 = vmatprep.mubr.msk.f32.mxu1 %vm4344_vm0, %v4345_v6  ;;  %vm100_vm6 = vcmp.eq.s32.totalorder %v99_v43, 0 }
 0x2ec   :  { %3509 = vmatprep.mubr.msk.f32.mxu0 %vm4344_vm0, %v4345_v6  ;;  %3946 = vmatpush3.bf16.msra.mxu0 %v4473_v17  ;;  %v101_v44 = vsel %vm100_vm6, %v4415_v13, %v4417_v14 }
 0x2ed   :  { %3947 = vmatprep.subr.bf16.mxu0 %v4343_v3 }
 0x2ee   :  { %3931 = vmatpush3.bf16.msra.mxu1 %v4398_v7 }
 0x2ef   :  { %3932 = vmatprep.subr.bf16.mxu1 %v4343_v3 }
 0x2f0   :  { %3949 = vmatpush3.bf16.msra.mxu0 %v4476_v19 }
 0x2f1   :  { %3950 = vmatprep.subr.bf16.mxu0 %v4343_v3 }
 0x2f4   :  { %3952 = vmatpush3.bf16.msra.mxu0 %v4481_v24 }
 0x2f5   :  { %3953 = vmatprep.subr.bf16.mxu0 %v4343_v3 }
 0x3bc   :  { %v303_v49 = vpop.f32.mrb[0].mxu1 }
 0x3bd   :  { %v307_v50 = vadd.f32 %v303_v49, %v94_v47  ;;  %v3443_v51 = vpop.f32.mrb[1].mxu1  ;;  %v404_v52 = vpop.f32.mrb[2].mxu0  ;;  %v4521_v49 = vld [vmem:[#allocation5 + $0xa9] ss:$0 sm:$0xff] }
 0x3be   :  { %v405_v53 = vadd.f32 %v4459_v48, %v404_v52  ;;  %v3462_v54 = vpop.f32.mrb[3].mxu0 }
 0x3bf   :  { %4204 = vtanh.f32 %v307_v50 }
 0x3c0   :  { %4206 = vtanh.f32 %v405_v53 }
 0x3c9   :  { %v4205_v55 = vpop.eup %4204 }
 0x3ca   :  { %v4207_v56 = vpop.eup %4206  ;;  %313 = vrot.lane.b32.xlu0 %v4205_v55, %s4346_s8  ;;  %v309_v57 = vmul.f32 0.5, %v4205_v55 }
 0x3cb   :  { %413 = vrot.lane.b32.xlu1 %v4207_v56, %s4346_s8  ;;  %v409_v58 = vmul.f32 0.5, %v4207_v56 }
 0x3cc   :  { %v310_v59 = vadd.f32 0.5, %v309_v57 }
 0x3cd   :  { %v410_v61 = vadd.f32 0.5, %v409_v58 }
 0x3ce   :  { %v311_v1 = vmul.f32 %v310_v59, %v4423_v26  ;;  %v62_v26 = vld [vmem:[#allocation5 + $0xa0] sm:$0xff] }
 0x3cf   :  { %v411_v5 = vmul.f32 0.0, %v410_v61  ;;  %v4487_v27 = vpack.c.bf16 %v62_v26, %v61_v25 }
 0x3d1   :  { %3955 = vmatpush3.bf16.msra.mxu0 %v4487_v27 }
 0x3d2   :  { %3962 = vmatprep.subr.bf16.mxu0 %v4343_v3 }
 0x43c   :  { %v314_v60 = vpop.permute.xlu0 %313 }
 0x43d   :  { %v316_v62 = vmul.f32 %v314_v60, %v310_v59  ;;  %v414_v63 = vpop.permute.xlu1 %413 }
 0x43e   :  { %v416_v0 = vmul.f32 %v414_v63, %v410_v61 }
 0x43f   :  { %318 = vrot.lane.b32.xlu0 %v316_v62, %s4347_s9 }
 0x440   :  { %418 = vrot.lane.b32.xlu1 %v416_v0, %s4347_s9 }
 0x4b1   :  { %v319_v2 = vpop.permute.xlu0 %318 }
 0x4b2   :  { %v4467_v8 = vadd.f32 %v319_v2, %v311_v1  ;;  %v419_v10 = vpop.permute.xlu1 %418 }
 0x4b3   :  { %v4469_v11 = vadd.f32 %v419_v10, %v411_v5 }
 0x4b4   :  { %4208 = vtanh.f32 %v4467_v8 }
 0x4b5   :  { %4210 = vtanh.f32 %v4469_v11 }
 0x4be   :  { %v4209_v22 = vpop.eup %4208 }
 0x4bf   :  { %v4211_v23 = vpop.eup %4210  ;;  %324 = vrot.lane.b32.xlu0 %v4209_v22, %s4346_s8 }
 0x4c0   :  { %424 = vrot.lane.b32.xlu1 %v4211_v23, %s4346_s8 }
 0x531   :  { %v325_v28 = vpop.permute.xlu0 %324 }
 0x532   :  { %v327_v29 = vmul.f32 %v325_v28, %v310_v59  ;;  %v425_v31 = vpop.permute.xlu1 %424 }
 0x533   :  { %v427_v33 = vmul.f32 %v425_v31, %v410_v61  ;;  %v65_v31 = vld [vmem:[#allocation5 + $0xb0] sm:$0xff] }
 0x534   :  { %429 = vrot.lane.b32.xlu0 %v327_v29, %s4347_s9 }
 0x535   :  { %526 = vrot.lane.b32.xlu1 %v427_v33, %s4346_s8 }
 0x538   :  { %623 = vrot.lane.b32.xlu0 %v427_v33, %s4347_s9  ;;  %v66_v33 = vld [vmem:[#allocation5 + $0xb8] sm:$0xff] }
 0x5a6   :  { %v430_v34 = vpop.permute.xlu0 %429 }
 0x5a7   :  { %3472 = vmatmul.mubr.msk.f32.vlgmr.msra.gmra.mrb[2].mxu1 %vm137_vm3, %v430_v34  ;;  %v527_v38 = vpop.permute.xlu1 %526 }
 0x5a8   :  { %3934 = vmatpush3.bf16.msra.mxu1 %v4426_v30  ;;  %3490 = vmatprep.mubr.msk.f32.mxu1 %vm4344_vm0, %v4345_v6  ;;  %v529_v40 = vsel %vm137_vm3, %v430_v34, %v527_v38  ;;  %v4544_v34 = vpack.c.bf16 %v66_v33, %v65_v31 }
 0x5a9   :  { %3935 = vmatprep.subr.bf16.mxu1 %v4343_v3 }
 0x5aa   :  { %v624_v36 = vpop.permute.xlu0 %623 }
 0x5ab   :  { %v626_v37 = vsel %vm137_vm3, %v624_v36, 0.0 }
 0x5ac   :  { %3937 = vmatpush3.bf16.msra.mxu1 %v4429_v32  ;;  %3510 = vmatmul.mubr.msk.f32.vlgmr.msra.gmra.mrb[4].mxu0 %vm334_vm4, %v626_v37  ;;  %v68_v37 = vld [vmem:[#allocation5 + $0xc8] sm:$0xff] }
 0x5ad   :  { %3938 = vmatprep.subr.bf16.mxu1 %v4343_v3  ;;  %3964 = vmatpush3.bf16.msra.mxu0 %v4390_v4 }
 0x5ae   :  { %3965 = vmatprep.subr.bf16.mxu0 %v4343_v3  ;;  %3531 = vmatprep.mubr.msk.f32.mxu0 %vm4344_vm0, %v4345_v6 }
 0x5b0   :  { %3940 = vmatpush3.bf16.msra.mxu1 %v4433_v35 }
 0x5b1   :  { %3941 = vmatprep.subr.bf16.mxu1 %v4343_v3  ;;  %3967 = vmatpush3.bf16.msra.mxu0 %v4398_v7 }
 0x5b2   :  { %3980 = vmatprep.subr.bf16.mxu0 %v4343_v3 }
 0x5b4   :  { %3943 = vmatpush3.bf16.msra.mxu1 %v4438_v39 }
 0x5b5   :  { %3956 = vmatprep.subr.bf16.mxu1 %v4343_v3 }
 0x5b7   :  { %3491 = vmatmul.mubr.msk.f32.vlgmr.msra.gmra.mrb[4].mxu1 %vm334_vm4, %v529_v40 }
 0x5b8   :  { %3520 = vmatprep.mubr.msk.f32.mxu1 %vm4344_vm0, %v4345_v6  ;;  %3958 = vmatpush3.bf16.msra.mxu1 %v4544_v34 }
 0x5b9   :  { %3959 = vmatprep.subr.bf16.mxu1 %v4343_v3 }
 0x67a   :  { %v499_v45 = vpop.f32.mrb[2].mxu1 }
 0x67b   :  { %v503_v46 = vadd.f32 %v499_v45, %v101_v44  ;;  %v3473_v47 = vpop.f32.mrb[3].mxu1 }
 0x67d   :  { %4212 = vtanh.f32 %v503_v46 }
 0x67f   :  { %v700_v50 = vpop.f32.mrb[4].mxu0 }
 0x680   :  { %v701_v51 = vadd.f32 %v4521_v49, %v700_v50  ;;  %v3511_v52 = vpop.f32.mrb[5].mxu0 }
 0x682   :  { %4214 = vtanh.f32 %v701_v51 }
 0x687   :  { %v4213_v53 = vpop.eup %4212 }
 0x688   :  { %509 = vrot.lane.b32.xlu1 %v4213_v53, %s4346_s8  ;;  %v505_v59 = vmul.f32 0.5, %v4213_v53 }
 0x68a   :  { %v599_v54 = vpop.f32.mrb[4].mxu1  ;;  %v506_v60 = vadd.f32 0.5, %v505_v59 }
 0x68b   :  { %v600_v55 = vadd.f32 %v4459_v48, %v599_v54  ;;  %v3492_v56 = vpop.f32.mrb[5].mxu1 }
 0x68c   :  { %v4215_v57 = vpop.eup %4214  ;;  %v507_v16 = vmul.f32 %v506_v60, %v4467_v8  ;;  %v105_v56 = vstv %s3155_s15 }
 0x68d   :  { %4216 = vtanh.f32 %v600_v55  ;;  %709 = vrot.lane.b32.xlu1 %v4215_v57, %s4346_s8  ;;  %v705_v62 = vmul.f32 0.5, %v4215_v57  ;;  %v103_v55 = vstv %s3154_s14  ;;  %s4348_s14 = smov 96  }
 0x68e   :  { %v106_v57 = vsel %vm74_vm1, %v105_v56, %v103_v55 }
 0x68f   :  { %v706_v0 = vadd.f32 0.5, %v705_v62  ;;  %vm107_vm7 = vcmp.eq.s32.totalorder %v106_v57, 0  ;;  %v4600_v62 = vld [vmem:[#allocation5 + $0xd0] ss:$0 sm:$0xff] }
 0x691   :  { %v707_v21 = vmul.f32 0.0, %v706_v0 }
 0x697   :  { %v4217_v58 = vpop.eup %4216 }
 0x698   :  { %608 = vrot.lane.b32.xlu0 %v4217_v58, %s4346_s8  ;;  %v604_v5 = vmul.f32 0.5, %v4217_v58  ;;  %v108_v58 = vsel %vm107_vm7, %v4415_v13, %v4417_v14 }
 0x69a   :  { %v605_v10 = vadd.f32 0.5, %v604_v5 }
 0x69c   :  { %v606_v26 = vmul.f32 %v605_v10, %v4469_v11  ;;  %v67_v11 = vld [vmem:[#allocation5 + $0xc0] sm:$0xff] }
 0x69d   :  { %v4549_v38 = vpack.c.bf16 %v68_v37, %v67_v11 }
 0x69f   :  { %3961 = vmatpush3.bf16.msra.mxu1 %v4549_v38 }
 0x6a0   :  { %3968 = vmatprep.subr.bf16.mxu1 %v4343_v3 }
 0x6fa   :  { %v510_v61 = vpop.permute.xlu1 %509 }
 0x6fb   :  { %v512_v63 = vmul.f32 %v510_v61, %v506_v60 }
 0x6fd   :  { %514 = vrot.lane.b32.xlu0 %v512_v63, %s4347_s9 }
 0x6ff   :  { %v710_v1 = vpop.permute.xlu1 %709 }
 0x700   :  { %v712_v2 = vmul.f32 %v710_v1, %v706_v0 }
 0x702   :  { %714 = vrot.lane.b32.xlu0 %v712_v2, %s4347_s9 }
 0x70a   :  { %v609_v12 = vpop.permute.xlu0 %608 }
 0x70b   :  { %v611_v15 = vmul.f32 %v609_v12, %v605_v10 }
 0x70d   :  { %613 = vrot.lane.b32.xlu1 %v611_v15, %s4347_s9 }
 0x76f   :  { %v515_v18 = vpop.permute.xlu0 %514 }
 0x770   :  { %v4532_v20 = vadd.f32 %v515_v18, %v507_v16 }
 0x772   :  { %4218 = vtanh.f32 %v4532_v20 }
 0x774   :  { %v715_v22 = vpop.permute.xlu0 %714 }
 0x775   :  { %v4535_v23 = vadd.f32 %v715_v22, %v707_v21 }
 0x777   :  { %4220 = vtanh.f32 %v4535_v23 }
 0x77c   :  { %v4219_v25 = vpop.eup %4218 }
 0x77d   :  { %520 = vrot.lane.b32.xlu1 %v4219_v25, %s4346_s8 }
 0x77f   :  { %v614_v28 = vpop.permute.xlu1 %613 }
 0x780   :  { %v4540_v29 = vadd.f32 %v614_v28, %v606_v26 }
 0x781   :  { %v4221_v8 = vpop.eup %4220 }
 0x782   :  { %4222 = vtanh.f32 %v4540_v29  ;;  %720 = vrot.lane.b32.xlu1 %v4221_v8, %s4346_s8 }
 0x78c   :  { %v4223_v36 = vpop.eup %4222 }
 0x78d   :  { %619 = vrot.lane.b32.xlu0 %v4223_v36, %s4346_s8 }
 0x7ef   :  { %v521_v40 = vpop.permute.xlu1 %520 }
 0x7f0   :  { %v523_v41 = vmul.f32 %v521_v40, %v506_v60 }
 0x7f2   :  { %805 = vrot.lane.b32.xlu0 %v523_v41, %s4347_s9 }
 0x7f4   :  { %v721_v42 = vpop.permute.xlu1 %720 }
 0x7f5   :  { %v723_v43 = vmul.f32 %v721_v42, %v706_v0 }
 0x7f7   :  { %729 = vrot.lane.b32.xlu1 %v723_v43, %s4347_s9 }
 0x7fb   :  { %1002 = vrot.lane.b32.xlu1 %v723_v43, %s4346_s8 }
 0x7ff   :  { %v620_v44 = vpop.permute.xlu0 %619 }
 0x800   :  { %v622_v45 = vmul.f32 %v620_v44, %v605_v10 }
 0x802   :  { %999 = vrot.lane.b32.xlu0 %v622_v45, %s4347_s9 }
 0x806   :  { %902 = vrot.lane.b32.xlu0 %v622_v45, %s4346_s8 }
 0x864   :  { %v806_v46 = vpop.permute.xlu0 %805 }
 0x865   :  { %3532 = vmatmul.mubr.msk.f32.vlgmr.msra.gmra.mrb[6].mxu0 %vm137_vm3, %v806_v46 }
 0x866   :  { %3982 = vmatpush3.bf16.msra.mxu0 %v4473_v17  ;;  %3569 = vmatprep.mubr.msk.f32.mxu0 %vm4344_vm0, %v4345_v6 }
 0x867   :  { %3983 = vmatprep.subr.bf16.mxu0 %v4343_v3 }
 0x869   :  { %v730_v47 = vpop.permute.xlu1 %729 }
 0x86a   :  { %3521 = vmatmul.mubr.msk.f32.vlgmr.msra.gmra.mrb[6].mxu1 %vm137_vm3, %v730_v47  ;;  %3985 = vmatpush3.bf16.msra.mxu0 %v4476_v19 }
 0x86b   :  { %3970 = vmatpush3.bf16.msra.mxu1 %v4426_v30  ;;  %3986 = vmatprep.subr.bf16.mxu0 %v4343_v3 }
 0x86c   :  { %3971 = vmatprep.subr.bf16.mxu1 %v4343_v3  ;;  %3550 = vmatprep.mubr.msk.f32.mxu1 %vm4344_vm0, %v4345_v6 }
 0x86d   :  { %v1003_v50 = vpop.permute.xlu1 %1002 }
 0x86e   :  { %3988 = vmatpush3.bf16.msra.mxu0 %v4481_v24 }
 0x86f   :  { %3973 = vmatpush3.bf16.msra.mxu1 %v4429_v32  ;;  %3989 = vmatprep.subr.bf16.mxu0 %v4343_v3 }
 0x870   :  { %3974 = vmatprep.subr.bf16.mxu1 %v4343_v3 }
 0x872   :  { %3991 = vmatpush3.bf16.msra.mxu0 %v4487_v27 }
 0x873   :  { %3976 = vmatpush3.bf16.msra.mxu1 %v4433_v35  ;;  %3998 = vmatprep.subr.bf16.mxu0 %v4343_v3 }
 0x874   :  { %v1000_v51 = vpop.permute.xlu0 %999  ;;  %3977 = vmatprep.subr.bf16.mxu1 %v4343_v3 }
 0x875   :  { %v1005_v52 = vsel %vm137_vm3, %v1000_v51, %v1003_v50 }
 0x876   :  { %3570 = vmatmul.mubr.msk.f32.vlgmr.msra.gmra.mrb[8].mxu0 %vm334_vm4, %v1005_v52 }
 0x877   :  { %3979 = vmatpush3.bf16.msra.mxu1 %v4438_v39  ;;  %4000 = vmatpush3.bf16.msra.mxu0 %v4390_v4 }
 0x878   :  { %v903_v53 = vpop.permute.xlu0 %902  ;;  %4001 = vmatprep.subr.bf16.mxu0 %v4343_v3  ;;  %3591 = vmatprep.mubr.msk.f32.mxu0 %vm4344_vm0, %v4345_v6 }
 0x879   :  { %v905_v54 = vsel %vm137_vm3, %v806_v46, %v903_v53  ;;  %3992 = vmatprep.subr.bf16.mxu1 %v4343_v3 }
 0x87a   :  { %3551 = vmatmul.mubr.msk.f32.vlgmr.msra.gmra.mrb[8].mxu1 %vm334_vm4, %v905_v54 }
 0x87b   :  { %4003 = vmatpush3.bf16.msra.mxu0 %v4398_v7  ;;  %3994 = vmatpush3.bf16.msra.mxu1 %v4544_v34 }
 0x87c   :  { %4016 = vmatprep.subr.bf16.mxu0 %v4343_v3  ;;  %3995 = vmatprep.subr.bf16.mxu1 %v4343_v3 }
 0x87d   :  { %3580 = vmatprep.mubr.msk.f32.mxu1 %vm4344_vm0, %v4345_v6 }
 0x87f   :  { %3997 = vmatpush3.bf16.msra.mxu1 %v4549_v38 }
 0x880   :  { %4004 = vmatprep.subr.bf16.mxu1 %v4343_v3 }
 0x938   :  { %v875_v59 = vpop.f32.mrb[6].mxu0 }
 0x939   :  { %v879_v60 = vadd.f32 %v875_v59, %v108_v58  ;;  %v3533_v61 = vpop.f32.mrb[7].mxu0 }
 0x93b   :  { %4224 = vtanh.f32 %v879_v60 }
 0x93d   :  { %v799_v63 = vpop.f32.mrb[6].mxu1 }
 0x93e   :  { %v800_v0 = vadd.f32 %v4600_v62, %v799_v63  ;;  %v3522_v1 = vpop.f32.mrb[7].mxu1 }
 0x940   :  { %803 = vst [vmem:[%s5040_s2] sm:$0xff] %v800_v0 }
 0x945   :  { %v4225_v2 = vpop.eup %4224 }
 0x946   :  { %885 = vrot.lane.b32.xlu1 %v4225_v2, %s4346_s8  ;;  %v881_v25 = vmul.f32 0.5, %v4225_v2 }
 0x948   :  { %v882_v26 = vadd.f32 0.5, %v881_v25 }
 0x949   :  { %v1075_v5 = vpop.f32.mrb[8].mxu0 }
 0x94a   :  { %v1076_v10 = vadd.f32 %v4521_v49, %v1075_v5  ;;  %v3571_v12 = vpop.f32.mrb[9].mxu0  ;;  %v883_v43 = vmul.f32 %v882_v26, %v4532_v20 }
 0x94b   :  { %v112_v12 = vstv %s3157_s19 }
 0x94c   :  { %4226 = vtanh.f32 %v1076_v10  ;;  %v110_v10 = vstv %s3156_s18 }
 0x94d   :  { %v975_v15 = vpop.f32.mrb[8].mxu1 }
 0x94e   :  { %v976_v16 = vadd.f32 %v4459_v48, %v975_v15  ;;  %v3552_v18 = vpop.f32.mrb[9].mxu1  ;;  %v113_v15 = vsel %vm74_vm1, %v112_v12, %v110_v10 }
 0x94f   :  { %vm114_vm8 = vcmp.eq.s32.totalorder %v113_v15, 0 }
 0x950   :  { %4228 = vtanh.f32 %v976_v16  ;;  %v115_v16 = vsel %vm114_vm8, %v4415_v13, %v4417_v14 }
 0x956   :  { %v4227_v21 = vpop.eup %4226 }
 0x957   :  { %1084 = vrot.lane.b32.xlu0 %v4227_v21, %s4346_s8  ;;  %v1080_v31 = vmul.f32 0.5, %v4227_v21 }
 0x959   :  { %v1081_v33 = vadd.f32 0.5, %v1080_v31 }
 0x95a   :  { %v4229_v22 = vpop.eup %4228 }
 0x95b   :  { %984 = vrot.lane.b32.xlu1 %v4229_v22, %s4346_s8  ;;  %v980_v36 = vmul.f32 0.5, %v4229_v22  ;;  %v1082_v47 = vmul.f32 %v1081_v33, %v4535_v23 }
 0x95d   :  { %v981_v40 = vadd.f32 0.5, %v980_v36 }
 0x95f   :  { %v982_v52 = vmul.f32 %v981_v40, %v4540_v29 }
 0x9b8   :  { %v886_v28 = vpop.permute.xlu1 %885 }
 0x9b9   :  { %v888_v8 = vmul.f32 %v886_v28, %v882_v26 }
 0x9bb   :  { %890 = vrot.lane.b32.xlu0 %v888_v8, %s4347_s9 }
 0x9c9   :  { %v1085_v11 = vpop.permute.xlu0 %1084 }
 0x9ca   :  { %v1087_v37 = vmul.f32 %v1085_v11, %v1081_v33 }
 0x9cc   :  { %1089 = vrot.lane.b32.xlu1 %v1087_v37, %s4347_s9 }
 0x9cd   :  { %v985_v41 = vpop.permute.xlu1 %984 }
 0x9ce   :  { %v987_v42 = vmul.f32 %v985_v41, %v981_v40 }
 0x9d0   :  { %989 = vrot.lane.b32.xlu0 %v987_v42, %s4347_s9 }
 0xa2d   :  { %v891_v44 = vpop.permute.xlu0 %890 }
 0xa2e   :  { %v4615_v45 = vadd.f32 %v891_v44, %v883_v43 }
 0xa30   :  { %4230 = vtanh.f32 %v4615_v45 }
 0xa3a   :  { %v4231_v46 = vpop.eup %4230 }
 0xa3b   :  { %896 = vrot.lane.b32.xlu1 %v4231_v46, %s4346_s8 }
 0xa3e   :  { %v1090_v50 = vpop.permute.xlu1 %1089 }
 0xa3f   :  { %v4620_v51 = vadd.f32 %v1090_v50, %v1082_v47 }
 0xa41   :  { %4232 = vtanh.f32 %v4620_v51 }
 0xa42   :  { %v990_v53 = vpop.permute.xlu0 %989 }
 0xa43   :  { %v4624_v54 = vadd.f32 %v990_v53, %v982_v52 }
 0xa45   :  { %4234 = vtanh.f32 %v4624_v54 }
 0xa4b   :  { %v4233_v20 = vpop.eup %4232 }
 0xa4c   :  { %1095 = vrot.lane.b32.xlu0 %v4233_v20, %s4346_s8 }
 0xa4f   :  { %v4235_v55 = vpop.eup %4234 }
 0xa50   :  { %995 = vrot.lane.b32.xlu1 %v4235_v55, %s4346_s8 }
 0xaad   :  { %v897_v56 = vpop.permute.xlu1 %896 }
 0xaae   :  { %v899_v23 = vmul.f32 %v897_v56, %v882_v26 }
 0xab0   :  { %1176 = vrot.lane.b32.xlu1 %v899_v23, %s4347_s9 }
 0xabe   :  { %v1096_v57 = vpop.permute.xlu0 %1095 }
 0xabf   :  { %v1098_v58 = vmul.f32 %v1096_v57, %v1081_v33 }
 0xac1   :  { %1100 = vrot.lane.b32.xlu0 %v1098_v58, %s4347_s9 }
 0xac2   :  { %v996_v29 = vpop.permute.xlu1 %995 }
 0xac3   :  { %v998_v59 = vmul.f32 %v996_v29, %v981_v40 }
 0xac5   :  { %1370 = vrot.lane.b32.xlu1 %v998_v59, %s4347_s9  ;;  %1273 = vrot.lane.b32.xlu0 %v998_v59, %s4346_s8 }
 0xac9   :  { %1373 = vrot.lane.b32.xlu0 %v1098_v58, %s4346_s8 }
 0xb22   :  { %v1177_v60 = vpop.permute.xlu1 %1176 }
 0xb23   :  { %3592 = vmatmul.mubr.msk.f32.vlgmr.msra.gmra.mrb[10].mxu0 %vm137_vm3, %v1177_v60 }
 0xb24   :  { %4018 = vmatpush3.bf16.msra.mxu0 %v4473_v17  ;;  %3629 = vmatprep.mubr.msk.f32.mxu0 %vm4344_vm0, %v4345_v6 }
 0xb25   :  { %4019 = vmatprep.subr.bf16.mxu0 %v4343_v3 }
 0xb28   :  { %4021 = vmatpush3.bf16.msra.mxu0 %v4476_v19 }
 0xb29   :  { %4022 = vmatprep.subr.bf16.mxu0 %v4343_v3 }
 0xb2c   :  { %4024 = vmatpush3.bf16.msra.mxu0 %v4481_v24 }
 0xb2d   :  { %4025 = vmatprep.subr.bf16.mxu0 %v4343_v3 }
 0xb30   :  { %4027 = vmatpush3.bf16.msra.mxu0 %v4487_v27 }
 0xb31   :  { %4034 = vmatprep.subr.bf16.mxu0 %v4343_v3 }
 0xb33   :  { %v1101_v61 = vpop.permute.xlu0 %1100 }
 0xb34   :  { %3581 = vmatmul.mubr.msk.f32.vlgmr.msra.gmra.mrb[10].mxu1 %vm137_vm3, %v1101_v61 }
 0xb35   :  { %4006 = vmatpush3.bf16.msra.mxu1 %v4426_v30  ;;  %3610 = vmatprep.mubr.msk.f32.mxu1 %vm4344_vm0, %v4345_v6 }
 0xb36   :  { %4007 = vmatprep.subr.bf16.mxu1 %v4343_v3 }
 0xb37   :  { %v1274_v63 = vpop.permute.xlu0 %1273  ;;  %v1371_v0 = vpop.permute.xlu1 %1370 }
 0xb38   :  { %v1276_v5 = vsel %vm137_vm3, %v1177_v60, %v1274_v63 }
 0xb39   :  { %4009 = vmatpush3.bf16.msra.mxu1 %v4429_v32 }
 0xb3a   :  { %4010 = vmatprep.subr.bf16.mxu1 %v4343_v3 }
 0xb3b   :  { %v1374_v1 = vpop.permute.xlu0 %1373 }
 0xb3c   :  { %v1376_v2 = vsel %vm137_vm3, %v1371_v0, %v1374_v1 }
 0xb3d   :  { %4012 = vmatpush3.bf16.msra.mxu1 %v4433_v35  ;;  %3630 = vmatmul.mubr.msk.f32.vlgmr.msra.gmra.mrb[12].mxu0 %vm334_vm4, %v1376_v2 }
 0xb3e   :  { %4013 = vmatprep.subr.bf16.mxu1 %v4343_v3  ;;  %4036 = vmatpush3.bf16.msra.mxu0 %v4390_v4 }
 0xb3f   :  { %4037 = vmatprep.subr.bf16.mxu0 %v4343_v3  ;;  %3651 = vmatprep.mubr.msk.f32.mxu0 %vm4344_vm0, %v4345_v6 }
 0xb41   :  { %4015 = vmatpush3.bf16.msra.mxu1 %v4438_v39 }
 0xb42   :  { %4039 = vmatpush3.bf16.msra.mxu0 %v4398_v7  ;;  %4028 = vmatprep.subr.bf16.mxu1 %v4343_v3 }
 0xb43   :  { %4052 = vmatprep.subr.bf16.mxu0 %v4343_v3 }
 0xb44   :  { %3611 = vmatmul.mubr.msk.f32.vlgmr.msra.gmra.mrb[12].mxu1 %vm334_vm4, %v1276_v5 }
 0xb45   :  { %4030 = vmatpush3.bf16.msra.mxu1 %v4544_v34  ;;  %3640 = vmatprep.mubr.msk.f32.mxu1 %vm4344_vm0, %v4345_v6 }
 0xb46   :  { %4031 = vmatprep.subr.bf16.mxu1 %v4343_v3 }
 0xb49   :  { %4033 = vmatpush3.bf16.msra.mxu1 %v4549_v38 }
 0xb4a   :  { %4040 = vmatprep.subr.bf16.mxu1 %v4343_v3 }
 0xbf6   :  { %v1246_v18 = vpop.f32.mrb[10].mxu0 }
 0xbf7   :  { %v1250_v21 = vadd.f32 %v1246_v18, %v115_v16  ;;  %v3593_v22 = vpop.f32.mrb[11].mxu0 }
 0xbf9   :  { %4236 = vtanh.f32 %v1250_v21 }
 0xc03   :  { %v4237_v25 = vpop.eup %4236 }
 0xc04   :  { %1256 = vrot.lane.b32.xlu1 %v4237_v25, %s4346_s8  ;;  %v1252_v43 = vmul.f32 0.5, %v4237_v25 }
 0xc06   :  { %v1253_v44 = vadd.f32 0.5, %v1252_v43 }
 0xc07   :  { %v1170_v26 = vpop.f32.mrb[10].mxu1 }
 0xc08   :  { %v1171_v28 = vadd.f32 %v4600_v62, %v1170_v26  ;;  %v3582_v8 = vpop.f32.mrb[11].mxu1  ;;  %v1254_v58 = vmul.f32 %v1253_v44, %v4615_v45 }
 0xc0a   :  { %1174 = vst [vmem:[%s5040_s2 + $0x8] sm:$0xff] %v1171_v28 }
 0xc10   :  { %v1446_v31 = vpop.f32.mrb[12].mxu0 }
 0xc11   :  { %v1447_v33 = vadd.f32 %v4521_v49, %v1446_v31  ;;  %v3631_v36 = vpop.f32.mrb[13].mxu0 }
 0xc12   :  { %v119_v36 = vstv %s3159_s23 }
 0xc13   :  { %4238 = vtanh.f32 %v1447_v33  ;;  %v117_v33 = vstv %s3158_s22 }
 0xc17   :  { %v1346_v11 = vpop.f32.mrb[12].mxu1 }
 0xc18   :  { %v1347_v37 = vadd.f32 %v4459_v48, %v1346_v11  ;;  %v3612_v40 = vpop.f32.mrb[13].mxu1  ;;  %v120_v11 = vsel %vm74_vm1, %v119_v36, %v117_v33 }
 0xc19   :  { %vm121_vm9 = vcmp.eq.s32.totalorder %v120_v11, 0 }
 0xc1a   :  { %4240 = vtanh.f32 %v1347_v37  ;;  %v122_v37 = vsel %vm121_vm9, %v4415_v13, %v4417_v14 }
 0xc1d   :  { %v4239_v41 = vpop.eup %4238 }
 0xc1e   :  { %1455 = vrot.lane.b32.xlu1 %v4239_v41, %s4346_s8  ;;  %v1451_v50 = vmul.f32 0.5, %v4239_v41 }
 0xc20   :  { %v1452_v52 = vadd.f32 0.5, %v1451_v50 }
 0xc22   :  { %v1453_v61 = vmul.f32 %v1452_v52, %v4620_v51 }
 0xc24   :  { %v4241_v42 = vpop.eup %4240 }
 0xc25   :  { %1355 = vrot.lane.b32.xlu0 %v4241_v42, %s4346_s8  ;;  %v1351_v55 = vmul.f32 0.5, %v4241_v42 }
 0xc27   :  { %v1352_v56 = vadd.f32 0.5, %v1351_v55 }
 0xc29   :  { %v1353_v1 = vmul.f32 %v1352_v56, %v4624_v54 }
 0xc76   :  { %v1257_v46 = vpop.permute.xlu1 %1256 }
 0xc77   :  { %v1259_v47 = vmul.f32 %v1257_v46, %v1253_v44 }
 0xc79   :  { %1261 = vrot.lane.b32.xlu0 %v1259_v47, %s4347_s9 }
 0xc90   :  { %v1456_v53 = vpop.permute.xlu1 %1455 }
 0xc91   :  { %v1458_v20 = vmul.f32 %v1456_v53, %v1452_v52 }
 0xc93   :  { %1460 = vrot.lane.b32.xlu0 %v1458_v20, %s4347_s9 }
 0xc97   :  { %v1356_v23 = vpop.permute.xlu0 %1355 }
 0xc98   :  { %v1358_v57 = vmul.f32 %v1356_v23, %v1352_v56 }
 0xc9a   :  { %1360 = vrot.lane.b32.xlu1 %v1358_v57, %s4347_s9 }
 0xceb   :  { %v1262_v29 = vpop.permute.xlu0 %1261 }
 0xcec   :  { %v4689_v59 = vadd.f32 %v1262_v29, %v1254_v58 }
 0xcee   :  { %4242 = vtanh.f32 %v4689_v59 }
 0xcf8   :  { %v4243_v60 = vpop.eup %4242 }
 0xcf9   :  { %1267 = vrot.lane.b32.xlu1 %v4243_v60, %s4346_s8 }
 0xd05   :  { %v1461_v63 = vpop.permute.xlu0 %1460 }
 0xd06   :  { %v4694_v0 = vadd.f32 %v1461_v63, %v1453_v61 }
 0xd08   :  { %4244 = vtanh.f32 %v4694_v0 }
 0xd0c   :  { %v1361_v2 = vpop.permute.xlu1 %1360 }
 0xd0d   :  { %v4698_v5 = vadd.f32 %v1361_v2, %v1353_v1 }
 0xd0f   :  { %4246 = vtanh.f32 %v4698_v5 }
 0xd12   :  { %v4245_v45 = vpop.eup %4244 }
 0xd13   :  { %1466 = vrot.lane.b32.xlu1 %v4245_v45, %s4346_s8 }
 0xd19   :  { %v4247_v10 = vpop.eup %4246 }
 0xd1a   :  { %1366 = vrot.lane.b32.xlu0 %v4247_v10, %s4346_s8 }
 0xd6b   :  { %v1268_v12 = vpop.permute.xlu1 %1267 }
 0xd6c   :  { %v1270_v51 = vmul.f32 %v1268_v12, %v1253_v44 }
 0xd6e   :  { %1547 = vrot.lane.b32.xlu0 %v1270_v51, %s4347_s9 }
 0xd85   :  { %v1467_v15 = vpop.permute.xlu1 %1466 }
 0xd86   :  { %v1469_v16 = vmul.f32 %v1467_v15, %v1452_v52 }
 0xd88   :  { %1471 = vrot.lane.b32.xlu1 %v1469_v16, %s4347_s9 }
 0xd8c   :  { %v1367_v54 = vpop.permute.xlu0 %1366  ;;  %1744 = vrot.lane.b32.xlu1 %v1469_v16, %s4346_s8 }
 0xd8d   :  { %v1369_v18 = vmul.f32 %v1367_v54, %v1352_v56 }
 0xd8f   :  { %1741 = vrot.lane.b32.xlu0 %v1369_v18, %s4347_s9 }
 0xd93   :  { %1644 = vrot.lane.b32.xlu0 %v1369_v18, %s4346_s8 }
 0xde0   :  { %v1548_v21 = vpop.permute.xlu0 %1547 }
 0xde1   :  { %3652 = vmatmul.mubr.msk.f32.vlgmr.msra.gmra.mrb[14].mxu0 %vm137_vm3, %v1548_v21 }
 0xde2   :  { %4054 = vmatpush3.bf16.msra.mxu0 %v4473_v17  ;;  %3689 = vmatprep.mubr.msk.f32.mxu0 %vm4344_vm0, %v4345_v6 }
 0xde3   :  { %4055 = vmatprep.subr.bf16.mxu0 %v4343_v3 }
 0xde6   :  { %4057 = vmatpush3.bf16.msra.mxu0 %v4476_v19 }
 0xde7   :  { %4058 = vmatprep.subr.bf16.mxu0 %v4343_v3 }
 0xdea   :  { %4060 = vmatpush3.bf16.msra.mxu0 %v4481_v24 }
 0xdeb   :  { %4061 = vmatprep.subr.bf16.mxu0 %v4343_v3 }
 0xdee   :  { %4063 = vmatpush3.bf16.msra.mxu0 %v4487_v27 }
 0xdef   :  { %4070 = vmatprep.subr.bf16.mxu0 %v4343_v3 }
 0xdfa   :  { %v1472_v22 = vpop.permute.xlu1 %1471 }
 0xdfb   :  { %3641 = vmatmul.mubr.msk.f32.vlgmr.msra.gmra.mrb[14].mxu1 %vm137_vm3, %v1472_v22 }
 0xdfc   :  { %4042 = vmatpush3.bf16.msra.mxu1 %v4426_v30  ;;  %3670 = vmatprep.mubr.msk.f32.mxu1 %vm4344_vm0, %v4345_v6 }
 0xdfd   :  { %4043 = vmatprep.subr.bf16.mxu1 %v4343_v3 }
 0xdfe   :  { %v1745_v25 = vpop.permute.xlu1 %1744 }
 0xe00   :  { %4045 = vmatpush3.bf16.msra.mxu1 %v4429_v32 }
 0xe01   :  { %v1742_v26 = vpop.permute.xlu0 %1741  ;;  %4046 = vmatprep.subr.bf16.mxu1 %v4343_v3 }
 0xe02   :  { %v1747_v28 = vsel %vm137_vm3, %v1742_v26, %v1745_v25 }
 0xe03   :  { %3690 = vmatmul.mubr.msk.f32.vlgmr.msra.gmra.mrb[16].mxu0 %vm334_vm4, %v1747_v28 }
 0xe04   :  { %4048 = vmatpush3.bf16.msra.mxu1 %v4433_v35  ;;  %4072 = vmatpush3.bf16.msra.mxu0 %v4390_v4 }
 0xe05   :  { %4049 = vmatprep.subr.bf16.mxu1 %v4343_v3  ;;  %4073 = vmatprep.subr.bf16.mxu0 %v4343_v3  ;;  %v1645_v8 = vpop.permute.xlu0 %1644 }
 0xe06   :  { %3711 = vmatprep.mubr.msk.f32.mxu0 %vm4344_vm0, %v4345_v6  ;;  %v1647_v31 = vsel %vm137_vm3, %v1548_v21, %v1645_v8 }
 0xe08   :  { %4051 = vmatpush3.bf16.msra.mxu1 %v4438_v39  ;;  %4075 = vmatpush3.bf16.msra.mxu0 %v4398_v7 }
 0xe09   :  { %4064 = vmatprep.subr.bf16.mxu1 %v4343_v3  ;;  %4088 = vmatprep.subr.bf16.mxu0 %v4343_v3 }
 0xe0b   :  { %3671 = vmatmul.mubr.msk.f32.vlgmr.msra.gmra.mrb[16].mxu1 %vm334_vm4, %v1647_v31 }
 0xe0c   :  { %4066 = vmatpush3.bf16.msra.mxu1 %v4544_v34  ;;  %3700 = vmatprep.mubr.msk.f32.mxu1 %vm4344_vm0, %v4345_v6 }
 0xe0d   :  { %4067 = vmatprep.subr.bf16.mxu1 %v4343_v3 }
 0xe10   :  { %4069 = vmatpush3.bf16.msra.mxu1 %v4549_v38 }
 0xe11   :  { %4076 = vmatprep.subr.bf16.mxu1 %v4343_v3 }
 0xeb4   :  { %v1617_v40 = vpop.f32.mrb[14].mxu0 }
 0xeb5   :  { %v1621_v41 = vadd.f32 %v1617_v40, %v122_v37  ;;  %v3653_v42 = vpop.f32.mrb[15].mxu0 }
 0xeb7   :  { %4248 = vtanh.f32 %v1621_v41 }
 0xec1   :  { %v4249_v43 = vpop.eup %4248 }
 0xec2   :  { %1627 = vrot.lane.b32.xlu1 %v4249_v43, %s4346_s8  ;;  %v1623_v23 = vmul.f32 0.5, %v4249_v43 }
 0xec4   :  { %v1624_v57 = vadd.f32 0.5, %v1623_v23 }
 0xec6   :  { %v1625_v12 = vmul.f32 %v1624_v57, %v4689_v59 }
 0xece   :  { %v1541_v44 = vpop.f32.mrb[14].mxu1 }
 0xecf   :  { %v1542_v46 = vadd.f32 %v4600_v62, %v1541_v44  ;;  %v3642_v47 = vpop.f32.mrb[15].mxu1 }
 0xed1   :  { %1545 = vst [vmem:[%s5040_s2 + $0x10] sm:$0xff] %v1542_v46  ;;  %v126_v46 = vstv %s3161_s26 }
 0xed6   :  { %v1817_v50 = vpop.f32.mrb[16].mxu0 }
 0xed7   :  { %v1818_v52 = vadd.f32 %v4521_v49, %v1817_v50  ;;  %v3691_v53 = vpop.f32.mrb[17].mxu0  ;;  %v4822_v50 = vld [vmem:[#allocation5] ss:$0 sm:$0xff] }
 0xed9   :  { %4250 = vtanh.f32 %v1818_v52  ;;  %v4824_v52 = vld [vmem:[#allocation5 + $0x1] ss:$0 sm:$0xff] }
 0xede   :  { %v1717_v13 = vpop.f32.mrb[16].mxu1 }
 0xedf   :  { %v1718_v14 = vadd.f32 %v4459_v48, %v1717_v13  ;;  %v3672_v20 = vpop.f32.mrb[17].mxu1 }
 0xee1   :  { %4252 = vtanh.f32 %v1718_v14 }
 0xee3   :  { %v4251_v55 = vpop.eup %4250 }
 0xee4   :  { %1826 = vrot.lane.b32.xlu0 %v4251_v55, %s4346_s8  ;;  %v1822_v60 = vmul.f32 0.5, %v4251_v55 }
 0xee6   :  { %v1823_v61 = vadd.f32 0.5, %v1822_v60 }
 0xee8   :  { %v1824_v54 = vmul.f32 %v1823_v61, %v4694_v0 }
 0xeeb   :  { %v4253_v56 = vpop.eup %4252 }
 0xeec   :  { %1726 = vrot.lane.b32.xlu1 %v4253_v56, %s4346_s8  ;;  %v1722_v48 = vmul.f32 0.5, %v4253_v56 }
 0xeee   :  { %v1723_v2 = vadd.f32 0.5, %v1722_v48 }
 0xef0   :  { %v1724_v22 = vmul.f32 %v1723_v2, %v4698_v5 }
 0xf34   :  { %v1628_v58 = vpop.permute.xlu1 %1627 }
 0xf35   :  { %v1630_v29 = vmul.f32 %v1628_v58, %v1624_v57 }
 0xf37   :  { %1632 = vrot.lane.b32.xlu0 %v1630_v29, %s4347_s9 }
 0xf56   :  { %v1827_v63 = vpop.permute.xlu0 %1826 }
 0xf57   :  { %v1829_v1 = vmul.f32 %v1827_v63, %v1823_v61 }
 0xf59   :  { %1831 = vrot.lane.b32.xlu1 %v1829_v1, %s4347_s9 }
 0xf5e   :  { %v1727_v45 = vpop.permute.xlu1 %1726 }
 0xf5f   :  { %v1729_v10 = vmul.f32 %v1727_v45, %v1723_v2 }
 0xf61   :  { %1731 = vrot.lane.b32.xlu0 %v1729_v10, %s4347_s9 }
 0xfa9   :  { %v1633_v51 = vpop.permute.xlu0 %1632 }
 0xfaa   :  { %v4763_v15 = vadd.f32 %v1633_v51, %v1625_v12 }
 0xfac   :  { %4254 = vtanh.f32 %v4763_v15 }
 0xfb6   :  { %v4255_v16 = vpop.eup %4254 }
 0xfb7   :  { %1638 = vrot.lane.b32.xlu1 %v4255_v16, %s4346_s8 }
 0xfcb   :  { %v1832_v18 = vpop.permute.xlu1 %1831 }
 0xfcc   :  { %v4768_v21 = vadd.f32 %v1832_v18, %v1824_v54 }
 0xfce   :  { %4256 = vtanh.f32 %v4768_v21 }
 0xfd3   :  { %v1732_v25 = vpop.permute.xlu0 %1731 }
 0xfd4   :  { %v4772_v26 = vadd.f32 %v1732_v25, %v1724_v22 }
 0xfd6   :  { %4258 = vtanh.f32 %v4772_v26 }
 0xfd8   :  { %v4257_v59 = vpop.eup %4256 }
 0xfd9   :  { %1837 = vrot.lane.b32.xlu0 %v4257_v59, %s4346_s8 }
 0xfe0   :  { %v4259_v28 = vpop.eup %4258 }
 0xfe1   :  { %1737 = vrot.lane.b32.xlu1 %v4259_v28, %s4346_s8 }
0x1029   :  { %v1639_v8 = vpop.permute.xlu1 %1638 }
0x102a   :  { %v1641_v0 = vmul.f32 %v1639_v8, %v1624_v57 }
0x102c   :  { %1918 = vrot.lane.b32.xlu1 %v1641_v0, %s4347_s9 }
0x104b   :  { %v1838_v31 = vpop.permute.xlu0 %1837 }
0x104c   :  { %v1840_v33 = vmul.f32 %v1838_v31, %v1823_v61  ;;  %v4834_v61 = vld [vmem:[#allocation5 + $0xa8] ss:$0 sm:$0xff] }
0x104e   :  { %1842 = vrot.lane.b32.xlu0 %v1840_v33, %s4347_s9 }
0x1053   :  { %v1738_v5 = vpop.permute.xlu1 %1737 }
0x1054   :  { %v1740_v36 = vmul.f32 %v1738_v5, %v1723_v2 }
0x1056   :  { %2112 = vrot.lane.b32.xlu1 %v1740_v36, %s4347_s9  ;;  %2015 = vrot.lane.b32.xlu0 %v1740_v36, %s4346_s8 }
0x105a   :  { %2115 = vrot.lane.b32.xlu0 %v1840_v33, %s4346_s8 }
0x109e   :  { %v1919_v11 = vpop.permute.xlu1 %1918 }
0x109f   :  { %3712 = vmatmul.mubr.msk.f32.vlgmr.msra.gmra.mrb[18].mxu0 %vm137_vm3, %v1919_v11 }
0x10a0   :  { %4090 = vmatpush3.bf16.msra.mxu0 %v4473_v17  ;;  %3749 = vmatprep.mubr.msk.f32.mxu0 %vm4344_vm0, %v4345_v6 }
0x10a1   :  { %4091 = vmatprep.subr.bf16.mxu0 %v4343_v3 }
0x10a4   :  { %4093 = vmatpush3.bf16.msra.mxu0 %v4476_v19 }
0x10a5   :  { %4094 = vmatprep.subr.bf16.mxu0 %v4343_v3 }
0x10a8   :  { %4096 = vmatpush3.bf16.msra.mxu0 %v4481_v24 }
0x10a9   :  { %4097 = vmatprep.subr.bf16.mxu0 %v4343_v3 }
0x10ac   :  { %4099 = vmatpush3.bf16.msra.mxu0 %v4487_v27 }
0x10ad   :  { %4106 = vmatprep.subr.bf16.mxu0 %v4343_v3 }
0x10c0   :  { %v1843_v37 = vpop.permute.xlu0 %1842 }
0x10c1   :  { %3701 = vmatmul.mubr.msk.f32.vlgmr.msra.gmra.mrb[18].mxu1 %vm137_vm3, %v1843_v37 }
0x10c2   :  { %4078 = vmatpush3.bf16.msra.mxu1 %v4426_v30  ;;  %3730 = vmatprep.mubr.msk.f32.mxu1 %vm4344_vm0, %v4345_v6 }
0x10c3   :  { %4079 = vmatprep.subr.bf16.mxu1 %v4343_v3 }
0x10c6   :  { %4081 = vmatpush3.bf16.msra.mxu1 %v4429_v32 }
0x10c7   :  { %4082 = vmatprep.subr.bf16.mxu1 %v4343_v3 }
0x10c8   :  { %v2016_v40 = vpop.permute.xlu0 %2015  ;;  %v2113_v41 = vpop.permute.xlu1 %2112 }
0x10c9   :  { %v2018_v44 = vsel %vm137_vm3, %v1919_v11, %v2016_v40 }
0x10ca   :  { %4084 = vmatpush3.bf16.msra.mxu1 %v4433_v35 }
0x10cb   :  { %4085 = vmatprep.subr.bf16.mxu1 %v4343_v3 }
0x10cc   :  { %v2116_v42 = vpop.permute.xlu0 %2115 }
0x10cd   :  { %v2118_v43 = vsel %vm137_vm3, %v2113_v41, %v2116_v42 }
0x10ce   :  { %4087 = vmatpush3.bf16.msra.mxu1 %v4438_v39  ;;  %3750 = vmatmul.mubr.msk.f32.vlgmr.msra.gmra.mrb[20].mxu0 %vm334_vm4, %v2118_v43 }
0x10cf   :  { %4108 = vmatpush3.bf16.msra.mxu0 %v4390_v4  ;;  %3771 = vmatprep.mubr.msk.f32.mxu0 %vm4344_vm0, %v4345_v6  ;;  %v124_v4 = vstv %s3160_s0 }
0x10d0   :  { %4109 = vmatprep.subr.bf16.mxu0 %v4343_v3  ;;  %4100 = vmatprep.subr.bf16.mxu1 %v4343_v3  ;;  %v127_v47 = vsel %vm74_vm1, %v126_v46, %v124_v4 }
0x10d1   :  { %3731 = vmatmul.mubr.msk.f32.vlgmr.msra.gmra.mrb[20].mxu1 %vm334_vm4, %v2018_v44  ;;  %vm128_vm10 = vcmp.eq.s32.totalorder %v127_v47, 0 }
0x10d2   :  { %4102 = vmatpush3.bf16.msra.mxu1 %v4544_v34  ;;  %3760 = vmatprep.mubr.msk.f32.mxu1 %vm4344_vm0, %v4345_v6 }
0x10d3   :  { %4111 = vmatpush3.bf16.msra.mxu0 %v4398_v7  ;;  %4103 = vmatprep.subr.bf16.mxu1 %v4343_v3  ;;  %v129_v7 = vsel %vm128_vm10, %v4822_v50, %v4824_v52 }
0x10d4   :  { %4124 = vmatprep.subr.bf16.mxu0 %v4343_v3 }
0x10d6   :  { %4105 = vmatpush3.bf16.msra.mxu1 %v4549_v38 }
0x10d7   :  { %4112 = vmatprep.subr.bf16.mxu1 %v4343_v3 }
0x1172   :  { %v1988_v53 = vpop.f32.mrb[18].mxu0 }
0x1173   :  { %v1992_v13 = vadd.f32 %v1988_v53, %v129_v7  ;;  %v3713_v14 = vpop.f32.mrb[19].mxu0 }
0x1175   :  { %4260 = vtanh.f32 %v1992_v13 }
0x117f   :  { %v4261_v20 = vpop.eup %4260 }
0x1180   :  { %1998 = vrot.lane.b32.xlu1 %v4261_v20, %s4346_s8  ;;  %v1994_v45 = vmul.f32 0.5, %v4261_v20 }
0x1182   :  { %v1995_v10 = vadd.f32 0.5, %v1994_v45 }
0x1184   :  { %v1996_v8 = vmul.f32 %v1995_v10, %v4763_v15 }
0x1194   :  { %v1912_v55 = vpop.f32.mrb[18].mxu1 }
0x1195   :  { %v1913_v56 = vadd.f32 %v4600_v62, %v1912_v55  ;;  %v3702_v23 = vpop.f32.mrb[19].mxu1 }
0x1197   :  { %1916 = vst [vmem:[%s5040_s2 + $0x18] sm:$0xff] %v1913_v56 }
0x11a1   :  { %v2188_v57 = vpop.f32.mrb[20].mxu0 }
0x11a2   :  { %v2189_v58 = vadd.f32 %v4521_v49, %v2188_v57  ;;  %v3751_v29 = vpop.f32.mrb[21].mxu0 }
0x11a4   :  { %4262 = vtanh.f32 %v2189_v58  ;;  %v2088_v60 = vpop.f32.mrb[20].mxu1 }
0x11a5   :  { %v2089_v63 = vadd.f32 %v4834_v61, %v2088_v60  ;;  %v3732_v1 = vpop.f32.mrb[21].mxu1 }
0x11a6   :  { %v4913_v1 = vld [vmem:[#allocation5 + $0xa9] ss:$0 sm:$0xff] }
0x11a7   :  { %4264 = vtanh.f32 %v2089_v63 }
0x11ae   :  { %v4263_v48 = vpop.eup %4262 }
0x11af   :  { %2197 = vrot.lane.b32.xlu1 %v4263_v48, %s4346_s8  ;;  %v2193_v49 = vmul.f32 0.5, %v4263_v48 }
0x11b1   :  { %v4265_v2 = vpop.eup %4264  ;;  %v2194_v54 = vadd.f32 0.5, %v2193_v49 }
0x11b2   :  { %2097 = vrot.lane.b32.xlu0 %v4265_v2, %s4346_s8  ;;  %v2093_v16 = vmul.f32 0.5, %v4265_v2 }
0x11b3   :  { %v2195_v5 = vmul.f32 %v2194_v54, %v4768_v21 }
0x11b4   :  { %v2094_v25 = vadd.f32 0.5, %v2093_v16 }
0x11b6   :  { %v2095_v37 = vmul.f32 %v2094_v25, %v4772_v26 }
0x11f2   :  { %v1999_v12 = vpop.permute.xlu1 %1998 }
0x11f3   :  { %v2001_v51 = vmul.f32 %v1999_v12, %v1995_v10 }
0x11f5   :  { %2003 = vrot.lane.b32.xlu0 %v2001_v51, %s4347_s9 }
0x1221   :  { %v2198_v18 = vpop.permute.xlu1 %2197 }
0x1222   :  { %v2200_v22 = vmul.f32 %v2198_v18, %v2194_v54 }
0x1224   :  { %v2098_v59 = vpop.permute.xlu0 %2097  ;;  %2202 = vrot.lane.b32.xlu0 %v2200_v22, %s4347_s9 }
0x1225   :  { %v2100_v28 = vmul.f32 %v2098_v59, %v2094_v25 }
0x1227   :  { %2102 = vrot.lane.b32.xlu1 %v2100_v28, %s4347_s9 }
0x1267   :  { %v2004_v0 = vpop.permute.xlu0 %2003 }
0x1268   :  { %v4843_v31 = vadd.f32 %v2004_v0, %v1996_v8 }
0x126a   :  { %4266 = vtanh.f32 %v4843_v31 }
0x1274   :  { %v4267_v33 = vpop.eup %4266 }
0x1275   :  { %2009 = vrot.lane.b32.xlu1 %v4267_v33, %s4346_s8 }
0x1296   :  { %v2203_v36 = vpop.permute.xlu0 %2202 }
0x1297   :  { %v4848_v11 = vadd.f32 %v2203_v36, %v2195_v5 }
0x1299   :  { %4268 = vtanh.f32 %v4848_v11  ;;  %v2103_v40 = vpop.permute.xlu1 %2102 }
0x129a   :  { %v4852_v41 = vadd.f32 %v2103_v40, %v2095_v37 }
0x129c   :  { %4270 = vtanh.f32 %v4852_v41 }
0x12a3   :  { %v4269_v15 = vpop.eup %4268 }
0x12a4   :  { %2208 = vrot.lane.b32.xlu1 %v4269_v15, %s4346_s8 }
0x12a6   :  { %v4271_v42 = vpop.eup %4270 }
0x12a7   :  { %2108 = vrot.lane.b32.xlu0 %v4271_v42, %s4346_s8 }
0x12e7   :  { %v2010_v43 = vpop.permute.xlu1 %2009 }
0x12e8   :  { %v2012_v21 = vmul.f32 %v2010_v43, %v1995_v10 }
0x12ea   :  { %2289 = vrot.lane.b32.xlu0 %v2012_v21, %s4347_s9 }
0x1316   :  { %v2209_v44 = vpop.permute.xlu1 %2208 }
0x1317   :  { %v2211_v4 = vmul.f32 %v2209_v44, %v2194_v54 }
0x1319   :  { %v2109_v26 = vpop.permute.xlu0 %2108  ;;  %2213 = vrot.lane.b32.xlu1 %v2211_v4, %s4347_s9 }
0x131a   :  { %v2111_v46 = vmul.f32 %v2109_v26, %v2094_v25 }
0x131c   :  { %2483 = vrot.lane.b32.xlu0 %v2111_v46, %s4347_s9 }
0x131d   :  { %2486 = vrot.lane.b32.xlu1 %v2211_v4, %s4346_s8 }
0x1320   :  { %2386 = vrot.lane.b32.xlu0 %v2111_v46, %s4346_s8 }
0x135c   :  { %v2290_v47 = vpop.permute.xlu0 %2289 }
0x135d   :  { %3772 = vmatmul.mubr.msk.f32.vlgmr.msra.gmra.mrb[22].mxu0 %vm137_vm3, %v2290_v47 }
0x135e   :  { %4126 = vmatpush3.bf16.msra.mxu0 %v4473_v17  ;;  %3809 = vmatprep.mubr.msk.f32.mxu0 %vm4344_vm0, %v4345_v6 }
0x135f   :  { %4127 = vmatprep.subr.bf16.mxu0 %v4343_v3 }
0x1362   :  { %4129 = vmatpush3.bf16.msra.mxu0 %v4476_v19 }
0x1363   :  { %4130 = vmatprep.subr.bf16.mxu0 %v4343_v3 }
0x1366   :  { %4132 = vmatpush3.bf16.msra.mxu0 %v4481_v24 }
0x1367   :  { %4133 = vmatprep.subr.bf16.mxu0 %v4343_v3 }
0x136a   :  { %4135 = vmatpush3.bf16.msra.mxu0 %v4487_v27 }
0x136b   :  { %4142 = vmatprep.subr.bf16.mxu0 %v4343_v3 }
0x138b   :  { %v2214_v7 = vpop.permute.xlu1 %2213 }
0x138c   :  { %3761 = vmatmul.mubr.msk.f32.vlgmr.msra.gmra.mrb[22].mxu1 %vm137_vm3, %v2214_v7 }
0x138d   :  { %4114 = vmatpush3.bf16.msra.mxu1 %v4426_v30  ;;  %3790 = vmatprep.mubr.msk.f32.mxu1 %vm4344_vm0, %v4345_v6 }
0x138e   :  { %4115 = vmatprep.subr.bf16.mxu1 %v4343_v3  ;;  %v2484_v53 = vpop.permute.xlu0 %2483 }
0x138f   :  { %v2487_v13 = vpop.permute.xlu1 %2486 }
0x1390   :  { %v2489_v14 = vsel %vm137_vm3, %v2484_v53, %v2487_v13 }
0x1391   :  { %4117 = vmatpush3.bf16.msra.mxu1 %v4429_v32  ;;  %3810 = vmatmul.mubr.msk.f32.vlgmr.msra.gmra.mrb[24].mxu0 %vm334_vm4, %v2489_v14 }
0x1392   :  { %4118 = vmatprep.subr.bf16.mxu1 %v4343_v3  ;;  %4144 = vmatpush3.bf16.msra.mxu0 %v4426_v30  ;;  %v2387_v20 = vpop.permute.xlu0 %2386 }
0x1393   :  { %4145 = vmatprep.subr.bf16.mxu0 %v4343_v3  ;;  %3839 = vmatprep.mubr.msk.f32.mxu0 %vm4344_vm0, %v4345_v6  ;;  %v2389_v30 = vsel %vm137_vm3, %v2290_v47, %v2387_v20 }
0x1395   :  { %4120 = vmatpush3.bf16.msra.mxu1 %v4433_v35 }
0x1396   :  { %4121 = vmatprep.subr.bf16.mxu1 %v4343_v3  ;;  %4147 = vmatpush3.bf16.msra.mxu0 %v4429_v32  ;;  %v131_v32 = vstv %s3162_s29 }
0x1397   :  { %4148 = vmatprep.subr.bf16.mxu0 %v4343_v3 }
0x1399   :  { %4123 = vmatpush3.bf16.msra.mxu1 %v4438_v39 }
0x139a   :  { %4136 = vmatprep.subr.bf16.mxu1 %v4343_v3  ;;  %4150 = vmatpush3.bf16.msra.mxu0 %v4433_v35  ;;  %v133_v35 = vstv %s3163_s30 }
0x139b   :  { %4151 = vmatprep.subr.bf16.mxu0 %v4343_v3  ;;  %v134_v55 = vsel %vm74_vm1, %v133_v35, %v131_v32 }
0x139c   :  { %3791 = vmatmul.mubr.msk.f32.vlgmr.msra.gmra.mrb[24].mxu1 %vm334_vm4, %v2389_v30  ;;  %vm135_vm11 = vcmp.eq.s32.totalorder %v134_v55, 0  ;;  %v4976_v55 = vld [vmem:[#allocation5 + $0xd0] ss:$0 sm:$0xff] }
0x139d   :  { %4138 = vmatpush3.bf16.msra.mxu1 %v4544_v34  ;;  %3820 = vmatprep.mubr.msk.f32.mxu1 %vm4344_vm0, %v4345_v6  ;;  %v136_v56 = vsel %vm135_vm11, %v4822_v50, %v4824_v52 }
0x139e   :  { %4139 = vmatprep.subr.bf16.mxu1 %v4343_v3  ;;  %4153 = vmatpush3.bf16.msra.mxu0 %v4438_v39 }
0x139f   :  { %4166 = vmatprep.subr.bf16.mxu0 %v4343_v3 }
0x13a1   :  { %4141 = vmatpush3.bf16.msra.mxu1 %v4549_v38 }
0x13a2   :  { %4154 = vmatprep.subr.bf16.mxu1 %v4343_v3 }
0x1430   :  { %v2359_v23 = vpop.f32.mrb[22].mxu0 }
0x1431   :  { %v2363_v57 = vadd.f32 %v2359_v23, %v136_v56  ;;  %v3773_v39 = vpop.f32.mrb[23].mxu0 }
0x1433   :  { %4272 = vtanh.f32 %v2363_v57 }
0x143d   :  { %v4273_v58 = vpop.eup %4272 }
0x143e   :  { %2369 = vrot.lane.b32.xlu0 %v4273_v58, %s4346_s8  ;;  %v2365_v12 = vmul.f32 0.5, %v4273_v58 }
0x1440   :  { %v2366_v51 = vadd.f32 0.5, %v2365_v12 }
0x1442   :  { %v2367_v33 = vmul.f32 %v2366_v51, %v4843_v31 }
0x145f   :  { %v2283_v29 = vpop.f32.mrb[22].mxu1 }
0x1460   :  { %v2284_v60 = vadd.f32 %v4600_v62, %v2283_v29  ;;  %v3762_v63 = vpop.f32.mrb[23].mxu1 }
0x1462   :  { %2287 = vst [vmem:[%s5040_s2 + $0x20] sm:$0xff] %v2284_v60 }
0x1464   :  { %v2559_v9 = vpop.f32.mrb[24].mxu0 }
0x1465   :  { %v2560_v50 = vadd.f32 %v4913_v1, %v2559_v9  ;;  %v3811_v52 = vpop.f32.mrb[25].mxu0 }
0x1467   :  { %4274 = vtanh.f32 %v2560_v50 }
0x146f   :  { %v2459_v48 = vpop.f32.mrb[24].mxu1 }
0x1470   :  { %v2460_v2 = vadd.f32 %v4834_v61, %v2459_v48  ;;  %v3792_v45 = vpop.f32.mrb[25].mxu1 }
0x1471   :  { %v4275_v10 = vpop.eup %4274 }
0x1472   :  { %4276 = vtanh.f32 %v2460_v2  ;;  %2568 = vrot.lane.b32.xlu1 %v4275_v10, %s4346_s8  ;;  %v2564_v54 = vmul.f32 0.5, %v4275_v10 }
0x1474   :  { %v2565_v18 = vadd.f32 0.5, %v2564_v54 }
0x1476   :  { %v2566_v40 = vmul.f32 %v2565_v18, %v4848_v11 }
0x147c   :  { %v4277_v62 = vpop.eup %4276 }
0x147d   :  { %2468 = vrot.lane.b32.xlu1 %v4277_v62, %s4346_s8  ;;  %v2464_v59 = vmul.f32 0.5, %v4277_v62 }
0x147f   :  { %v2465_v28 = vadd.f32 0.5, %v2464_v59 }
0x1481   :  { %v2466_v43 = vmul.f32 %v2465_v28, %v4852_v41 }
0x14b0   :  { %v2370_v49 = vpop.permute.xlu0 %2369 }
0x14b1   :  { %v2372_v16 = vmul.f32 %v2370_v49, %v2366_v51 }
0x14b3   :  { %2374 = vrot.lane.b32.xlu1 %v2372_v16, %s4347_s9 }
0x14e4   :  { %v2569_v22 = vpop.permute.xlu1 %2568 }
0x14e5   :  { %v2571_v25 = vmul.f32 %v2569_v22, %v2565_v18 }
0x14e7   :  { %2573 = vrot.lane.b32.xlu0 %v2571_v25, %s4347_s9 }
0x14ef   :  { %v2469_v8 = vpop.permute.xlu1 %2468 }
0x14f0   :  { %v2471_v0 = vmul.f32 %v2469_v8, %v2465_v28 }
0x14f2   :  { %2473 = vrot.lane.b32.xlu0 %v2471_v0, %s4347_s9 }
0x1525   :  { %v2375_v5 = vpop.permute.xlu1 %2374 }
0x1526   :  { %v4923_v36 = vadd.f32 %v2375_v5, %v2367_v33 }
0x1528   :  { %4278 = vtanh.f32 %v4923_v36 }
0x1532   :  { %v4279_v37 = vpop.eup %4278 }
0x1533   :  { %2380 = vrot.lane.b32.xlu0 %v4279_v37, %s4346_s8 }
0x1559   :  { %v2574_v15 = vpop.permute.xlu0 %2573 }
0x155a   :  { %v4928_v42 = vadd.f32 %v2574_v15, %v2566_v40 }
0x155c   :  { %4280 = vtanh.f32 %v4928_v42 }
0x1564   :  { %v2474_v21 = vpop.permute.xlu0 %2473 }
0x1565   :  { %v4932_v44 = vadd.f32 %v2474_v21, %v2466_v43 }
0x1566   :  { %v4281_v31 = vpop.eup %4280 }
0x1567   :  { %4282 = vtanh.f32 %v4932_v44  ;;  %2579 = vrot.lane.b32.xlu1 %v4281_v31, %s4346_s8 }
0x1571   :  { %v4283_v4 = vpop.eup %4282 }
0x1572   :  { %2479 = vrot.lane.b32.xlu1 %v4283_v4, %s4346_s8 }
0x15a5   :  { %v2381_v26 = vpop.permute.xlu0 %2380 }
0x15a6   :  { %v2383_v11 = vmul.f32 %v2381_v26, %v2366_v51 }
0x15a8   :  { %2660 = vrot.lane.b32.xlu1 %v2383_v11, %s4347_s9 }
0x15d9   :  { %v2580_v46 = vpop.permute.xlu1 %2579 }
0x15da   :  { %v2582_v47 = vmul.f32 %v2580_v46, %v2565_v18 }
0x15dc   :  { %2584 = vrot.lane.b32.xlu0 %v2582_v47, %s4347_s9 }
0x15e4   :  { %v2480_v41 = vpop.permute.xlu1 %2479 }
0x15e5   :  { %v2482_v7 = vmul.f32 %v2480_v41, %v2465_v28 }
0x15e7   :  { %2761 = vrot.lane.b32.xlu1 %v2482_v7, %s4347_s9  ;;  %2664 = vrot.lane.b32.xlu0 %v2482_v7, %s4346_s8 }
0x15eb   :  { %2764 = vrot.lane.b32.xlu0 %v2582_v47, %s4346_s8 }
0x161a   :  { %v2661_v53 = vpop.permute.xlu1 %2660 }
0x161b   :  { %3115 = vst.msk [vmem:[%s5041_s3] sm:$0xff] %vm137_vm3, %v2661_v53 }
0x164e   :  { %v2585_v13 = vpop.permute.xlu0 %2584 }
0x164f   :  { %3821 = vmatmul.mubr.msk.f32.vlgmr.msra.gmra.mrb[26].mxu1 %vm137_vm3, %v2585_v13 }
0x1650   :  { %4156 = vmatpush3.bf16.msra.mxu1 %v4473_v17  ;;  %3858 = vmatprep.mubr.msk.f32.mxu1 %vm4344_vm0, %v4345_v6 }
0x1651   :  { %4157 = vmatprep.subr.bf16.mxu1 %v4343_v3 }
0x1654   :  { %4159 = vmatpush3.bf16.msra.mxu1 %v4476_v19 }
0x1655   :  { %4160 = vmatprep.subr.bf16.mxu1 %v4343_v3 }
0x1658   :  { %4162 = vmatpush3.bf16.msra.mxu1 %v4481_v24 }
0x1659   :  { %v2665_v14 = vpop.permute.xlu0 %2664  ;;  %4163 = vmatprep.subr.bf16.mxu1 %v4343_v3  ;;  %v2762_v30 = vpop.permute.xlu1 %2761 }
0x165a   :  { %v2667_v20 = vsel %vm137_vm3, %v2661_v53, %v2665_v14 }
0x165b   :  { %3840 = vmatmul.mubr.msk.f32.vlgmr.msra.gmra.mrb[26].mxu0 %vm334_vm4, %v2667_v20 }
0x165c   :  { %4165 = vmatpush3.bf16.msra.mxu1 %v4487_v27  ;;  %4168 = vmatpush3.bf16.msra.mxu0 %v4544_v34 }
0x165d   :  { %v2765_v32 = vpop.permute.xlu0 %2764  ;;  %4172 = vmatprep.subr.bf16.mxu1 %v4343_v3  ;;  %4169 = vmatprep.subr.bf16.mxu0 %v4343_v3 }
0x165e   :  { %v2767_v35 = vsel %vm137_vm3, %v2762_v30, %v2765_v32  ;;  %3869 = vmatprep.mubr.msk.f32.mxu0 %vm4344_vm0, %v4345_v6 }
0x165f   :  { %3859 = vmatmul.mubr.msk.f32.vlgmr.msra.gmra.mrb[28].mxu1 %vm334_vm4, %v2767_v35 }
0x1660   :  { %4174 = vmatpush3.bf16.msra.mxu1 %v4473_v17  ;;  %3888 = vmatprep.mubr.msk.f32.mxu1 %vm4344_vm0, %v4345_v6 }
0x1661   :  { %4175 = vmatprep.subr.bf16.mxu1 %v4343_v3  ;;  %4171 = vmatpush3.bf16.msra.mxu0 %v4549_v38 }
0x1662   :  { %4184 = vmatprep.subr.bf16.mxu0 %v4343_v3 }
0x1664   :  { %4177 = vmatpush3.bf16.msra.mxu1 %v4476_v19 }
0x1665   :  { %4178 = vmatprep.subr.bf16.mxu1 %v4343_v3 }
0x1668   :  { %4180 = vmatpush3.bf16.msra.mxu1 %v4481_v24 }
0x1669   :  { %4181 = vmatprep.subr.bf16.mxu1 %v4343_v3 }
0x166c   :  { %4183 = vmatpush3.bf16.msra.mxu1 %v4487_v27 }
0x1722   :  { %v2654_v17 = vpop.f32.mrb[26].mxu1 }
0x1723   :  { %v2655_v56 = vadd.f32 %v4976_v55, %v2654_v17  ;;  %v3822_v23 = vpop.f32.mrb[27].mxu1 }
0x1725   :  { %2658 = vst [vmem:[%s5040_s2 + $0x28] sm:$0xff] %v2655_v56 }
0x172e   :  { %v2737_v57 = vpop.f32.mrb[26].mxu0 }
0x172f   :  { %v2738_v19 = vadd.f32 %v4834_v61, %v2737_v57  ;;  %v3841_v39 = vpop.f32.mrb[27].mxu0 }
0x1731   :  { %4284 = vtanh.f32 %v2738_v19 }
0x1732   :  { %v2837_v24 = vpop.f32.mrb[28].mxu1 }
0x1733   :  { %v2838_v58 = vadd.f32 %v4913_v1, %v2837_v24  ;;  %v3860_v29 = vpop.f32.mrb[29].mxu1 }
0x1735   :  { %4286 = vtanh.f32 %v2838_v58 }
0x173b   :  { %v4285_v27 = vpop.eup %4284 }
0x173c   :  { %2746 = vrot.lane.b32.xlu1 %v4285_v27, %s4346_s8  ;;  %v2742_v63 = vmul.f32 0.5, %v4285_v27 }
0x173e   :  { %v2743_v9 = vadd.f32 0.5, %v2742_v63 }
0x173f   :  { %v4287_v60 = vpop.eup %4286 }
0x1740   :  { %2846 = vrot.lane.b32.xlu0 %v4287_v60, %s4346_s8  ;;  %v2842_v50 = vmul.f32 0.5, %v4287_v60  ;;  %v2744_v10 = vmul.f32 %v2743_v9, %v4932_v44 }
0x1742   :  { %v2843_v61 = vadd.f32 0.5, %v2842_v50 }
0x1744   :  { %v2844_v51 = vmul.f32 %v2843_v61, %v4928_v42 }
0x17ae   :  { %v2747_v52 = vpop.permute.xlu1 %2746 }
0x17af   :  { %v2749_v48 = vmul.f32 %v2747_v52, %v2743_v9 }
0x17b1   :  { %2751 = vrot.lane.b32.xlu1 %v2749_v48, %s4347_s9 }
0x17b2   :  { %v2847_v2 = vpop.permute.xlu0 %2846 }
0x17b3   :  { %v2849_v45 = vmul.f32 %v2847_v2, %v2843_v61 }
0x17b5   :  { %2851 = vrot.lane.b32.xlu0 %v2849_v45, %s4347_s9 }
0x1823   :  { %v2752_v62 = vpop.permute.xlu1 %2751 }
0x1824   :  { %v2754_v12 = vadd.f32 %v2752_v62, %v2744_v10 }
0x1826   :  { %4288 = vtanh.f32 %v2754_v12 }
0x1827   :  { %v2852_v49 = vpop.permute.xlu0 %2851 }
0x1828   :  { %v2854_v16 = vadd.f32 %v2852_v49, %v2844_v51 }
0x182a   :  { %4290 = vtanh.f32 %v2854_v16 }
0x1830   :  { %v4289_v54 = vpop.eup %4288 }
0x1831   :  { %2757 = vrot.lane.b32.xlu1 %v4289_v54, %s4346_s8 }
0x1834   :  { %v4291_v18 = vpop.eup %4290 }
0x1835   :  { %2857 = vrot.lane.b32.xlu0 %v4291_v18, %s4346_s8 }
0x18a3   :  { %v2758_v22 = vpop.permute.xlu1 %2757 }
0x18a4   :  { %v2760_v25 = vmul.f32 %v2758_v22, %v2743_v9 }
0x18a6   :  { %2938 = vrot.lane.b32.xlu1 %v2760_v25, %s4347_s9 }
0x18a7   :  { %v2858_v59 = vpop.permute.xlu0 %2857 }
0x18a8   :  { %v2860_v28 = vmul.f32 %v2858_v59, %v2843_v61 }
0x18aa   :  { %2941 = vrot.lane.b32.xlu0 %v2860_v28, %s4346_s8 }
0x1918   :  { %v2939_v8 = vpop.permute.xlu1 %2938 }
0x1919   :  { %3116 = vst.msk [vmem:[%s5041_s3 + $0x8] sm:$0xff] %vm137_vm3, %v2939_v8 }
0x191c   :  { %v2942_v0 = vpop.permute.xlu0 %2941 }
0x191d   :  { %v2944_v33 = vsel %vm137_vm3, %v2939_v8, %v2942_v0 }
0x191e   :  { %3889 = vmatmul.mubr.msk.f32.vlgmr.msra.gmra.mrb[30].mxu1 %vm334_vm4, %v2944_v33 }
0x19f1   :  { %v3014_v5 = vpop.f32.mrb[30].mxu1 }
0x19f2   :  { %v3015_v37 = vadd.f32 %v4913_v1, %v3014_v5  ;;  %v3890_v40 = vpop.f32.mrb[31].mxu1 }
0x19f4   :  { %4292 = vtanh.f32 %v3015_v37 }
0x19fe   :  { %v4293_v15 = vpop.eup %4292 }
0x19ff   :  { %3023 = vrot.lane.b32.xlu1 %v4293_v15, %s4346_s8  ;;  %v3019_v42 = vmul.f32 0.5, %v4293_v15 }
0x1a01   :  { %v3020_v43 = vadd.f32 0.5, %v3019_v42 }
0x1a03   :  { %v3021_v31 = vmul.f32 %v3020_v43, %v2854_v16 }
0x1a71   :  { %v3024_v21 = vpop.permute.xlu1 %3023 }
0x1a72   :  { %v3026_v44 = vmul.f32 %v3024_v21, %v3020_v43 }
0x1a74   :  { %3028 = vrot.lane.b32.xlu0 %v3026_v44, %s4347_s9 }
0x1a78   :  { %2862 = vrot.lane.b32.xlu0 %v2860_v28, %s4347_s9 }
0x1a7c   :  { %3121 = vrot.lane.b32.xlu0 %v4923_v36, %s4348_s14 }
0x1ae6   :  { %v3029_v4 = vpop.permute.xlu0 %3028 }
0x1ae7   :  { %v3031_v26 = vadd.f32 %v3029_v4, %v3021_v31 }
0x1ae9   :  { %4294 = vtanh.f32 %v3031_v26  ;;  %3125 = vrot.lane.b32.xlu0 %v3031_v26, %s4348_s14 }
0x1aea   :  { %v2863_v1 = vpop.permute.xlu0 %2862 }
0x1aeb   :  { %3870 = vmatmul.mubr.msk.f32.vlgmr.msra.gmra.mrb[28].mxu0 %vm137_vm3, %v2863_v1 }
0x1aec   :  { %4186 = vmatpush3.bf16.msra.mxu0 %v4544_v34  ;;  %3899 = vmatprep.mubr.msk.f32.mxu0 %vm4344_vm0, %v4345_v6 }
0x1aed   :  { %4187 = vmatprep.subr.bf16.mxu0 %v4343_v3 }
0x1aee   :  { %v3122_v11 = vpop.permute.xlu0 %3121 }
0x1aef   :  { %3130 = vst.msk [vmem:[%s5042_s4] sm:$0xff] %vm137_vm3, %v3122_v11 }
0x1af0   :  { %4189 = vmatpush3.bf16.msra.mxu0 %v4549_v38 }
0x1af3   :  { %v4295_v36 = vpop.eup %4294 }
0x1af4   :  { %3034 = vrot.lane.b32.xlu1 %v4295_v36, %s4346_s8 }
0x1b5b   :  { %v3126_v46 = vpop.permute.xlu0 %3125 }
0x1b5c   :  { %3132 = vst.msk [vmem:[%s5042_s4 + $0x10] sm:$0xff] %vm137_vm3, %v3126_v46 }
0x1b66   :  { %v3035_v6 = vpop.permute.xlu1 %3034 }
0x1b67   :  { %v3037_v34 = vmul.f32 %v3035_v6, %v3020_v43 }
0x1b69   :  { %3039 = vrot.lane.b32.xlu1 %v3037_v34, %s4347_s9 }
0x1b6d   :  { %3123 = vrot.lane.b32.xlu1 %v2754_v12, %s4348_s14 }
0x1bbe   :  { %v2932_v3 = vpop.f32.mrb[28].mxu0 }
0x1bbf   :  { %v2933_v47 = vadd.f32 %v4976_v55, %v2932_v3  ;;  %v3871_v41 = vpop.f32.mrb[29].mxu0 }
0x1bc1   :  { %2936 = vst [vmem:[%s5040_s2 + $0x30] sm:$0xff] %v2933_v47 }
0x1bdb   :  { %v3040_v38 = vpop.permute.xlu1 %3039 }
0x1bdc   :  { %3117 = vst.msk [vmem:[%s5041_s3 + $0x10] sm:$0xff] %vm137_vm3, %v3040_v38  ;;  %3900 = vmatmul.mubr.msk.f32.vlgmr.msra.gmra.mrb[30].mxu0 %vm137_vm3, %v3040_v38 }
0x1bdf   :  { %v3124_v7 = vpop.permute.xlu1 %3123 }
0x1be0   :  { %3131 = vst.msk [vmem:[%s5042_s4 + $0x8] sm:$0xff] %vm137_vm3, %v3124_v7 }
0x1caf   :  { %v3109_v53 = vpop.f32.mrb[30].mxu0 }
0x1cb0   :  { %v3110_v13 = vadd.f32 %v4976_v55, %v3109_v53  ;;  %v3901_v14 = vpop.f32.mrb[31].mxu0 }
0x1cb2   :  { %3113 = vst [vmem:[%s5040_s2 + $0x38] sm:$0xff] %v3110_v13 }
0x1cb3   :  { %3145 = vsyncpa [#allocation3], 1 }
0x1cb4   :  { %3146 = vsyncpa [#allocation4], 1 }

</bundles_post_ra>
